<compile_context>
chip_gen: v6e
topology: v6e:2x2x1
jax: 0.10.0
libtpu: 0.0.40
codegen_flags: <defaults>
</compile_context>

<pallas_src>
import jax
import jax.numpy as jnp
import numpy as np
from jax.experimental import pallas as pl
from jax.experimental.pallas import tpu as pltpu

# ----------------------------- model config ---------------------------------
EMBED_SIZE = 32
HIDDEN_SIZE = 32
VOCAB_SIZE = 64
NUM_LAYERS = 3          # kernel assumes num_layers == 3 scratch buffers (see wrapper)
BATCH = 2
CAPTION_LEN = 8         # captions (B, CAPTION_LEN); LSTM sees T = CAPTION_LEN steps

assert EMBED_SIZE == HIDDEN_SIZE, "stacked (L, E, 4H) Wih path assumes E == H"


# ------------------------------- kernel -------------------------------------
def _decoder_kernel(feat_ref,   # (B, E)   f32  VMEM  image features (t = 0 input)
                    cap_ref,    # (B, S)   i32  SMEM  captions; cols 0..S-2 feed t = 1..S-1
                    emb_ref,    # (V, E)   f32  VMEM  embedding table (resident)
                    wih_ref,    # (L, E, 4H) f32      input->gates weights (pre-transposed)
                    whh_ref,    # (L, H, 4H) f32      hidden->gates weights (pre-transposed)
                    b_ref,      # (L, 1, 4H) f32      b_ih + b_hh folded
                    wout_ref,   # (H, V)   f32        hidden2tag weight
                    bout_ref,   # (1, V)   f32        hidden2tag bias
                    out_ref,    # (B*T, V) f32        batch-major logits (row = b*T + t)
                    x_sc,       # (T*B, E) VMEM scratch: time-major LSTM inputs
                    *stage_sc): # NUM_LAYERS x (T*B, H) VMEM scratch: per-layer h_t staging
    B, _E = feat_ref.shape
    T = cap_ref.shape[1]
    H = wout_ref.shape[0]
    L = wih_ref.shape[0]

    # ---- in-kernel glue: embedding gather + concat (replaces XLA take/concat/transpose).
    # Row t*B + b of x_sc is the layer-0 input at time t for batch b (time-major).
    x_sc[pl.ds(0, B), :] = feat_ref[...]                      # t = 0: image features
    for t in range(1, T):
        for b in range(B):
            tok = cap_ref[b, t - 1]                           # SMEM scalar read
            x_sc[pl.ds(t * B + b, 1), :] = emb_ref[pl.ds(tok, 1), :]   # dynamic row load

    def run_layer(xg, whh_l, out_sc, batch_major):
        """Serial LSTM recurrence for one layer; x @ Wih + b precomputed in `xg`."""
        h = jnp.zeros((B, H), jnp.float32)
        c = jnp.zeros((B, H), jnp.float32)
        for t in range(T):                                    # static unroll, T = 8
            # Only the recurrent matmul sits on the serial chain: (B,H) x (H,4H).
            gates = xg[t * B:(t + 1) * B, :] + jnp.dot(
                h, whh_l, preferred_element_type=jnp.float32)  # (B, 4H), gate order i,f,g,o
            sig = jax.nn.sigmoid(gates)   # one full-vreg EUP pass (g lanes unused but free)
            i_g = sig[:, 0 * H:1 * H]
            f_g = sig[:, 1 * H:2 * H]
            o_g = sig[:, 3 * H:4 * H]
            g_g = jnp.tanh(gates[:, 2 * H:3 * H])
            c = f_g * c + i_g * g_g
            h = o_g * jnp.tanh(c)
            # Stage h_t for the next layer's batched input GEMM / the output GEMM.
            # The recurrence carries h in registers, so these stores are off the chain.
            if batch_major:               # top layer: row = b*T + t -> free reshape outside
                for b in range(B):
                    out_sc[pl.ds(b * T + t, 1), :] = h[b:b + 1, :]
            else:                         # time-major: row = t*B + b
                out_sc[pl.ds(t * B, B), :] = h

    # ---- layer-by-layer: one batched (T*B, in) x (in, 4H) input GEMM per layer
    #      (bias folded in, loaded once), then the recurrence.  Grouping each layer's 8
    #      recurrent matmuls textually keeps the same (H, 4H) RHS hot in the MXU. ----
    for l in range(L):
        src = x_sc if l == 0 else stage_sc[l - 1]
        xg = jnp.dot(src[...], wih_ref[l],
                     preferred_element_type=jnp.float32) + b_ref[l]     # (T*B, 4H)
        run_layer(xg, whh_ref[l], stage_sc[l], batch_major=(l == L - 1))

    # hidden2tag: one (B*T, H) x (H, V) GEMM + single store (kernel epilogue; the V=64
    # masked store is off the critical path and keeps the wrapper reshape free).
    out_ref[...] = (jnp.dot(stage_sc[L - 1][...], wout_ref[...],
                            preferred_element_type=jnp.float32) + bout_ref[...])


# ------------------------------- wrapper -------------------------------------
@jax.jit
def decoder_rnn_forward(features, captions, params):
    """PyTorch DecoderRNN.forward: (B,E) features, (B,S) int captions -> (B,S,V)."""
    B = features.shape[0]
    T = captions.shape[1]          # 1 feature step + (S-1) embedded caption steps = S
    H, V, E = HIDDEN_SIZE, VOCAB_SIZE, EMBED_SIZE
    vmem = pl.BlockSpec(memory_space=pltpu.MemorySpace.VMEM)
    smem = pl.BlockSpec(memory_space=pltpu.MemorySpace.SMEM)

    out_flat = pl.pallas_call(
        _decoder_kernel,
        out_shape=jax.ShapeDtypeStruct((B * T, V), jnp.float32),
        in_specs=[vmem,   # features
                  smem,   # captions (int32 scalars)
                  vmem,   # embedding table
                  vmem,   # wih (L, E, 4H)
                  vmem,   # whh (L, H, 4H)
                  vmem,   # bias (L, 1, 4H)
                  vmem,   # wout (H, V)
                  vmem],  # bout (1, V)
        out_specs=vmem,
        scratch_shapes=[pltpu.VMEM((T * B, E), jnp.float32)]                 # x staging
                      + [pltpu.VMEM((T * B, H), jnp.float32)                 # per-layer h
                         for _ in range(NUM_LAYERS)],
    )(features.astype(jnp.float32), captions.astype(jnp.int32),
      params["embed"], params["wih"], params["whh"], params["b"],
      params["wout"], params["bout"])

    return out_flat.reshape(B, T, V)   # batch-major rows -> pure (free) reshape


# --------------------------- deterministic params ---------------------------
def init_params(key):
    """Synthetic weights (uniform +-1/sqrt(H), like torch defaults), pre-stacked into the
    kernel layout ONCE here so the jitted forward does zero weight reshaping."""
    scale = 1.0 / np.sqrt(HIDDEN_SIZE)
    keys = jax.random.split(key, 16)
    k = iter(keys)

    def u(shape):
        return jax.random.uniform(next(k), shape, jnp.float32, -scale, scale)

    params = {"embed": u((VOCAB_SIZE, EMBED_SIZE))}
    wih, whh, bias = [], [], []
    in_sizes = [EMBED_SIZE] + [HIDDEN_SIZE] * (NUM_LAYERS - 1)
    for l in range(NUM_LAYERS):
        # stored transposed vs torch: (in, 4H) / (H, 4H); bias = b_ih + b_hh folded
        wih.append(u((in_sizes[l], 4 * HIDDEN_SIZE)))
        whh.append(u((HIDDEN_SIZE, 4 * HIDDEN_SIZE)))
        bias.append(u((1, 4 * HIDDEN_SIZE)) + u((1, 4 * HIDDEN_SIZE)))
    params["wih"] = jnp.stack(wih, axis=0)    # (L, E, 4H)
    params["whh"] = jnp.stack(whh, axis=0)    # (L, H, 4H)
    params["b"] = jnp.stack(bias, axis=0)     # (L, 1, 4H)
    params["wout"] = u((HIDDEN_SIZE, VOCAB_SIZE))
    params["bout"] = u((1, VOCAB_SIZE))
    return params


# ------------------------------ pure-JAX ref ---------------------------------
def reference_forward(features, captions, params):
    embeds = jnp.take(params["embed"], captions[:, :-1], axis=0)
    inputs = jnp.concatenate([features[:, None, :], embeds], axis=1)  # (B, T, E)
    B, T, _ = inputs.shape
    H = HIDDEN_SIZE
    h = [jnp.zeros((B, H), jnp.float32) for _ in range(NUM_LAYERS)]
    c = [jnp.zeros((B, H), jnp.float32) for _ in range(NUM_LAYERS)]
    outs = []
    for t in range(T):
        x = inputs[:, t, :]
        for l in range(NUM_LAYERS):
            gates = x @ params["wih"][l] + h[l] @ params["whh"][l] + params["b"][l]
            i_g = jax.nn.sigmoid(gates[:, 0 * H:1 * H])
            f_g = jax.nn.sigmoid(gates[:, 1 * H:2 * H])
            g_g = jnp.tanh(gates[:, 2 * H:3 * H])
            o_g = jax.nn.sigmoid(gates[:, 3 * H:4 * H])
            c[l] = f_g * c[l] + i_g * g_g
            h[l] = o_g * jnp.tanh(c[l])
            x = h[l]
        outs.append(x @ params["wout"] + params["bout"])
    return jnp.stack(outs, axis=1)  # (B, T, V)


# --------------------------------- main --------------------------------------
if __name__ == "__main__":
    root = jax.random.PRNGKey(0)
    k_param, k_feat, k_cap = jax.random.split(root, 3)

    params = init_params(k_param)
    features = jax.random.normal(k_feat, (BATCH, EMBED_SIZE), jnp.float32)
    captions = jax.random.randint(k_cap, (BATCH, CAPTION_LEN), 0, VOCAB_SIZE, jnp.int32)

    out = decoder_rnn_forward(features, captions, params)
    out = jax.block_until_ready(out)

    ref = reference_forward(features, captions, params)
    assert out.shape == (BATCH, CAPTION_LEN, VOCAB_SIZE), out.shape
    # Tolerance deliberately 1e-3: kernel and reference regroup the matmuls differently,
    # so MXU default-precision rounding patterns differ slightly (per review guidance).
    np.testing.assert_allclose(np.asarray(out), np.asarray(ref), rtol=1e-3, atol=1e-3)

    print("KERNEL_OK")
</pallas_src>

<mosaic_0001>
module attributes {stable_mosaic.version = 11 : i64} {
  func.func @_decoder_kernel(%arg0: memref<2x32xf32, #tpu.memory_space<vmem>>, %arg1: memref<2x8xi32, #tpu.memory_space<smem>>, %arg2: memref<64x32xf32, #tpu.memory_space<vmem>>, %arg3: memref<3x32x128xf32, #tpu.memory_space<vmem>>, %arg4: memref<3x32x128xf32, #tpu.memory_space<vmem>>, %arg5: memref<3x1x128xf32, #tpu.memory_space<vmem>>, %arg6: memref<32x64xf32, #tpu.memory_space<vmem>>, %arg7: memref<1x64xf32, #tpu.memory_space<vmem>>, %arg8: memref<16x64xf32, #tpu.memory_space<vmem>>, %arg9: memref<16x32xf32, #tpu.memory_space<vmem>>, %arg10: memref<16x32xf32, #tpu.memory_space<vmem>>, %arg11: memref<16x32xf32, #tpu.memory_space<vmem>>, %arg12: memref<16x32xf32, #tpu.memory_space<vmem>>) attributes {dimension_semantics = [], scalar_prefetch = 0 : i64, scratch_operands = 4 : i64, tpu.core_type = #tpu.core_type<tc>} {
    %c0 = arith.constant 0 : index
    %c0_0 = arith.constant 0 : index
    %0 = vector.load %arg0[%c0, %c0_0] : memref<2x32xf32, #tpu.memory_space<vmem>>, vector<2x32xf32>
    %c0_1 = arith.constant 0 : index
    %c0_2 = arith.constant 0 : index
    %1 = vector.load %arg9[%c0_1, %c0_2] : memref<16x32xf32, #tpu.memory_space<vmem>>, vector<2x32xf32>
    tpu.vector_store %arg9[%c0_1, %c0_2], %0 {strides = array<i32>} : memref<16x32xf32, #tpu.memory_space<vmem>>, vector<2x32xf32>,
    %c0_3 = arith.constant 0 : index
    %c0_4 = arith.constant 0 : index
    %2 = memref.load %arg1[%c0_3, %c0_4] : memref<2x8xi32, #tpu.memory_space<smem>>
    %3 = arith.index_cast %2 : i32 to index
    %c0_5 = arith.constant 0 : index
    %4 = vector.load %arg2[%3, %c0_5] : memref<64x32xf32, #tpu.memory_space<vmem>>, vector<1x32xf32>
    %c2 = arith.constant 2 : index
    %c0_6 = arith.constant 0 : index
    %5 = vector.load %arg9[%c2, %c0_6] : memref<16x32xf32, #tpu.memory_space<vmem>>, vector<1x32xf32>
    tpu.vector_store %arg9[%c2, %c0_6], %4 {strides = array<i32>} : memref<16x32xf32, #tpu.memory_space<vmem>>, vector<1x32xf32>,
    %c1 = arith.constant 1 : index
    %c0_7 = arith.constant 0 : index
    %6 = memref.load %arg1[%c1, %c0_7] : memref<2x8xi32, #tpu.memory_space<smem>>
    %7 = arith.index_cast %6 : i32 to index
    %c0_8 = arith.constant 0 : index
    %8 = vector.load %arg2[%7, %c0_8] : memref<64x32xf32, #tpu.memory_space<vmem>>, vector<1x32xf32>
    %c3 = arith.constant 3 : index
    %c0_9 = arith.constant 0 : index
    %9 = vector.load %arg9[%c3, %c0_9] : memref<16x32xf32, #tpu.memory_space<vmem>>, vector<1x32xf32>
    tpu.vector_store %arg9[%c3, %c0_9], %8 {strides = array<i32>} : memref<16x32xf32, #tpu.memory_space<vmem>>, vector<1x32xf32>,
    %c0_10 = arith.constant 0 : index
    %c1_11 = arith.constant 1 : index
    %10 = memref.load %arg1[%c0_10, %c1_11] : memref<2x8xi32, #tpu.memory_space<smem>>
    %11 = arith.index_cast %10 : i32 to index
    %c0_12 = arith.constant 0 : index
    %12 = vector.load %arg2[%11, %c0_12] : memref<64x32xf32, #tpu.memory_space<vmem>>, vector<1x32xf32>
    %c4 = arith.constant 4 : index
    %c0_13 = arith.constant 0 : index
    %13 = vector.load %arg9[%c4, %c0_13] : memref<16x32xf32, #tpu.memory_space<vmem>>, vector<1x32xf32>
    tpu.vector_store %arg9[%c4, %c0_13], %12 {strides = array<i32>} : memref<16x32xf32, #tpu.memory_space<vmem>>, vector<1x32xf32>,
    %c1_14 = arith.constant 1 : index
    %c1_15 = arith.constant 1 : index
    %14 = memref.load %arg1[%c1_14, %c1_15] : memref<2x8xi32, #tpu.memory_space<smem>>
    %15 = arith.index_cast %14 : i32 to index
    %c0_16 = arith.constant 0 : index
    %16 = vector.load %arg2[%15, %c0_16] : memref<64x32xf32, #tpu.memory_space<vmem>>, vector<1x32xf32>
    %c5 = arith.constant 5 : index
    %c0_17 = arith.constant 0 : index
    %17 = vector.load %arg9[%c5, %c0_17] : memref<16x32xf32, #tpu.memory_space<vmem>>, vector<1x32xf32>
    tpu.vector_store %arg9[%c5, %c0_17], %16 {strides = array<i32>} : memref<16x32xf32, #tpu.memory_space<vmem>>, vector<1x32xf32>,
    %c0_18 = arith.constant 0 : index
    %c2_19 = arith.constant 2 : index
    %18 = memref.load %arg1[%c0_18, %c2_19] : memref<2x8xi32, #tpu.memory_space<smem>>
    %19 = arith.index_cast %18 : i32 to index
    %c0_20 = arith.constant 0 : index
    %20 = vector.load %arg2[%19, %c0_20] : memref<64x32xf32, #tpu.memory_space<vmem>>, vector<1x32xf32>
    %c6 = arith.constant 6 : index
    %c0_21 = arith.constant 0 : index
    %21 = vector.load %arg9[%c6, %c0_21] : memref<16x32xf32, #tpu.memory_space<vmem>>, vector<1x32xf32>
    tpu.vector_store %arg9[%c6, %c0_21], %20 {strides = array<i32>} : memref<16x32xf32, #tpu.memory_space<vmem>>, vector<1x32xf32>,
    %c1_22 = arith.constant 1 : index
    %c2_23 = arith.constant 2 : index
    %22 = memref.load %arg1[%c1_22, %c2_23] : memref<2x8xi32, #tpu.memory_space<smem>>
    %23 = arith.index_cast %22 : i32 to index
    %c0_24 = arith.constant 0 : index
    %24 = vector.load %arg2[%23, %c0_24] : memref<64x32xf32, #tpu.memory_space<vmem>>, vector<1x32xf32>
    %c7 = arith.constant 7 : index
    %c0_25 = arith.constant 0 : index
    %25 = vector.load %arg9[%c7, %c0_25] : memref<16x32xf32, #tpu.memory_space<vmem>>, vector<1x32xf32>
    tpu.vector_store %arg9[%c7, %c0_25], %24 {strides = array<i32>} : memref<16x32xf32, #tpu.memory_space<vmem>>, vector<1x32xf32>,
    %c0_26 = arith.constant 0 : index
    %c3_27 = arith.constant 3 : index
    %26 = memref.load %arg1[%c0_26, %c3_27] : memref<2x8xi32, #tpu.memory_space<smem>>
    %27 = arith.index_cast %26 : i32 to index
    %c0_28 = arith.constant 0 : index
    %28 = vector.load %arg2[%27, %c0_28] : memref<64x32xf32, #tpu.memory_space<vmem>>, vector<1x32xf32>
    %c8 = arith.constant 8 : index
    %c0_29 = arith.constant 0 : index
    %29 = vector.load %arg9[%c8, %c0_29] : memref<16x32xf32, #tpu.memory_space<vmem>>, vector<1x32xf32>
    tpu.vector_store %arg9[%c8, %c0_29], %28 {strides = array<i32>} : memref<16x32xf32, #tpu.memory_space<vmem>>, vector<1x32xf32>,
    %c1_30 = arith.constant 1 : index
    %c3_31 = arith.constant 3 : index
    %30 = memref.load %arg1[%c1_30, %c3_31] : memref<2x8xi32, #tpu.memory_space<smem>>
    %31 = arith.index_cast %30 : i32 to index
    %c0_32 = arith.constant 0 : index
    %32 = vector.load %arg2[%31, %c0_32] : memref<64x32xf32, #tpu.memory_space<vmem>>, vector<1x32xf32>
    %c9 = arith.constant 9 : index
    %c0_33 = arith.constant 0 : index
    %33 = vector.load %arg9[%c9, %c0_33] : memref<16x32xf32, #tpu.memory_space<vmem>>, vector<1x32xf32>
    tpu.vector_store %arg9[%c9, %c0_33], %32 {strides = array<i32>} : memref<16x32xf32, #tpu.memory_space<vmem>>, vector<1x32xf32>,
    %c0_34 = arith.constant 0 : index
    %c4_35 = arith.constant 4 : index
    %34 = memref.load %arg1[%c0_34, %c4_35] : memref<2x8xi32, #tpu.memory_space<smem>>
    %35 = arith.index_cast %34 : i32 to index
    %c0_36 = arith.constant 0 : index
    %36 = vector.load %arg2[%35, %c0_36] : memref<64x32xf32, #tpu.memory_space<vmem>>, vector<1x32xf32>
    %c10 = arith.constant 10 : index
    %c0_37 = arith.constant 0 : index
    %37 = vector.load %arg9[%c10, %c0_37] : memref<16x32xf32, #tpu.memory_space<vmem>>, vector<1x32xf32>
    tpu.vector_store %arg9[%c10, %c0_37], %36 {strides = array<i32>} : memref<16x32xf32, #tpu.memory_space<vmem>>, vector<1x32xf32>,
    %c1_38 = arith.constant 1 : index
    %c4_39 = arith.constant 4 : index
    %38 = memref.load %arg1[%c1_38, %c4_39] : memref<2x8xi32, #tpu.memory_space<smem>>
    %39 = arith.index_cast %38 : i32 to index
    %c0_40 = arith.constant 0 : index
    %40 = vector.load %arg2[%39, %c0_40] : memref<64x32xf32, #tpu.memory_space<vmem>>, vector<1x32xf32>
    %c11 = arith.constant 11 : index
    %c0_41 = arith.constant 0 : index
    %41 = vector.load %arg9[%c11, %c0_41] : memref<16x32xf32, #tpu.memory_space<vmem>>, vector<1x32xf32>
    tpu.vector_store %arg9[%c11, %c0_41], %40 {strides = array<i32>} : memref<16x32xf32, #tpu.memory_space<vmem>>, vector<1x32xf32>,
    %c0_42 = arith.constant 0 : index
    %c5_43 = arith.constant 5 : index
    %42 = memref.load %arg1[%c0_42, %c5_43] : memref<2x8xi32, #tpu.memory_space<smem>>
    %43 = arith.index_cast %42 : i32 to index
    %c0_44 = arith.constant 0 : index
    %44 = vector.load %arg2[%43, %c0_44] : memref<64x32xf32, #tpu.memory_space<vmem>>, vector<1x32xf32>
    %c12 = arith.constant 12 : index
    %c0_45 = arith.constant 0 : index
    %45 = vector.load %arg9[%c12, %c0_45] : memref<16x32xf32, #tpu.memory_space<vmem>>, vector<1x32xf32>
    tpu.vector_store %arg9[%c12, %c0_45], %44 {strides = array<i32>} : memref<16x32xf32, #tpu.memory_space<vmem>>, vector<1x32xf32>,
    %c1_46 = arith.constant 1 : index
    %c5_47 = arith.constant 5 : index
    %46 = memref.load %arg1[%c1_46, %c5_47] : memref<2x8xi32, #tpu.memory_space<smem>>
    %47 = arith.index_cast %46 : i32 to index
    %c0_48 = arith.constant 0 : index
    %48 = vector.load %arg2[%47, %c0_48] : memref<64x32xf32, #tpu.memory_space<vmem>>, vector<1x32xf32>
    %c13 = arith.constant 13 : index
    %c0_49 = arith.constant 0 : index
    %49 = vector.load %arg9[%c13, %c0_49] : memref<16x32xf32, #tpu.memory_space<vmem>>, vector<1x32xf32>
    tpu.vector_store %arg9[%c13, %c0_49], %48 {strides = array<i32>} : memref<16x32xf32, #tpu.memory_space<vmem>>, vector<1x32xf32>,
    %c0_50 = arith.constant 0 : index
    %c6_51 = arith.constant 6 : index
    %50 = memref.load %arg1[%c0_50, %c6_51] : memref<2x8xi32, #tpu.memory_space<smem>>
    %51 = arith.index_cast %50 : i32 to index
    %c0_52 = arith.constant 0 : index
    %52 = vector.load %arg2[%51, %c0_52] : memref<64x32xf32, #tpu.memory_space<vmem>>, vector<1x32xf32>
    %c14 = arith.constant 14 : index
    %c0_53 = arith.constant 0 : index
    %53 = vector.load %arg9[%c14, %c0_53] : memref<16x32xf32, #tpu.memory_space<vmem>>, vector<1x32xf32>
    tpu.vector_store %arg9[%c14, %c0_53], %52 {strides = array<i32>} : memref<16x32xf32, #tpu.memory_space<vmem>>, vector<1x32xf32>,
    %c1_54 = arith.constant 1 : index
    %c6_55 = arith.constant 6 : index
    %54 = memref.load %arg1[%c1_54, %c6_55] : memref<2x8xi32, #tpu.memory_space<smem>>
    %55 = arith.index_cast %54 : i32 to index
    %c0_56 = arith.constant 0 : index
    %56 = vector.load %arg2[%55, %c0_56] : memref<64x32xf32, #tpu.memory_space<vmem>>, vector<1x32xf32>
    %c15 = arith.constant 15 : index
    %c0_57 = arith.constant 0 : index
    %57 = vector.load %arg9[%c15, %c0_57] : memref<16x32xf32, #tpu.memory_space<vmem>>, vector<1x32xf32>
    tpu.vector_store %arg9[%c15, %c0_57], %56 {strides = array<i32>} : memref<16x32xf32, #tpu.memory_space<vmem>>, vector<1x32xf32>,
    %c0_58 = arith.constant 0 : index
    %c0_59 = arith.constant 0 : index
    %58 = vector.load %arg9[%c0_58, %c0_59] : memref<16x32xf32, #tpu.memory_space<vmem>>, vector<16x32xf32>
    %c0_60 = arith.constant 0 : index
    %c0_61 = arith.constant 0 : index
    %c0_62 = arith.constant 0 : index
    %59 = vector.load %arg3[%c0_60, %c0_61, %c0_62] : memref<3x32x128xf32, #tpu.memory_space<vmem>>, vector<1x32x128xf32>
    %60 = vector.shape_cast %59 : vector<1x32x128xf32> to vector<32x128xf32>
    %cst = arith.constant dense<0.000000e+00> : vector<16x128xf32>
    %61 = tpu.matmul %58, %60, %cst {dimension_numbers = #tpu.dot_dimension_numbers<[1], [0], [0], [1], [0, 0, 1, 1], [], []>} : vector<16x32xf32>, vector<32x128xf32>, vector<16x128xf32> -> vector<16x128xf32>
    %c0_63 = arith.constant 0 : index
    %c0_64 = arith.constant 0 : index
    %c0_65 = arith.constant 0 : index
    %62 = vector.load %arg5[%c0_63, %c0_64, %c0_65] : memref<3x1x128xf32, #tpu.memory_space<vmem>>, vector<1x1x128xf32>
    %63 = vector.shape_cast %62 : vector<1x1x128xf32> to vector<1x128xf32>
    %64 = vector.broadcast %63 : vector<1x128xf32> to vector<16x128xf32>
    %65 = arith.addf %61, %64 : vector<16x128xf32>
    %c0_66 = arith.constant 0 : index
    %c0_67 = arith.constant 0 : index
    %c0_68 = arith.constant 0 : index
    %66 = vector.load %arg4[%c0_66, %c0_67, %c0_68] : memref<3x32x128xf32, #tpu.memory_space<vmem>>, vector<1x32x128xf32>
    %67 = vector.shape_cast %66 : vector<1x32x128xf32> to vector<32x128xf32>
    %cst_69 = arith.constant 0.000000e+00 : f32
    %68 = vector.broadcast %cst_69 : f32 to vector<2x32xf32>
    %cst_70 = arith.constant 0.000000e+00 : f32
    %69 = vector.broadcast %cst_70 : f32 to vector<2x32xf32>
    %70 = vector.extract_strided_slice %65 {offsets = [0, 0], sizes = [2, 128], strides = [1, 1]} : vector<16x128xf32> to vector<2x128xf32>
    %cst_71 = arith.constant dense<0.000000e+00> : vector<2x128xf32>
    %71 = tpu.matmul %68, %67, %cst_71 {dimension_numbers = #tpu.dot_dimension_numbers<[1], [0], [0], [1], [0, 0, 1, 1], [], []>} : vector<2x32xf32>, vector<32x128xf32>, vector<2x128xf32> -> vector<2x128xf32>
    %72 = arith.addf %70, %71 : vector<2x128xf32>
    %73 = arith.negf %72 : vector<2x128xf32>
    %74 = math.exp %73 : vector<2x128xf32>
    %cst_72 = arith.constant 1.000000e+00 : f32
    %75 = vector.broadcast %cst_72 : f32 to vector<2x128xf32>
    %76 = arith.addf %75, %74 : vector<2x128xf32>
    %77 = arith.divf %75, %76 : vector<2x128xf32>
    %78 = vector.extract_strided_slice %77 {offsets = [0, 0], sizes = [2, 32], strides = [1, 1]} : vector<2x128xf32> to vector<2x32xf32>
    %79 = vector.extract_strided_slice %77 {offsets = [0, 32], sizes = [2, 32], strides = [1, 1]} : vector<2x128xf32> to vector<2x32xf32>
    %80 = vector.extract_strided_slice %77 {offsets = [0, 96], sizes = [2, 32], strides = [1, 1]} : vector<2x128xf32> to vector<2x32xf32>
    %81 = vector.extract_strided_slice %72 {offsets = [0, 64], sizes = [2, 32], strides = [1, 1]} : vector<2x128xf32> to vector<2x32xf32>
    %82 = math.tanh %81 : vector<2x32xf32>
    %83 = arith.mulf %79, %69 : vector<2x32xf32>
    %84 = arith.mulf %78, %82 : vector<2x32xf32>
    %85 = arith.addf %83, %84 : vector<2x32xf32>
    %86 = math.tanh %85 : vector<2x32xf32>
    %87 = arith.mulf %80, %86 : vector<2x32xf32>
    %c0_73 = arith.constant 0 : index
    %c0_74 = arith.constant 0 : index
    %88 = vector.load %arg10[%c0_73, %c0_74] : memref<16x32xf32, #tpu.memory_space<vmem>>, vector<2x32xf32>
    tpu.vector_store %arg10[%c0_73, %c0_74], %87 {strides = array<i32>} : memref<16x32xf32, #tpu.memory_space<vmem>>, vector<2x32xf32>,
    %89 = vector.extract_strided_slice %65 {offsets = [2, 0], sizes = [2, 128], strides = [1, 1]} : vector<16x128xf32> to vector<2x128xf32>
    %cst_75 = arith.constant dense<0.000000e+00> : vector<2x128xf32>
    %90 = tpu.matmul %87, %67, %cst_75 {dimension_numbers = #tpu.dot_dimension_numbers<[1], [0], [0], [1], [0, 0, 1, 1], [], []>} : vector<2x32xf32>, vector<32x128xf32>, vector<2x128xf32> -> vector<2x128xf32>
    %91 = arith.addf %89, %90 : vector<2x128xf32>
    %92 = arith.negf %91 : vector<2x128xf32>
    %93 = math.exp %92 : vector<2x128xf32>
    %cst_76 = arith.constant 1.000000e+00 : f32
    %94 = vector.broadcast %cst_76 : f32 to vector<2x128xf32>
    %95 = arith.addf %94, %93 : vector<2x128xf32>
    %96 = arith.divf %94, %95 : vector<2x128xf32>
    %97 = vector.extract_strided_slice %96 {offsets = [0, 0], sizes = [2, 32], strides = [1, 1]} : vector<2x128xf32> to vector<2x32xf32>
    %98 = vector.extract_strided_slice %96 {offsets = [0, 32], sizes = [2, 32], strides = [1, 1]} : vector<2x128xf32> to vector<2x32xf32>
    %99 = vector.extract_strided_slice %96 {offsets = [0, 96], sizes = [2, 32], strides = [1, 1]} : vector<2x128xf32> to vector<2x32xf32>
    %100 = vector.extract_strided_slice %91 {offsets = [0, 64], sizes = [2, 32], strides = [1, 1]} : vector<2x128xf32> to vector<2x32xf32>
    %101 = math.tanh %100 : vector<2x32xf32>
    %102 = arith.mulf %98, %85 : vector<2x32xf32>
    %103 = arith.mulf %97, %101 : vector<2x32xf32>
    %104 = arith.addf %102, %103 : vector<2x32xf32>
    %105 = math.tanh %104 : vector<2x32xf32>
    %106 = arith.mulf %99, %105 : vector<2x32xf32>
    %c2_77 = arith.constant 2 : index
    %c0_78 = arith.constant 0 : index
    %107 = vector.load %arg10[%c2_77, %c0_78] : memref<16x32xf32, #tpu.memory_space<vmem>>, vector<2x32xf32>
    tpu.vector_store %arg10[%c2_77, %c0_78], %106 {strides = array<i32>} : memref<16x32xf32, #tpu.memory_space<vmem>>, vector<2x32xf32>,
    %108 = vector.extract_strided_slice %65 {offsets = [4, 0], sizes = [2, 128], strides = [1, 1]} : vector<16x128xf32> to vector<2x128xf32>
    %cst_79 = arith.constant dense<0.000000e+00> : vector<2x128xf32>
    %109 = tpu.matmul %106, %67, %cst_79 {dimension_numbers = #tpu.dot_dimension_numbers<[1], [0], [0], [1], [0, 0, 1, 1], [], []>} : vector<2x32xf32>, vector<32x128xf32>, vector<2x128xf32> -> vector<2x128xf32>
    %110 = arith.addf %108, %109 : vector<2x128xf32>
    %111 = arith.negf %110 : vector<2x128xf32>
    %112 = math.exp %111 : vector<2x128xf32>
    %cst_80 = arith.constant 1.000000e+00 : f32
    %113 = vector.broadcast %cst_80 : f32 to vector<2x128xf32>
    %114 = arith.addf %113, %112 : vector<2x128xf32>
    %115 = arith.divf %113, %114 : vector<2x128xf32>
    %116 = vector.extract_strided_slice %115 {offsets = [0, 0], sizes = [2, 32], strides = [1, 1]} : vector<2x128xf32> to vector<2x32xf32>
    %117 = vector.extract_strided_slice %115 {offsets = [0, 32], sizes = [2, 32], strides = [1, 1]} : vector<2x128xf32> to vector<2x32xf32>
    %118 = vector.extract_strided_slice %115 {offsets = [0, 96], sizes = [2, 32], strides = [1, 1]} : vector<2x128xf32> to vector<2x32xf32>
    %119 = vector.extract_strided_slice %110 {offsets = [0, 64], sizes = [2, 32], strides = [1, 1]} : vector<2x128xf32> to vector<2x32xf32>
    %120 = math.tanh %119 : vector<2x32xf32>
    %121 = arith.mulf %117, %104 : vector<2x32xf32>
    %122 = arith.mulf %116, %120 : vector<2x32xf32>
    %123 = arith.addf %121, %122 : vector<2x32xf32>
    %124 = math.tanh %123 : vector<2x32xf32>
    %125 = arith.mulf %118, %124 : vector<2x32xf32>
    %c4_81 = arith.constant 4 : index
    %c0_82 = arith.constant 0 : index
    %126 = vector.load %arg10[%c4_81, %c0_82] : memref<16x32xf32, #tpu.memory_space<vmem>>, vector<2x32xf32>
    tpu.vector_store %arg10[%c4_81, %c0_82], %125 {strides = array<i32>} : memref<16x32xf32, #tpu.memory_space<vmem>>, vector<2x32xf32>,
    %127 = vector.extract_strided_slice %65 {offsets = [6, 0], sizes = [2, 128], strides = [1, 1]} : vector<16x128xf32> to vector<2x128xf32>
    %cst_83 = arith.constant dense<0.000000e+00> : vector<2x128xf32>
    %128 = tpu.matmul %125, %67, %cst_83 {dimension_numbers = #tpu.dot_dimension_numbers<[1], [0], [0], [1], [0, 0, 1, 1], [], []>} : vector<2x32xf32>, vector<32x128xf32>, vector<2x128xf32> -> vector<2x128xf32>
    %129 = arith.addf %127, %128 : vector<2x128xf32>
    %130 = arith.negf %129 : vector<2x128xf32>
    %131 = math.exp %130 : vector<2x128xf32>
    %cst_84 = arith.constant 1.000000e+00 : f32
    %132 = vector.broadcast %cst_84 : f32 to vector<2x128xf32>
    %133 = arith.addf %132, %131 : vector<2x128xf32>
    %134 = arith.divf %132, %133 : vector<2x128xf32>
    %135 = vector.extract_strided_slice %134 {offsets = [0, 0], sizes = [2, 32], strides = [1, 1]} : vector<2x128xf32> to vector<2x32xf32>
    %136 = vector.extract_strided_slice %134 {offsets = [0, 32], sizes = [2, 32], strides = [1, 1]} : vector<2x128xf32> to vector<2x32xf32>
    %137 = vector.extract_strided_slice %134 {offsets = [0, 96], sizes = [2, 32], strides = [1, 1]} : vector<2x128xf32> to vector<2x32xf32>
    %138 = vector.extract_strided_slice %129 {offsets = [0, 64], sizes = [2, 32], strides = [1, 1]} : vector<2x128xf32> to vector<2x32xf32>
    %139 = math.tanh %138 : vector<2x32xf32>
    %140 = arith.mulf %136, %123 : vector<2x32xf32>
    %141 = arith.mulf %135, %139 : vector<2x32xf32>
    %142 = arith.addf %140, %141 : vector<2x32xf32>
    %143 = math.tanh %142 : vector<2x32xf32>
    %144 = arith.mulf %137, %143 : vector<2x32xf32>
    %c6_85 = arith.constant 6 : index
    %c0_86 = arith.constant 0 : index
    %145 = vector.load %arg10[%c6_85, %c0_86] : memref<16x32xf32, #tpu.memory_space<vmem>>, vector<2x32xf32>
    tpu.vector_store %arg10[%c6_85, %c0_86], %144 {strides = array<i32>} : memref<16x32xf32, #tpu.memory_space<vmem>>, vector<2x32xf32>,
    %146 = vector.extract_strided_slice %65 {offsets = [8, 0], sizes = [2, 128], strides = [1, 1]} : vector<16x128xf32> to vector<2x128xf32>
    %cst_87 = arith.constant dense<0.000000e+00> : vector<2x128xf32>
    %147 = tpu.matmul %144, %67, %cst_87 {dimension_numbers = #tpu.dot_dimension_numbers<[1], [0], [0], [1], [0, 0, 1, 1], [], []>} : vector<2x32xf32>, vector<32x128xf32>, vector<2x128xf32> -> vector<2x128xf32>
    %148 = arith.addf %146, %147 : vector<2x128xf32>
    %149 = arith.negf %148 : vector<2x128xf32>
    %150 = math.exp %149 : vector<2x128xf32>
    %cst_88 = arith.constant 1.000000e+00 : f32
    %151 = vector.broadcast %cst_88 : f32 to vector<2x128xf32>
    %152 = arith.addf %151, %150 : vector<2x128xf32>
    %153 = arith.divf %151, %152 : vector<2x128xf32>
    %154 = vector.extract_strided_slice %153 {offsets = [0, 0], sizes = [2, 32], strides = [1, 1]} : vector<2x128xf32> to vector<2x32xf32>
    %155 = vector.extract_strided_slice %153 {offsets = [0, 32], sizes = [2, 32], strides = [1, 1]} : vector<2x128xf32> to vector<2x32xf32>
    %156 = vector.extract_strided_slice %153 {offsets = [0, 96], sizes = [2, 32], strides = [1, 1]} : vector<2x128xf32> to vector<2x32xf32>
    %157 = vector.extract_strided_slice %148 {offsets = [0, 64], sizes = [2, 32], strides = [1, 1]} : vector<2x128xf32> to vector<2x32xf32>
    %158 = math.tanh %157 : vector<2x32xf32>
    %159 = arith.mulf %155, %142 : vector<2x32xf32>
    %160 = arith.mulf %154, %158 : vector<2x32xf32>
    %161 = arith.addf %159, %160 : vector<2x32xf32>
    %162 = math.tanh %161 : vector<2x32xf32>
    %163 = arith.mulf %156, %162 : vector<2x32xf32>
    %c8_89 = arith.constant 8 : index
    %c0_90 = arith.constant 0 : index
    %164 = vector.load %arg10[%c8_89, %c0_90] : memref<16x32xf32, #tpu.memory_space<vmem>>, vector<2x32xf32>
    tpu.vector_store %arg10[%c8_89, %c0_90], %163 {strides = array<i32>} : memref<16x32xf32, #tpu.memory_space<vmem>>, vector<2x32xf32>,
    %165 = vector.extract_strided_slice %65 {offsets = [10, 0], sizes = [2, 128], strides = [1, 1]} : vector<16x128xf32> to vector<2x128xf32>
    %cst_91 = arith.constant dense<0.000000e+00> : vector<2x128xf32>
    %166 = tpu.matmul %163, %67, %cst_91 {dimension_numbers = #tpu.dot_dimension_numbers<[1], [0], [0], [1], [0, 0, 1, 1], [], []>} : vector<2x32xf32>, vector<32x128xf32>, vector<2x128xf32> -> vector<2x128xf32>
    %167 = arith.addf %165, %166 : vector<2x128xf32>
    %168 = arith.negf %167 : vector<2x128xf32>
    %169 = math.exp %168 : vector<2x128xf32>
    %cst_92 = arith.constant 1.000000e+00 : f32
    %170 = vector.broadcast %cst_92 : f32 to vector<2x128xf32>
    %171 = arith.addf %170, %169 : vector<2x128xf32>
    %172 = arith.divf %170, %171 : vector<2x128xf32>
    %173 = vector.extract_strided_slice %172 {offsets = [0, 0], sizes = [2, 32], strides = [1, 1]} : vector<2x128xf32> to vector<2x32xf32>
    %174 = vector.extract_strided_slice %172 {offsets = [0, 32], sizes = [2, 32], strides = [1, 1]} : vector<2x128xf32> to vector<2x32xf32>
    %175 = vector.extract_strided_slice %172 {offsets = [0, 96], sizes = [2, 32], strides = [1, 1]} : vector<2x128xf32> to vector<2x32xf32>
    %176 = vector.extract_strided_slice %167 {offsets = [0, 64], sizes = [2, 32], strides = [1, 1]} : vector<2x128xf32> to vector<2x32xf32>
    %177 = math.tanh %176 : vector<2x32xf32>
    %178 = arith.mulf %174, %161 : vector<2x32xf32>
    %179 = arith.mulf %173, %177 : vector<2x32xf32>
    %180 = arith.addf %178, %179 : vector<2x32xf32>
    %181 = math.tanh %180 : vector<2x32xf32>
    %182 = arith.mulf %175, %181 : vector<2x32xf32>
    %c10_93 = arith.constant 10 : index
    %c0_94 = arith.constant 0 : index
    %183 = vector.load %arg10[%c10_93, %c0_94] : memref<16x32xf32, #tpu.memory_space<vmem>>, vector<2x32xf32>
    tpu.vector_store %arg10[%c10_93, %c0_94], %182 {strides = array<i32>} : memref<16x32xf32, #tpu.memory_space<vmem>>, vector<2x32xf32>,
    %184 = vector.extract_strided_slice %65 {offsets = [12, 0], sizes = [2, 128], strides = [1, 1]} : vector<16x128xf32> to vector<2x128xf32>
    %cst_95 = arith.constant dense<0.000000e+00> : vector<2x128xf32>
    %185 = tpu.matmul %182, %67, %cst_95 {dimension_numbers = #tpu.dot_dimension_numbers<[1], [0], [0], [1], [0, 0, 1, 1], [], []>} : vector<2x32xf32>, vector<32x128xf32>, vector<2x128xf32> -> vector<2x128xf32>
    %186 = arith.addf %184, %185 : vector<2x128xf32>
    %187 = arith.negf %186 : vector<2x128xf32>
    %188 = math.exp %187 : vector<2x128xf32>
    %cst_96 = arith.constant 1.000000e+00 : f32
    %189 = vector.broadcast %cst_96 : f32 to vector<2x128xf32>
    %190 = arith.addf %189, %188 : vector<2x128xf32>
    %191 = arith.divf %189, %190 : vector<2x128xf32>
    %192 = vector.extract_strided_slice %191 {offsets = [0, 0], sizes = [2, 32], strides = [1, 1]} : vector<2x128xf32> to vector<2x32xf32>
    %193 = vector.extract_strided_slice %191 {offsets = [0, 32], sizes = [2, 32], strides = [1, 1]} : vector<2x128xf32> to vector<2x32xf32>
    %194 = vector.extract_strided_slice %191 {offsets = [0, 96], sizes = [2, 32], strides = [1, 1]} : vector<2x128xf32> to vector<2x32xf32>
    %195 = vector.extract_strided_slice %186 {offsets = [0, 64], sizes = [2, 32], strides = [1, 1]} : vector<2x128xf32> to vector<2x32xf32>
    %196 = math.tanh %195 : vector<2x32xf32>
    %197 = arith.mulf %193, %180 : vector<2x32xf32>
    %198 = arith.mulf %192, %196 : vector<2x32xf32>
    %199 = arith.addf %197, %198 : vector<2x32xf32>
    %200 = math.tanh %199 : vector<2x32xf32>
    %201 = arith.mulf %194, %200 : vector<2x32xf32>
    %c12_97 = arith.constant 12 : index
    %c0_98 = arith.constant 0 : index
    %202 = vector.load %arg10[%c12_97, %c0_98] : memref<16x32xf32, #tpu.memory_space<vmem>>, vector<2x32xf32>
    tpu.vector_store %arg10[%c12_97, %c0_98], %201 {strides = array<i32>} : memref<16x32xf32, #tpu.memory_space<vmem>>, vector<2x32xf32>,
    %203 = vector.extract_strided_slice %65 {offsets = [14, 0], sizes = [2, 128], strides = [1, 1]} : vector<16x128xf32> to vector<2x128xf32>
    %cst_99 = arith.constant dense<0.000000e+00> : vector<2x128xf32>
    %204 = tpu.matmul %201, %67, %cst_99 {dimension_numbers = #tpu.dot_dimension_numbers<[1], [0], [0], [1], [0, 0, 1, 1], [], []>} : vector<2x32xf32>, vector<32x128xf32>, vector<2x128xf32> -> vector<2x128xf32>
    %205 = arith.addf %203, %204 : vector<2x128xf32>
    %206 = arith.negf %205 : vector<2x128xf32>
    %207 = math.exp %206 : vector<2x128xf32>
    %cst_100 = arith.constant 1.000000e+00 : f32
    %208 = vector.broadcast %cst_100 : f32 to vector<2x128xf32>
    %209 = arith.addf %208, %207 : vector<2x128xf32>
    %210 = arith.divf %208, %209 : vector<2x128xf32>
    %211 = vector.extract_strided_slice %210 {offsets = [0, 0], sizes = [2, 32], strides = [1, 1]} : vector<2x128xf32> to vector<2x32xf32>
    %212 = vector.extract_strided_slice %210 {offsets = [0, 32], sizes = [2, 32], strides = [1, 1]} : vector<2x128xf32> to vector<2x32xf32>
    %213 = vector.extract_strided_slice %210 {offsets = [0, 96], sizes = [2, 32], strides = [1, 1]} : vector<2x128xf32> to vector<2x32xf32>
    %214 = vector.extract_strided_slice %205 {offsets = [0, 64], sizes = [2, 32], strides = [1, 1]} : vector<2x128xf32> to vector<2x32xf32>
    %215 = math.tanh %214 : vector<2x32xf32>
    %216 = arith.mulf %212, %199 : vector<2x32xf32>
    %217 = arith.mulf %211, %215 : vector<2x32xf32>
    %218 = arith.addf %216, %217 : vector<2x32xf32>
    %219 = math.tanh %218 : vector<2x32xf32>
    %220 = arith.mulf %213, %219 : vector<2x32xf32>
    %c14_101 = arith.constant 14 : index
    %c0_102 = arith.constant 0 : index
    %221 = vector.load %arg10[%c14_101, %c0_102] : memref<16x32xf32, #tpu.memory_space<vmem>>, vector<2x32xf32>
    tpu.vector_store %arg10[%c14_101, %c0_102], %220 {strides = array<i32>} : memref<16x32xf32, #tpu.memory_space<vmem>>, vector<2x32xf32>,
    %c0_103 = arith.constant 0 : index
    %c0_104 = arith.constant 0 : index
    %222 = vector.load %arg10[%c0_103, %c0_104] : memref<16x32xf32, #tpu.memory_space<vmem>>, vector<16x32xf32>
    %c1_105 = arith.constant 1 : index
    %c0_106 = arith.constant 0 : index
    %c0_107 = arith.constant 0 : index
    %223 = vector.load %arg3[%c1_105, %c0_106, %c0_107] : memref<3x32x128xf32, #tpu.memory_space<vmem>>, vector<1x32x128xf32>
    %224 = vector.shape_cast %223 : vector<1x32x128xf32> to vector<32x128xf32>
    %cst_108 = arith.constant dense<0.000000e+00> : vector<16x128xf32>
    %225 = tpu.matmul %222, %224, %cst_108 {dimension_numbers = #tpu.dot_dimension_numbers<[1], [0], [0], [1], [0, 0, 1, 1], [], []>} : vector<16x32xf32>, vector<32x128xf32>, vector<16x128xf32> -> vector<16x128xf32>
    %c1_109 = arith.constant 1 : index
    %c0_110 = arith.constant 0 : index
    %c0_111 = arith.constant 0 : index
    %226 = vector.load %arg5[%c1_109, %c0_110, %c0_111] : memref<3x1x128xf32, #tpu.memory_space<vmem>>, vector<1x1x128xf32>
    %227 = vector.shape_cast %226 : vector<1x1x128xf32> to vector<1x128xf32>
    %228 = vector.broadcast %227 : vector<1x128xf32> to vector<16x128xf32>
    %229 = arith.addf %225, %228 : vector<16x128xf32>
    %c1_112 = arith.constant 1 : index
    %c0_113 = arith.constant 0 : index
    %c0_114 = arith.constant 0 : index
    %230 = vector.load %arg4[%c1_112, %c0_113, %c0_114] : memref<3x32x128xf32, #tpu.memory_space<vmem>>, vector<1x32x128xf32>
    %231 = vector.shape_cast %230 : vector<1x32x128xf32> to vector<32x128xf32>
    %cst_115 = arith.constant 0.000000e+00 : f32
    %232 = vector.broadcast %cst_115 : f32 to vector<2x32xf32>
    %cst_116 = arith.constant 0.000000e+00 : f32
    %233 = vector.broadcast %cst_116 : f32 to vector<2x32xf32>
    %234 = vector.extract_strided_slice %229 {offsets = [0, 0], sizes = [2, 128], strides = [1, 1]} : vector<16x128xf32> to vector<2x128xf32>
    %cst_117 = arith.constant dense<0.000000e+00> : vector<2x128xf32>
    %235 = tpu.matmul %232, %231, %cst_117 {dimension_numbers = #tpu.dot_dimension_numbers<[1], [0], [0], [1], [0, 0, 1, 1], [], []>} : vector<2x32xf32>, vector<32x128xf32>, vector<2x128xf32> -> vector<2x128xf32>
    %236 = arith.addf %234, %235 : vector<2x128xf32>
    %237 = arith.negf %236 : vector<2x128xf32>
    %238 = math.exp %237 : vector<2x128xf32>
    %cst_118 = arith.constant 1.000000e+00 : f32
    %239 = vector.broadcast %cst_118 : f32 to vector<2x128xf32>
    %240 = arith.addf %239, %238 : vector<2x128xf32>
    %241 = arith.divf %239, %240 : vector<2x128xf32>
    %242 = vector.extract_strided_slice %241 {offsets = [0, 0], sizes = [2, 32], strides = [1, 1]} : vector<2x128xf32> to vector<2x32xf32>
    %243 = vector.extract_strided_slice %241 {offsets = [0, 32], sizes = [2, 32], strides = [1, 1]} : vector<2x128xf32> to vector<2x32xf32>
    %244 = vector.extract_strided_slice %241 {offsets = [0, 96], sizes = [2, 32], strides = [1, 1]} : vector<2x128xf32> to vector<2x32xf32>
    %245 = vector.extract_strided_slice %236 {offsets = [0, 64], sizes = [2, 32], strides = [1, 1]} : vector<2x128xf32> to vector<2x32xf32>
    %246 = math.tanh %245 : vector<2x32xf32>
    %247 = arith.mulf %243, %233 : vector<2x32xf32>
    %248 = arith.mulf %242, %246 : vector<2x32xf32>
    %249 = arith.addf %247, %248 : vector<2x32xf32>
    %250 = math.tanh %249 : vector<2x32xf32>
    %251 = arith.mulf %244, %250 : vector<2x32xf32>
    %c0_119 = arith.constant 0 : index
    %c0_120 = arith.constant 0 : index
    %252 = vector.load %arg11[%c0_119, %c0_120] : memref<16x32xf32, #tpu.memory_space<vmem>>, vector<2x32xf32>
    tpu.vector_store %arg11[%c0_119, %c0_120], %251 {strides = array<i32>} : memref<16x32xf32, #tpu.memory_space<vmem>>, vector<2x32xf32>,
    %253 = vector.extract_strided_slice %229 {offsets = [2, 0], sizes = [2, 128], strides = [1, 1]} : vector<16x128xf32> to vector<2x128xf32>
    %cst_121 = arith.constant dense<0.000000e+00> : vector<2x128xf32>
    %254 = tpu.matmul %251, %231, %cst_121 {dimension_numbers = #tpu.dot_dimension_numbers<[1], [0], [0], [1], [0, 0, 1, 1], [], []>} : vector<2x32xf32>, vector<32x128xf32>, vector<2x128xf32> -> vector<2x128xf32>
    %255 = arith.addf %253, %254 : vector<2x128xf32>
    %256 = arith.negf %255 : vector<2x128xf32>
    %257 = math.exp %256 : vector<2x128xf32>
    %cst_122 = arith.constant 1.000000e+00 : f32
    %258 = vector.broadcast %cst_122 : f32 to vector<2x128xf32>
    %259 = arith.addf %258, %257 : vector<2x128xf32>
    %260 = arith.divf %258, %259 : vector<2x128xf32>
    %261 = vector.extract_strided_slice %260 {offsets = [0, 0], sizes = [2, 32], strides = [1, 1]} : vector<2x128xf32> to vector<2x32xf32>
    %262 = vector.extract_strided_slice %260 {offsets = [0, 32], sizes = [2, 32], strides = [1, 1]} : vector<2x128xf32> to vector<2x32xf32>
    %263 = vector.extract_strided_slice %260 {offsets = [0, 96], sizes = [2, 32], strides = [1, 1]} : vector<2x128xf32> to vector<2x32xf32>
    %264 = vector.extract_strided_slice %255 {offsets = [0, 64], sizes = [2, 32], strides = [1, 1]} : vector<2x128xf32> to vector<2x32xf32>
    %265 = math.tanh %264 : vector<2x32xf32>
    %266 = arith.mulf %262, %249 : vector<2x32xf32>
    %267 = arith.mulf %261, %265 : vector<2x32xf32>
    %268 = arith.addf %266, %267 : vector<2x32xf32>
    %269 = math.tanh %268 : vector<2x32xf32>
    %270 = arith.mulf %263, %269 : vector<2x32xf32>
    %c2_123 = arith.constant 2 : index
    %c0_124 = arith.constant 0 : index
    %271 = vector.load %arg11[%c2_123, %c0_124] : memref<16x32xf32, #tpu.memory_space<vmem>>, vector<2x32xf32>
    tpu.vector_store %arg11[%c2_123, %c0_124], %270 {strides = array<i32>} : memref<16x32xf32, #tpu.memory_space<vmem>>, vector<2x32xf32>,
    %272 = vector.extract_strided_slice %229 {offsets = [4, 0], sizes = [2, 128], strides = [1, 1]} : vector<16x128xf32> to vector<2x128xf32>
    %cst_125 = arith.constant dense<0.000000e+00> : vector<2x128xf32>
    %273 = tpu.matmul %270, %231, %cst_125 {dimension_numbers = #tpu.dot_dimension_numbers<[1], [0], [0], [1], [0, 0, 1, 1], [], []>} : vector<2x32xf32>, vector<32x128xf32>, vector<2x128xf32> -> vector<2x128xf32>
    %274 = arith.addf %272, %273 : vector<2x128xf32>
    %275 = arith.negf %274 : vector<2x128xf32>
    %276 = math.exp %275 : vector<2x128xf32>
    %cst_126 = arith.constant 1.000000e+00 : f32
    %277 = vector.broadcast %cst_126 : f32 to vector<2x128xf32>
    %278 = arith.addf %277, %276 : vector<2x128xf32>
    %279 = arith.divf %277, %278 : vector<2x128xf32>
    %280 = vector.extract_strided_slice %279 {offsets = [0, 0], sizes = [2, 32], strides = [1, 1]} : vector<2x128xf32> to vector<2x32xf32>
    %281 = vector.extract_strided_slice %279 {offsets = [0, 32], sizes = [2, 32], strides = [1, 1]} : vector<2x128xf32> to vector<2x32xf32>
    %282 = vector.extract_strided_slice %279 {offsets = [0, 96], sizes = [2, 32], strides = [1, 1]} : vector<2x128xf32> to vector<2x32xf32>
    %283 = vector.extract_strided_slice %274 {offsets = [0, 64], sizes = [2, 32], strides = [1, 1]} : vector<2x128xf32> to vector<2x32xf32>
    %284 = math.tanh %283 : vector<2x32xf32>
    %285 = arith.mulf %281, %268 : vector<2x32xf32>
    %286 = arith.mulf %280, %284 : vector<2x32xf32>
    %287 = arith.addf %285, %286 : vector<2x32xf32>
    %288 = math.tanh %287 : vector<2x32xf32>
    %289 = arith.mulf %282, %288 : vector<2x32xf32>
    %c4_127 = arith.constant 4 : index
    %c0_128 = arith.constant 0 : index
    %290 = vector.load %arg11[%c4_127, %c0_128] : memref<16x32xf32, #tpu.memory_space<vmem>>, vector<2x32xf32>
    tpu.vector_store %arg11[%c4_127, %c0_128], %289 {strides = array<i32>} : memref<16x32xf32, #tpu.memory_space<vmem>>, vector<2x32xf32>,
    %291 = vector.extract_strided_slice %229 {offsets = [6, 0], sizes = [2, 128], strides = [1, 1]} : vector<16x128xf32> to vector<2x128xf32>
    %cst_129 = arith.constant dense<0.000000e+00> : vector<2x128xf32>
    %292 = tpu.matmul %289, %231, %cst_129 {dimension_numbers = #tpu.dot_dimension_numbers<[1], [0], [0], [1], [0, 0, 1, 1], [], []>} : vector<2x32xf32>, vector<32x128xf32>, vector<2x128xf32> -> vector<2x128xf32>
    %293 = arith.addf %291, %292 : vector<2x128xf32>
    %294 = arith.negf %293 : vector<2x128xf32>
    %295 = math.exp %294 : vector<2x128xf32>
    %cst_130 = arith.constant 1.000000e+00 : f32
    %296 = vector.broadcast %cst_130 : f32 to vector<2x128xf32>
    %297 = arith.addf %296, %295 : vector<2x128xf32>
    %298 = arith.divf %296, %297 : vector<2x128xf32>
    %299 = vector.extract_strided_slice %298 {offsets = [0, 0], sizes = [2, 32], strides = [1, 1]} : vector<2x128xf32> to vector<2x32xf32>
    %300 = vector.extract_strided_slice %298 {offsets = [0, 32], sizes = [2, 32], strides = [1, 1]} : vector<2x128xf32> to vector<2x32xf32>
    %301 = vector.extract_strided_slice %298 {offsets = [0, 96], sizes = [2, 32], strides = [1, 1]} : vector<2x128xf32> to vector<2x32xf32>
    %302 = vector.extract_strided_slice %293 {offsets = [0, 64], sizes = [2, 32], strides = [1, 1]} : vector<2x128xf32> to vector<2x32xf32>
    %303 = math.tanh %302 : vector<2x32xf32>
    %304 = arith.mulf %300, %287 : vector<2x32xf32>
    %305 = arith.mulf %299, %303 : vector<2x32xf32>
    %306 = arith.addf %304, %305 : vector<2x32xf32>
    %307 = math.tanh %306 : vector<2x32xf32>
    %308 = arith.mulf %301, %307 : vector<2x32xf32>
    %c6_131 = arith.constant 6 : index
    %c0_132 = arith.constant 0 : index
    %309 = vector.load %arg11[%c6_131, %c0_132] : memref<16x32xf32, #tpu.memory_space<vmem>>, vector<2x32xf32>
    tpu.vector_store %arg11[%c6_131, %c0_132], %308 {strides = array<i32>} : memref<16x32xf32, #tpu.memory_space<vmem>>, vector<2x32xf32>,
    %310 = vector.extract_strided_slice %229 {offsets = [8, 0], sizes = [2, 128], strides = [1, 1]} : vector<16x128xf32> to vector<2x128xf32>
    %cst_133 = arith.constant dense<0.000000e+00> : vector<2x128xf32>
    %311 = tpu.matmul %308, %231, %cst_133 {dimension_numbers = #tpu.dot_dimension_numbers<[1], [0], [0], [1], [0, 0, 1, 1], [], []>} : vector<2x32xf32>, vector<32x128xf32>, vector<2x128xf32> -> vector<2x128xf32>
    %312 = arith.addf %310, %311 : vector<2x128xf32>
    %313 = arith.negf %312 : vector<2x128xf32>
    %314 = math.exp %313 : vector<2x128xf32>
    %cst_134 = arith.constant 1.000000e+00 : f32
    %315 = vector.broadcast %cst_134 : f32 to vector<2x128xf32>
    %316 = arith.addf %315, %314 : vector<2x128xf32>
    %317 = arith.divf %315, %316 : vector<2x128xf32>
    %318 = vector.extract_strided_slice %317 {offsets = [0, 0], sizes = [2, 32], strides = [1, 1]} : vector<2x128xf32> to vector<2x32xf32>
    %319 = vector.extract_strided_slice %317 {offsets = [0, 32], sizes = [2, 32], strides = [1, 1]} : vector<2x128xf32> to vector<2x32xf32>
    %320 = vector.extract_strided_slice %317 {offsets = [0, 96], sizes = [2, 32], strides = [1, 1]} : vector<2x128xf32> to vector<2x32xf32>
    %321 = vector.extract_strided_slice %312 {offsets = [0, 64], sizes = [2, 32], strides = [1, 1]} : vector<2x128xf32> to vector<2x32xf32>
    %322 = math.tanh %321 : vector<2x32xf32>
    %323 = arith.mulf %319, %306 : vector<2x32xf32>
    %324 = arith.mulf %318, %322 : vector<2x32xf32>
    %325 = arith.addf %323, %324 : vector<2x32xf32>
    %326 = math.tanh %325 : vector<2x32xf32>
    %327 = arith.mulf %320, %326 : vector<2x32xf32>
    %c8_135 = arith.constant 8 : index
    %c0_136 = arith.constant 0 : index
    %328 = vector.load %arg11[%c8_135, %c0_136] : memref<16x32xf32, #tpu.memory_space<vmem>>, vector<2x32xf32>
    tpu.vector_store %arg11[%c8_135, %c0_136], %327 {strides = array<i32>} : memref<16x32xf32, #tpu.memory_space<vmem>>, vector<2x32xf32>,
    %329 = vector.extract_strided_slice %229 {offsets = [10, 0], sizes = [2, 128], strides = [1, 1]} : vector<16x128xf32> to vector<2x128xf32>
    %cst_137 = arith.constant dense<0.000000e+00> : vector<2x128xf32>
    %330 = tpu.matmul %327, %231, %cst_137 {dimension_numbers = #tpu.dot_dimension_numbers<[1], [0], [0], [1], [0, 0, 1, 1], [], []>} : vector<2x32xf32>, vector<32x128xf32>, vector<2x128xf32> -> vector<2x128xf32>
    %331 = arith.addf %329, %330 : vector<2x128xf32>
    %332 = arith.negf %331 : vector<2x128xf32>
    %333 = math.exp %332 : vector<2x128xf32>
    %cst_138 = arith.constant 1.000000e+00 : f32
    %334 = vector.broadcast %cst_138 : f32 to vector<2x128xf32>
    %335 = arith.addf %334, %333 : vector<2x128xf32>
    %336 = arith.divf %334, %335 : vector<2x128xf32>
    %337 = vector.extract_strided_slice %336 {offsets = [0, 0], sizes = [2, 32], strides = [1, 1]} : vector<2x128xf32> to vector<2x32xf32>
    %338 = vector.extract_strided_slice %336 {offsets = [0, 32], sizes = [2, 32], strides = [1, 1]} : vector<2x128xf32> to vector<2x32xf32>
    %339 = vector.extract_strided_slice %336 {offsets = [0, 96], sizes = [2, 32], strides = [1, 1]} : vector<2x128xf32> to vector<2x32xf32>
    %340 = vector.extract_strided_slice %331 {offsets = [0, 64], sizes = [2, 32], strides = [1, 1]} : vector<2x128xf32> to vector<2x32xf32>
    %341 = math.tanh %340 : vector<2x32xf32>
    %342 = arith.mulf %338, %325 : vector<2x32xf32>
    %343 = arith.mulf %337, %341 : vector<2x32xf32>
    %344 = arith.addf %342, %343 : vector<2x32xf32>
    %345 = math.tanh %344 : vector<2x32xf32>
    %346 = arith.mulf %339, %345 : vector<2x32xf32>
    %c10_139 = arith.constant 10 : index
    %c0_140 = arith.constant 0 : index
    %347 = vector.load %arg11[%c10_139, %c0_140] : memref<16x32xf32, #tpu.memory_space<vmem>>, vector<2x32xf32>
    tpu.vector_store %arg11[%c10_139, %c0_140], %346 {strides = array<i32>} : memref<16x32xf32, #tpu.memory_space<vmem>>, vector<2x32xf32>,
    %348 = vector.extract_strided_slice %229 {offsets = [12, 0], sizes = [2, 128], strides = [1, 1]} : vector<16x128xf32> to vector<2x128xf32>
    %cst_141 = arith.constant dense<0.000000e+00> : vector<2x128xf32>
    %349 = tpu.matmul %346, %231, %cst_141 {dimension_numbers = #tpu.dot_dimension_numbers<[1], [0], [0], [1], [0, 0, 1, 1], [], []>} : vector<2x32xf32>, vector<32x128xf32>, vector<2x128xf32> -> vector<2x128xf32>
    %350 = arith.addf %348, %349 : vector<2x128xf32>
    %351 = arith.negf %350 : vector<2x128xf32>
    %352 = math.exp %351 : vector<2x128xf32>
    %cst_142 = arith.constant 1.000000e+00 : f32
    %353 = vector.broadcast %cst_142 : f32 to vector<2x128xf32>
    %354 = arith.addf %353, %352 : vector<2x128xf32>
    %355 = arith.divf %353, %354 : vector<2x128xf32>
    %356 = vector.extract_strided_slice %355 {offsets = [0, 0], sizes = [2, 32], strides = [1, 1]} : vector<2x128xf32> to vector<2x32xf32>
    %357 = vector.extract_strided_slice %355 {offsets = [0, 32], sizes = [2, 32], strides = [1, 1]} : vector<2x128xf32> to vector<2x32xf32>
    %358 = vector.extract_strided_slice %355 {offsets = [0, 96], sizes = [2, 32], strides = [1, 1]} : vector<2x128xf32> to vector<2x32xf32>
    %359 = vector.extract_strided_slice %350 {offsets = [0, 64], sizes = [2, 32], strides = [1, 1]} : vector<2x128xf32> to vector<2x32xf32>
    %360 = math.tanh %359 : vector<2x32xf32>
    %361 = arith.mulf %357, %344 : vector<2x32xf32>
    %362 = arith.mulf %356, %360 : vector<2x32xf32>
    %363 = arith.addf %361, %362 : vector<2x32xf32>
    %364 = math.tanh %363 : vector<2x32xf32>
    %365 = arith.mulf %358, %364 : vector<2x32xf32>
    %c12_143 = arith.constant 12 : index
    %c0_144 = arith.constant 0 : index
    %366 = vector.load %arg11[%c12_143, %c0_144] : memref<16x32xf32, #tpu.memory_space<vmem>>, vector<2x32xf32>
    tpu.vector_store %arg11[%c12_143, %c0_144], %365 {strides = array<i32>} : memref<16x32xf32, #tpu.memory_space<vmem>>, vector<2x32xf32>,
    %367 = vector.extract_strided_slice %229 {offsets = [14, 0], sizes = [2, 128], strides = [1, 1]} : vector<16x128xf32> to vector<2x128xf32>
    %cst_145 = arith.constant dense<0.000000e+00> : vector<2x128xf32>
    %368 = tpu.matmul %365, %231, %cst_145 {dimension_numbers = #tpu.dot_dimension_numbers<[1], [0], [0], [1], [0, 0, 1, 1], [], []>} : vector<2x32xf32>, vector<32x128xf32>, vector<2x128xf32> -> vector<2x128xf32>
    %369 = arith.addf %367, %368 : vector<2x128xf32>
    %370 = arith.negf %369 : vector<2x128xf32>
    %371 = math.exp %370 : vector<2x128xf32>
    %cst_146 = arith.constant 1.000000e+00 : f32
    %372 = vector.broadcast %cst_146 : f32 to vector<2x128xf32>
    %373 = arith.addf %372, %371 : vector<2x128xf32>
    %374 = arith.divf %372, %373 : vector<2x128xf32>
    %375 = vector.extract_strided_slice %374 {offsets = [0, 0], sizes = [2, 32], strides = [1, 1]} : vector<2x128xf32> to vector<2x32xf32>
    %376 = vector.extract_strided_slice %374 {offsets = [0, 32], sizes = [2, 32], strides = [1, 1]} : vector<2x128xf32> to vector<2x32xf32>
    %377 = vector.extract_strided_slice %374 {offsets = [0, 96], sizes = [2, 32], strides = [1, 1]} : vector<2x128xf32> to vector<2x32xf32>
    %378 = vector.extract_strided_slice %369 {offsets = [0, 64], sizes = [2, 32], strides = [1, 1]} : vector<2x128xf32> to vector<2x32xf32>
    %379 = math.tanh %378 : vector<2x32xf32>
    %380 = arith.mulf %376, %363 : vector<2x32xf32>
    %381 = arith.mulf %375, %379 : vector<2x32xf32>
    %382 = arith.addf %380, %381 : vector<2x32xf32>
    %383 = math.tanh %382 : vector<2x32xf32>
    %384 = arith.mulf %377, %383 : vector<2x32xf32>
    %c14_147 = arith.constant 14 : index
    %c0_148 = arith.constant 0 : index
    %385 = vector.load %arg11[%c14_147, %c0_148] : memref<16x32xf32, #tpu.memory_space<vmem>>, vector<2x32xf32>
    tpu.vector_store %arg11[%c14_147, %c0_148], %384 {strides = array<i32>} : memref<16x32xf32, #tpu.memory_space<vmem>>, vector<2x32xf32>,
    %c0_149 = arith.constant 0 : index
    %c0_150 = arith.constant 0 : index
    %386 = vector.load %arg11[%c0_149, %c0_150] : memref<16x32xf32, #tpu.memory_space<vmem>>, vector<16x32xf32>
    %c2_151 = arith.constant 2 : index
    %c0_152 = arith.constant 0 : index
    %c0_153 = arith.constant 0 : index
    %387 = vector.load %arg3[%c2_151, %c0_152, %c0_153] : memref<3x32x128xf32, #tpu.memory_space<vmem>>, vector<1x32x128xf32>
    %388 = vector.shape_cast %387 : vector<1x32x128xf32> to vector<32x128xf32>
    %cst_154 = arith.constant dense<0.000000e+00> : vector<16x128xf32>
    %389 = tpu.matmul %386, %388, %cst_154 {dimension_numbers = #tpu.dot_dimension_numbers<[1], [0], [0], [1], [0, 0, 1, 1], [], []>} : vector<16x32xf32>, vector<32x128xf32>, vector<16x128xf32> -> vector<16x128xf32>
    %c2_155 = arith.constant 2 : index
    %c0_156 = arith.constant 0 : index
    %c0_157 = arith.constant 0 : index
    %390 = vector.load %arg5[%c2_155, %c0_156, %c0_157] : memref<3x1x128xf32, #tpu.memory_space<vmem>>, vector<1x1x128xf32>
    %391 = vector.shape_cast %390 : vector<1x1x128xf32> to vector<1x128xf32>
    %392 = vector.broadcast %391 : vector<1x128xf32> to vector<16x128xf32>
    %393 = arith.addf %389, %392 : vector<16x128xf32>
    %c2_158 = arith.constant 2 : index
    %c0_159 = arith.constant 0 : index
    %c0_160 = arith.constant 0 : index
    %394 = vector.load %arg4[%c2_158, %c0_159, %c0_160] : memref<3x32x128xf32, #tpu.memory_space<vmem>>, vector<1x32x128xf32>
    %395 = vector.shape_cast %394 : vector<1x32x128xf32> to vector<32x128xf32>
    %cst_161 = arith.constant 0.000000e+00 : f32
    %396 = vector.broadcast %cst_161 : f32 to vector<2x32xf32>
    %cst_162 = arith.constant 0.000000e+00 : f32
    %397 = vector.broadcast %cst_162 : f32 to vector<2x32xf32>
    %398 = vector.extract_strided_slice %393 {offsets = [0, 0], sizes = [2, 128], strides = [1, 1]} : vector<16x128xf32> to vector<2x128xf32>
    %cst_163 = arith.constant dense<0.000000e+00> : vector<2x128xf32>
    %399 = tpu.matmul %396, %395, %cst_163 {dimension_numbers = #tpu.dot_dimension_numbers<[1], [0], [0], [1], [0, 0, 1, 1], [], []>} : vector<2x32xf32>, vector<32x128xf32>, vector<2x128xf32> -> vector<2x128xf32>
    %400 = arith.addf %398, %399 : vector<2x128xf32>
    %401 = arith.negf %400 : vector<2x128xf32>
    %402 = math.exp %401 : vector<2x128xf32>
    %cst_164 = arith.constant 1.000000e+00 : f32
    %403 = vector.broadcast %cst_164 : f32 to vector<2x128xf32>
    %404 = arith.addf %403, %402 : vector<2x128xf32>
    %405 = arith.divf %403, %404 : vector<2x128xf32>
    %406 = vector.extract_strided_slice %405 {offsets = [0, 0], sizes = [2, 32], strides = [1, 1]} : vector<2x128xf32> to vector<2x32xf32>
    %407 = vector.extract_strided_slice %405 {offsets = [0, 32], sizes = [2, 32], strides = [1, 1]} : vector<2x128xf32> to vector<2x32xf32>
    %408 = vector.extract_strided_slice %405 {offsets = [0, 96], sizes = [2, 32], strides = [1, 1]} : vector<2x128xf32> to vector<2x32xf32>
    %409 = vector.extract_strided_slice %400 {offsets = [0, 64], sizes = [2, 32], strides = [1, 1]} : vector<2x128xf32> to vector<2x32xf32>
    %410 = math.tanh %409 : vector<2x32xf32>
    %411 = arith.mulf %407, %397 : vector<2x32xf32>
    %412 = arith.mulf %406, %410 : vector<2x32xf32>
    %413 = arith.addf %411, %412 : vector<2x32xf32>
    %414 = math.tanh %413 : vector<2x32xf32>
    %415 = arith.mulf %408, %414 : vector<2x32xf32>
    %416 = vector.extract_strided_slice %415 {offsets = [0, 0], sizes = [1, 32], strides = [1, 1]} : vector<2x32xf32> to vector<1x32xf32>
    %c0_165 = arith.constant 0 : index
    %c0_166 = arith.constant 0 : index
    %417 = vector.load %arg12[%c0_165, %c0_166] : memref<16x32xf32, #tpu.memory_space<vmem>>, vector<1x32xf32>
    tpu.vector_store %arg12[%c0_165, %c0_166], %416 {strides = array<i32>} : memref<16x32xf32, #tpu.memory_space<vmem>>, vector<1x32xf32>,
    %418 = vector.extract_strided_slice %415 {offsets = [1, 0], sizes = [1, 32], strides = [1, 1]} : vector<2x32xf32> to vector<1x32xf32>
    %c8_167 = arith.constant 8 : index
    %c0_168 = arith.constant 0 : index
    %419 = vector.load %arg12[%c8_167, %c0_168] : memref<16x32xf32, #tpu.memory_space<vmem>>, vector<1x32xf32>
    tpu.vector_store %arg12[%c8_167, %c0_168], %418 {strides = array<i32>} : memref<16x32xf32, #tpu.memory_space<vmem>>, vector<1x32xf32>,
    %420 = vector.extract_strided_slice %393 {offsets = [2, 0], sizes = [2, 128], strides = [1, 1]} : vector<16x128xf32> to vector<2x128xf32>
    %cst_169 = arith.constant dense<0.000000e+00> : vector<2x128xf32>
    %421 = tpu.matmul %415, %395, %cst_169 {dimension_numbers = #tpu.dot_dimension_numbers<[1], [0], [0], [1], [0, 0, 1, 1], [], []>} : vector<2x32xf32>, vector<32x128xf32>, vector<2x128xf32> -> vector<2x128xf32>
    %422 = arith.addf %420, %421 : vector<2x128xf32>
    %423 = arith.negf %422 : vector<2x128xf32>
    %424 = math.exp %423 : vector<2x128xf32>
    %cst_170 = arith.constant 1.000000e+00 : f32
    %425 = vector.broadcast %cst_170 : f32 to vector<2x128xf32>
    %426 = arith.addf %425, %424 : vector<2x128xf32>
    %427 = arith.divf %425, %426 : vector<2x128xf32>
    %428 = vector.extract_strided_slice %427 {offsets = [0, 0], sizes = [2, 32], strides = [1, 1]} : vector<2x128xf32> to vector<2x32xf32>
    %429 = vector.extract_strided_slice %427 {offsets = [0, 32], sizes = [2, 32], strides = [1, 1]} : vector<2x128xf32> to vector<2x32xf32>
    %430 = vector.extract_strided_slice %427 {offsets = [0, 96], sizes = [2, 32], strides = [1, 1]} : vector<2x128xf32> to vector<2x32xf32>
    %431 = vector.extract_strided_slice %422 {offsets = [0, 64], sizes = [2, 32], strides = [1, 1]} : vector<2x128xf32> to vector<2x32xf32>
    %432 = math.tanh %431 : vector<2x32xf32>
    %433 = arith.mulf %429, %413 : vector<2x32xf32>
    %434 = arith.mulf %428, %432 : vector<2x32xf32>
    %435 = arith.addf %433, %434 : vector<2x32xf32>
    %436 = math.tanh %435 : vector<2x32xf32>
    %437 = arith.mulf %430, %436 : vector<2x32xf32>
    %438 = vector.extract_strided_slice %437 {offsets = [0, 0], sizes = [1, 32], strides = [1, 1]} : vector<2x32xf32> to vector<1x32xf32>
    %c1_171 = arith.constant 1 : index
    %c0_172 = arith.constant 0 : index
    %439 = vector.load %arg12[%c1_171, %c0_172] : memref<16x32xf32, #tpu.memory_space<vmem>>, vector<1x32xf32>
    tpu.vector_store %arg12[%c1_171, %c0_172], %438 {strides = array<i32>} : memref<16x32xf32, #tpu.memory_space<vmem>>, vector<1x32xf32>,
    %440 = vector.extract_strided_slice %437 {offsets = [1, 0], sizes = [1, 32], strides = [1, 1]} : vector<2x32xf32> to vector<1x32xf32>
    %c9_173 = arith.constant 9 : index
    %c0_174 = arith.constant 0 : index
    %441 = vector.load %arg12[%c9_173, %c0_174] : memref<16x32xf32, #tpu.memory_space<vmem>>, vector<1x32xf32>
    tpu.vector_store %arg12[%c9_173, %c0_174], %440 {strides = array<i32>} : memref<16x32xf32, #tpu.memory_space<vmem>>, vector<1x32xf32>,
    %442 = vector.extract_strided_slice %393 {offsets = [4, 0], sizes = [2, 128], strides = [1, 1]} : vector<16x128xf32> to vector<2x128xf32>
    %cst_175 = arith.constant dense<0.000000e+00> : vector<2x128xf32>
    %443 = tpu.matmul %437, %395, %cst_175 {dimension_numbers = #tpu.dot_dimension_numbers<[1], [0], [0], [1], [0, 0, 1, 1], [], []>} : vector<2x32xf32>, vector<32x128xf32>, vector<2x128xf32> -> vector<2x128xf32>
    %444 = arith.addf %442, %443 : vector<2x128xf32>
    %445 = arith.negf %444 : vector<2x128xf32>
    %446 = math.exp %445 : vector<2x128xf32>
    %cst_176 = arith.constant 1.000000e+00 : f32
    %447 = vector.broadcast %cst_176 : f32 to vector<2x128xf32>
    %448 = arith.addf %447, %446 : vector<2x128xf32>
    %449 = arith.divf %447, %448 : vector<2x128xf32>
    %450 = vector.extract_strided_slice %449 {offsets = [0, 0], sizes = [2, 32], strides = [1, 1]} : vector<2x128xf32> to vector<2x32xf32>
    %451 = vector.extract_strided_slice %449 {offsets = [0, 32], sizes = [2, 32], strides = [1, 1]} : vector<2x128xf32> to vector<2x32xf32>
    %452 = vector.extract_strided_slice %449 {offsets = [0, 96], sizes = [2, 32], strides = [1, 1]} : vector<2x128xf32> to vector<2x32xf32>
    %453 = vector.extract_strided_slice %444 {offsets = [0, 64], sizes = [2, 32], strides = [1, 1]} : vector<2x128xf32> to vector<2x32xf32>
    %454 = math.tanh %453 : vector<2x32xf32>
    %455 = arith.mulf %451, %435 : vector<2x32xf32>
    %456 = arith.mulf %450, %454 : vector<2x32xf32>
    %457 = arith.addf %455, %456 : vector<2x32xf32>
    %458 = math.tanh %457 : vector<2x32xf32>
    %459 = arith.mulf %452, %458 : vector<2x32xf32>
    %460 = vector.extract_strided_slice %459 {offsets = [0, 0], sizes = [1, 32], strides = [1, 1]} : vector<2x32xf32> to vector<1x32xf32>
    %c2_177 = arith.constant 2 : index
    %c0_178 = arith.constant 0 : index
    %461 = vector.load %arg12[%c2_177, %c0_178] : memref<16x32xf32, #tpu.memory_space<vmem>>, vector<1x32xf32>
    tpu.vector_store %arg12[%c2_177, %c0_178], %460 {strides = array<i32>} : memref<16x32xf32, #tpu.memory_space<vmem>>, vector<1x32xf32>,
    %462 = vector.extract_strided_slice %459 {offsets = [1, 0], sizes = [1, 32], strides = [1, 1]} : vector<2x32xf32> to vector<1x32xf32>
    %c10_179 = arith.constant 10 : index
    %c0_180 = arith.constant 0 : index
    %463 = vector.load %arg12[%c10_179, %c0_180] : memref<16x32xf32, #tpu.memory_space<vmem>>, vector<1x32xf32>
    tpu.vector_store %arg12[%c10_179, %c0_180], %462 {strides = array<i32>} : memref<16x32xf32, #tpu.memory_space<vmem>>, vector<1x32xf32>,
    %464 = vector.extract_strided_slice %393 {offsets = [6, 0], sizes = [2, 128], strides = [1, 1]} : vector<16x128xf32> to vector<2x128xf32>
    %cst_181 = arith.constant dense<0.000000e+00> : vector<2x128xf32>
    %465 = tpu.matmul %459, %395, %cst_181 {dimension_numbers = #tpu.dot_dimension_numbers<[1], [0], [0], [1], [0, 0, 1, 1], [], []>} : vector<2x32xf32>, vector<32x128xf32>, vector<2x128xf32> -> vector<2x128xf32>
    %466 = arith.addf %464, %465 : vector<2x128xf32>
    %467 = arith.negf %466 : vector<2x128xf32>
    %468 = math.exp %467 : vector<2x128xf32>
    %cst_182 = arith.constant 1.000000e+00 : f32
    %469 = vector.broadcast %cst_182 : f32 to vector<2x128xf32>
    %470 = arith.addf %469, %468 : vector<2x128xf32>
    %471 = arith.divf %469, %470 : vector<2x128xf32>
    %472 = vector.extract_strided_slice %471 {offsets = [0, 0], sizes = [2, 32], strides = [1, 1]} : vector<2x128xf32> to vector<2x32xf32>
    %473 = vector.extract_strided_slice %471 {offsets = [0, 32], sizes = [2, 32], strides = [1, 1]} : vector<2x128xf32> to vector<2x32xf32>
    %474 = vector.extract_strided_slice %471 {offsets = [0, 96], sizes = [2, 32], strides = [1, 1]} : vector<2x128xf32> to vector<2x32xf32>
    %475 = vector.extract_strided_slice %466 {offsets = [0, 64], sizes = [2, 32], strides = [1, 1]} : vector<2x128xf32> to vector<2x32xf32>
    %476 = math.tanh %475 : vector<2x32xf32>
    %477 = arith.mulf %473, %457 : vector<2x32xf32>
    %478 = arith.mulf %472, %476 : vector<2x32xf32>
    %479 = arith.addf %477, %478 : vector<2x32xf32>
    %480 = math.tanh %479 : vector<2x32xf32>
    %481 = arith.mulf %474, %480 : vector<2x32xf32>
    %482 = vector.extract_strided_slice %481 {offsets = [0, 0], sizes = [1, 32], strides = [1, 1]} : vector<2x32xf32> to vector<1x32xf32>
    %c3_183 = arith.constant 3 : index
    %c0_184 = arith.constant 0 : index
    %483 = vector.load %arg12[%c3_183, %c0_184] : memref<16x32xf32, #tpu.memory_space<vmem>>, vector<1x32xf32>
    tpu.vector_store %arg12[%c3_183, %c0_184], %482 {strides = array<i32>} : memref<16x32xf32, #tpu.memory_space<vmem>>, vector<1x32xf32>,
    %484 = vector.extract_strided_slice %481 {offsets = [1, 0], sizes = [1, 32], strides = [1, 1]} : vector<2x32xf32> to vector<1x32xf32>
    %c11_185 = arith.constant 11 : index
    %c0_186 = arith.constant 0 : index
    %485 = vector.load %arg12[%c11_185, %c0_186] : memref<16x32xf32, #tpu.memory_space<vmem>>, vector<1x32xf32>
    tpu.vector_store %arg12[%c11_185, %c0_186], %484 {strides = array<i32>} : memref<16x32xf32, #tpu.memory_space<vmem>>, vector<1x32xf32>,
    %486 = vector.extract_strided_slice %393 {offsets = [8, 0], sizes = [2, 128], strides = [1, 1]} : vector<16x128xf32> to vector<2x128xf32>
    %cst_187 = arith.constant dense<0.000000e+00> : vector<2x128xf32>
    %487 = tpu.matmul %481, %395, %cst_187 {dimension_numbers = #tpu.dot_dimension_numbers<[1], [0], [0], [1], [0, 0, 1, 1], [], []>} : vector<2x32xf32>, vector<32x128xf32>, vector<2x128xf32> -> vector<2x128xf32>
    %488 = arith.addf %486, %487 : vector<2x128xf32>
    %489 = arith.negf %488 : vector<2x128xf32>
    %490 = math.exp %489 : vector<2x128xf32>
    %cst_188 = arith.constant 1.000000e+00 : f32
    %491 = vector.broadcast %cst_188 : f32 to vector<2x128xf32>
    %492 = arith.addf %491, %490 : vector<2x128xf32>
    %493 = arith.divf %491, %492 : vector<2x128xf32>
    %494 = vector.extract_strided_slice %493 {offsets = [0, 0], sizes = [2, 32], strides = [1, 1]} : vector<2x128xf32> to vector<2x32xf32>
    %495 = vector.extract_strided_slice %493 {offsets = [0, 32], sizes = [2, 32], strides = [1, 1]} : vector<2x128xf32> to vector<2x32xf32>
    %496 = vector.extract_strided_slice %493 {offsets = [0, 96], sizes = [2, 32], strides = [1, 1]} : vector<2x128xf32> to vector<2x32xf32>
    %497 = vector.extract_strided_slice %488 {offsets = [0, 64], sizes = [2, 32], strides = [1, 1]} : vector<2x128xf32> to vector<2x32xf32>
    %498 = math.tanh %497 : vector<2x32xf32>
    %499 = arith.mulf %495, %479 : vector<2x32xf32>
    %500 = arith.mulf %494, %498 : vector<2x32xf32>
    %501 = arith.addf %499, %500 : vector<2x32xf32>
    %502 = math.tanh %501 : vector<2x32xf32>
    %503 = arith.mulf %496, %502 : vector<2x32xf32>
    %504 = vector.extract_strided_slice %503 {offsets = [0, 0], sizes = [1, 32], strides = [1, 1]} : vector<2x32xf32> to vector<1x32xf32>
    %c4_189 = arith.constant 4 : index
    %c0_190 = arith.constant 0 : index
    %505 = vector.load %arg12[%c4_189, %c0_190] : memref<16x32xf32, #tpu.memory_space<vmem>>, vector<1x32xf32>
    tpu.vector_store %arg12[%c4_189, %c0_190], %504 {strides = array<i32>} : memref<16x32xf32, #tpu.memory_space<vmem>>, vector<1x32xf32>,
    %506 = vector.extract_strided_slice %503 {offsets = [1, 0], sizes = [1, 32], strides = [1, 1]} : vector<2x32xf32> to vector<1x32xf32>
    %c12_191 = arith.constant 12 : index
    %c0_192 = arith.constant 0 : index
    %507 = vector.load %arg12[%c12_191, %c0_192] : memref<16x32xf32, #tpu.memory_space<vmem>>, vector<1x32xf32>
    tpu.vector_store %arg12[%c12_191, %c0_192], %506 {strides = array<i32>} : memref<16x32xf32, #tpu.memory_space<vmem>>, vector<1x32xf32>,
    %508 = vector.extract_strided_slice %393 {offsets = [10, 0], sizes = [2, 128], strides = [1, 1]} : vector<16x128xf32> to vector<2x128xf32>
    %cst_193 = arith.constant dense<0.000000e+00> : vector<2x128xf32>
    %509 = tpu.matmul %503, %395, %cst_193 {dimension_numbers = #tpu.dot_dimension_numbers<[1], [0], [0], [1], [0, 0, 1, 1], [], []>} : vector<2x32xf32>, vector<32x128xf32>, vector<2x128xf32> -> vector<2x128xf32>
    %510 = arith.addf %508, %509 : vector<2x128xf32>
    %511 = arith.negf %510 : vector<2x128xf32>
    %512 = math.exp %511 : vector<2x128xf32>
    %cst_194 = arith.constant 1.000000e+00 : f32
    %513 = vector.broadcast %cst_194 : f32 to vector<2x128xf32>
    %514 = arith.addf %513, %512 : vector<2x128xf32>
    %515 = arith.divf %513, %514 : vector<2x128xf32>
    %516 = vector.extract_strided_slice %515 {offsets = [0, 0], sizes = [2, 32], strides = [1, 1]} : vector<2x128xf32> to vector<2x32xf32>
    %517 = vector.extract_strided_slice %515 {offsets = [0, 32], sizes = [2, 32], strides = [1, 1]} : vector<2x128xf32> to vector<2x32xf32>
    %518 = vector.extract_strided_slice %515 {offsets = [0, 96], sizes = [2, 32], strides = [1, 1]} : vector<2x128xf32> to vector<2x32xf32>
    %519 = vector.extract_strided_slice %510 {offsets = [0, 64], sizes = [2, 32], strides = [1, 1]} : vector<2x128xf32> to vector<2x32xf32>
    %520 = math.tanh %519 : vector<2x32xf32>
    %521 = arith.mulf %517, %501 : vector<2x32xf32>
    %522 = arith.mulf %516, %520 : vector<2x32xf32>
    %523 = arith.addf %521, %522 : vector<2x32xf32>
    %524 = math.tanh %523 : vector<2x32xf32>
    %525 = arith.mulf %518, %524 : vector<2x32xf32>
    %526 = vector.extract_strided_slice %525 {offsets = [0, 0], sizes = [1, 32], strides = [1, 1]} : vector<2x32xf32> to vector<1x32xf32>
    %c5_195 = arith.constant 5 : index
    %c0_196 = arith.constant 0 : index
    %527 = vector.load %arg12[%c5_195, %c0_196] : memref<16x32xf32, #tpu.memory_space<vmem>>, vector<1x32xf32>
    tpu.vector_store %arg12[%c5_195, %c0_196], %526 {strides = array<i32>} : memref<16x32xf32, #tpu.memory_space<vmem>>, vector<1x32xf32>,
    %528 = vector.extract_strided_slice %525 {offsets = [1, 0], sizes = [1, 32], strides = [1, 1]} : vector<2x32xf32> to vector<1x32xf32>
    %c13_197 = arith.constant 13 : index
    %c0_198 = arith.constant 0 : index
    %529 = vector.load %arg12[%c13_197, %c0_198] : memref<16x32xf32, #tpu.memory_space<vmem>>, vector<1x32xf32>
    tpu.vector_store %arg12[%c13_197, %c0_198], %528 {strides = array<i32>} : memref<16x32xf32, #tpu.memory_space<vmem>>, vector<1x32xf32>,
    %530 = vector.extract_strided_slice %393 {offsets = [12, 0], sizes = [2, 128], strides = [1, 1]} : vector<16x128xf32> to vector<2x128xf32>
    %cst_199 = arith.constant dense<0.000000e+00> : vector<2x128xf32>
    %531 = tpu.matmul %525, %395, %cst_199 {dimension_numbers = #tpu.dot_dimension_numbers<[1], [0], [0], [1], [0, 0, 1, 1], [], []>} : vector<2x32xf32>, vector<32x128xf32>, vector<2x128xf32> -> vector<2x128xf32>
    %532 = arith.addf %530, %531 : vector<2x128xf32>
    %533 = arith.negf %532 : vector<2x128xf32>
    %534 = math.exp %533 : vector<2x128xf32>
    %cst_200 = arith.constant 1.000000e+00 : f32
    %535 = vector.broadcast %cst_200 : f32 to vector<2x128xf32>
    %536 = arith.addf %535, %534 : vector<2x128xf32>
    %537 = arith.divf %535, %536 : vector<2x128xf32>
    %538 = vector.extract_strided_slice %537 {offsets = [0, 0], sizes = [2, 32], strides = [1, 1]} : vector<2x128xf32> to vector<2x32xf32>
    %539 = vector.extract_strided_slice %537 {offsets = [0, 32], sizes = [2, 32], strides = [1, 1]} : vector<2x128xf32> to vector<2x32xf32>
    %540 = vector.extract_strided_slice %537 {offsets = [0, 96], sizes = [2, 32], strides = [1, 1]} : vector<2x128xf32> to vector<2x32xf32>
    %541 = vector.extract_strided_slice %532 {offsets = [0, 64], sizes = [2, 32], strides = [1, 1]} : vector<2x128xf32> to vector<2x32xf32>
    %542 = math.tanh %541 : vector<2x32xf32>
    %543 = arith.mulf %539, %523 : vector<2x32xf32>
    %544 = arith.mulf %538, %542 : vector<2x32xf32>
    %545 = arith.addf %543, %544 : vector<2x32xf32>
    %546 = math.tanh %545 : vector<2x32xf32>
    %547 = arith.mulf %540, %546 : vector<2x32xf32>
    %548 = vector.extract_strided_slice %547 {offsets = [0, 0], sizes = [1, 32], strides = [1, 1]} : vector<2x32xf32> to vector<1x32xf32>
    %c6_201 = arith.constant 6 : index
    %c0_202 = arith.constant 0 : index
    %549 = vector.load %arg12[%c6_201, %c0_202] : memref<16x32xf32, #tpu.memory_space<vmem>>, vector<1x32xf32>
    tpu.vector_store %arg12[%c6_201, %c0_202], %548 {strides = array<i32>} : memref<16x32xf32, #tpu.memory_space<vmem>>, vector<1x32xf32>,
    %550 = vector.extract_strided_slice %547 {offsets = [1, 0], sizes = [1, 32], strides = [1, 1]} : vector<2x32xf32> to vector<1x32xf32>
    %c14_203 = arith.constant 14 : index
    %c0_204 = arith.constant 0 : index
    %551 = vector.load %arg12[%c14_203, %c0_204] : memref<16x32xf32, #tpu.memory_space<vmem>>, vector<1x32xf32>
    tpu.vector_store %arg12[%c14_203, %c0_204], %550 {strides = array<i32>} : memref<16x32xf32, #tpu.memory_space<vmem>>, vector<1x32xf32>,
    %552 = vector.extract_strided_slice %393 {offsets = [14, 0], sizes = [2, 128], strides = [1, 1]} : vector<16x128xf32> to vector<2x128xf32>
    %cst_205 = arith.constant dense<0.000000e+00> : vector<2x128xf32>
    %553 = tpu.matmul %547, %395, %cst_205 {dimension_numbers = #tpu.dot_dimension_numbers<[1], [0], [0], [1], [0, 0, 1, 1], [], []>} : vector<2x32xf32>, vector<32x128xf32>, vector<2x128xf32> -> vector<2x128xf32>
    %554 = arith.addf %552, %553 : vector<2x128xf32>
    %555 = arith.negf %554 : vector<2x128xf32>
    %556 = math.exp %555 : vector<2x128xf32>
    %cst_206 = arith.constant 1.000000e+00 : f32
    %557 = vector.broadcast %cst_206 : f32 to vector<2x128xf32>
    %558 = arith.addf %557, %556 : vector<2x128xf32>
    %559 = arith.divf %557, %558 : vector<2x128xf32>
    %560 = vector.extract_strided_slice %559 {offsets = [0, 0], sizes = [2, 32], strides = [1, 1]} : vector<2x128xf32> to vector<2x32xf32>
    %561 = vector.extract_strided_slice %559 {offsets = [0, 32], sizes = [2, 32], strides = [1, 1]} : vector<2x128xf32> to vector<2x32xf32>
    %562 = vector.extract_strided_slice %559 {offsets = [0, 96], sizes = [2, 32], strides = [1, 1]} : vector<2x128xf32> to vector<2x32xf32>
    %563 = vector.extract_strided_slice %554 {offsets = [0, 64], sizes = [2, 32], strides = [1, 1]} : vector<2x128xf32> to vector<2x32xf32>
    %564 = math.tanh %563 : vector<2x32xf32>
    %565 = arith.mulf %561, %545 : vector<2x32xf32>
    %566 = arith.mulf %560, %564 : vector<2x32xf32>
    %567 = arith.addf %565, %566 : vector<2x32xf32>
    %568 = math.tanh %567 : vector<2x32xf32>
    %569 = arith.mulf %562, %568 : vector<2x32xf32>
    %570 = vector.extract_strided_slice %569 {offsets = [0, 0], sizes = [1, 32], strides = [1, 1]} : vector<2x32xf32> to vector<1x32xf32>
    %c7_207 = arith.constant 7 : index
    %c0_208 = arith.constant 0 : index
    %571 = vector.load %arg12[%c7_207, %c0_208] : memref<16x32xf32, #tpu.memory_space<vmem>>, vector<1x32xf32>
    tpu.vector_store %arg12[%c7_207, %c0_208], %570 {strides = array<i32>} : memref<16x32xf32, #tpu.memory_space<vmem>>, vector<1x32xf32>,
    %572 = vector.extract_strided_slice %569 {offsets = [1, 0], sizes = [1, 32], strides = [1, 1]} : vector<2x32xf32> to vector<1x32xf32>
    %c15_209 = arith.constant 15 : index
    %c0_210 = arith.constant 0 : index
    %573 = vector.load %arg12[%c15_209, %c0_210] : memref<16x32xf32, #tpu.memory_space<vmem>>, vector<1x32xf32>
    tpu.vector_store %arg12[%c15_209, %c0_210], %572 {strides = array<i32>} : memref<16x32xf32, #tpu.memory_space<vmem>>, vector<1x32xf32>,
    %c0_211 = arith.constant 0 : index
    %c0_212 = arith.constant 0 : index
    %574 = vector.load %arg12[%c0_211, %c0_212] : memref<16x32xf32, #tpu.memory_space<vmem>>, vector<16x32xf32>
    %c0_213 = arith.constant 0 : index
    %c0_214 = arith.constant 0 : index
    %575 = vector.load %arg6[%c0_213, %c0_214] : memref<32x64xf32, #tpu.memory_space<vmem>>, vector<32x64xf32>
    %cst_215 = arith.constant dense<0.000000e+00> : vector<16x64xf32>
    %576 = tpu.matmul %574, %575, %cst_215 {dimension_numbers = #tpu.dot_dimension_numbers<[1], [0], [0], [1], [0, 0, 1, 1], [], []>} : vector<16x32xf32>, vector<32x64xf32>, vector<16x64xf32> -> vector<16x64xf32>
    %c0_216 = arith.constant 0 : index
    %c0_217 = arith.constant 0 : index
    %577 = vector.load %arg7[%c0_216, %c0_217] : memref<1x64xf32, #tpu.memory_space<vmem>>, vector<1x64xf32>
    %578 = vector.broadcast %577 : vector<1x64xf32> to vector<16x64xf32>
    %579 = arith.addf %576, %578 : vector<16x64xf32>
    %c0_218 = arith.constant 0 : index
    %c0_219 = arith.constant 0 : index
    %580 = vector.load %arg8[%c0_218, %c0_219] : memref<16x64xf32, #tpu.memory_space<vmem>>, vector<16x64xf32>
    tpu.vector_store %arg8[%c0_218, %c0_219], %579 {strides = array<i32>} : memref<16x64xf32, #tpu.memory_space<vmem>>, vector<16x64xf32>,
    return
  }
}

</mosaic_0001>

<bundles_post_ra>
// kernel: decoder_rnn_forward.1
= control target key start
LH: loop header
LB: loop body
LE: loop exit
PB: predicated region body
PF: predicated region fallthrough
CT: control target
= control target key end

     0   :  { %13 = vsyncpa [#allocation9], 0  ;;  %s4738_s0 = inlined_call_operand.vmem [shape: f32[2,32], index: 0, kind: input, shape index: {}]   ;;  %s4739_s1 = inlined_call_operand.vmem [shape: s32[2,8], index: 1, kind: input, shape index: {}]   ;;  %s4740_s2 = inlined_call_operand.vmem [shape: f32[64,32], index: 2, kind: input, shape index: {}]   ;;  %s4741_s3 = inlined_call_operand.vmem [shape: f32[3,32,128], index: 3, kind: input, shape index: {}]   ;;  %s4742_s4 = inlined_call_operand.hbm [shape: f32[3,32,128], index: 4, kind: input, shape index: {}]   ;;  %s4743_s5 = inlined_call_operand.vmem [shape: f32[3,1,128], index: 5, kind: input, shape index: {}]   ;;  %s4744_s6 = inlined_call_operand.hbm [shape: f32[32,64], index: 6, kind: input, shape index: {}]   ;;  %s4745_s7 = inlined_call_operand.vmem [shape: f32[1,64], index: 7, kind: input, shape index: {}]   ;;  %s4746_s8 = inlined_call_operand.hbm [shape: f32[16,64], index: 8, kind: output, shape index: {}]  }
   0x1   :  { %14 = vsyncpa [#allocation7], 0 }
   0x2   :  { %15 = vsyncpa [#allocation12], 0 }
   0x3   :  { %16 = vsyncpa [#allocation8], 0  ;;  %s25_s29 = sshll.u32 %s4739_s1, 4  ;;  %s26_s29 = int_to_ptr.vmem [resolvable:$true] %s25_s29 }
   0x4   :  { %s3921_s30 = scalar_lea.vmem %s26_s29, 32  ;;  %p3926_p1 = scmp.lt.s32.totalorder %s26_s29, %s26_s29 }
   0x5   :  { %p3922_p0 = scmp.ne.s32.totalorder %s26_s29, %s3921_s30  ;;  %p3927_p2 = scmp.lt.s32.totalorder %s3921_s30, %s3921_s30 }
   0x7   :  { %p3928_p3 = por %p3927_p2, %p3926_p1 }
   0x9   :  { %p3929_p4 = pnand %p3928_p3, %p3922_p0 }
   0xb   :  { %3932 = shalt.err (!%p3929_p4)
}
   0xc   :  { %s4001_s9 = smov [#allocation6]   ;;  %s4002_s10 = smov [#allocation10]  }
   0xd   :  { %28 = dma.vmem_to_smem %s26_s29, 32, %s4001_s9, [#allocation9]  }
   0xe   :  { %s38_s11 = sshll.u32 %s4002_s10, 4  ;;  %s39_s11 = int_to_ptr.vmem [resolvable:$true] %s38_s11 }
   0xf   :  { %s3941_s12 = scalar_lea.vmem %s39_s11, 1536  ;;  %p3946_p6 = scmp.lt.s32.totalorder %s39_s11, %s39_s11 }
  0x10   :  { %p3942_p5 = scmp.ne.s32.totalorder %s39_s11, %s3941_s12  ;;  %p3947_p7 = scmp.lt.s32.totalorder %s3941_s12, %s3941_s12 }
  0x12   :  { %p3948_p8 = por %p3947_p7, %p3946_p6 }
  0x14   :  { %p3949_p9 = pnand %p3948_p8, %p3942_p5 }
  0x16   :  { %3952 = shalt.err (!%p3949_p9)
}
  0x17   :  { %s4003_s1 = smov 128   ;;  %s4004_s13 = smov 8  }
  0x18   :  { %44 = dma.hbm_to_vmem [thread:$0]  %s4742_s4, 1536, %s39_s11, [#allocation7], %s4003_s1, %s4003_s1, %s4004_s13  }
  0x19   :  { %s4005_s16 = smov [#allocation11]  }
  0x1a   :  { %s52_s17 = sshll.u32 %s4005_s16, 4  ;;  %s53_s17 = int_to_ptr.vmem [resolvable:$true] %s52_s17 }
  0x1b   :  { %s3961_s18 = scalar_lea.vmem %s53_s17, 512  ;;  %p3966_p11 = scmp.lt.s32.totalorder %s53_s17, %s53_s17 }
  0x1c   :  { %p3962_p10 = scmp.ne.s32.totalorder %s53_s17, %s3961_s18  ;;  %p3967_p12 = scmp.lt.s32.totalorder %s3961_s18, %s3961_s18 }
  0x1e   :  { %p3968_p13 = por %p3967_p12, %p3966_p11 }
  0x20   :  { %p3969_p0 = pnand %p3968_p13, %p3962_p10 }
  0x22   :  { %3972 = shalt.err (!%p3969_p0)
}
  0x23   :  { %58 = dma.hbm_to_vmem [thread:$0]  %s4744_s6, 512, %s53_s17, [#allocation12], %s4003_s1, %s4003_s1, %s4004_s13  }
  0x24   :  { %3993 = dma.done.wait [#allocation9], 32  }
  0x25   :  { %3994 = vsyncadd [#allocation9], 4294967264 }
  0x26   :  { %3995 = dma.done.wait [#allocation7], 1536  }
  0x27   :  { %3996 = vsyncadd [#allocation7], 4294965760 }
  0x28   :  { %3997 = dma.done.wait [#allocation12], 512  }
  0x29   :  { %3998 = vsyncadd [#allocation12], 4294966784 }
  0x2a   :  { %70 = sfence }
  0x2b   :  { %v136_v0 = vld [vmem:[%s4741_s3 + $0x18] sm:$0xff]  ;;  %v135_v1 = vld [vmem:[%s4741_s3 + $0x10] sm:$0xff]  ;;  %vm72_vm0 = vcmask 254976   ;;  %v4006_v3 = vmov 0.0   ;;  %s74_s6 = sld [smem:[#allocation6]]  ;;  %v134_v5 = vld [vmem:[%s4741_s3 + $0x8] sm:$0xff] }
  0x2c   :  { %v4077_v2 = vld [vmem:[#allocation10 + $0x18] sm:$0xff]  ;;  %3411 = vmatprep.subr.mxu0 %v136_v0  ;;  %3422 = vmatprep.subr.mxu1 %v4006_v3  ;;  %v4080_v4 = vld [vmem:[#allocation10 + $0x10] sm:$0xff]  ;;  %v71_v6 = vld [vmem:[%s4738_s0] sm:$0x3]  ;;  %s3187_s28 = sld [smem:[#allocation6 + $0x80]]  ;;  %vm77_vm1 = vcmask 253952  }
  0x2d   :  { %3412 = vmatpush3.msra.mxu0 %v136_v0  ;;  %3423 = vmatpush3.msra.mxu1 %v4077_v2  ;;  %73 = vst.msk [vmem:[#allocation2] sm:$0x3] %vm72_vm0, %v71_v6  ;;  %s4091_s29 = sld [smem:[#allocation6 + $0x1]]  ;;  %v4093_v7 = vld [vmem:[#allocation10 + $0x8] sm:$0xff]  ;;  %v133_v8 = vld [vmem:[%s4741_s3] sm:$0xff]  ;;  %vm4007_vm2 = vmmov 0  }
  0x2e   :  { %3413 = vmatprep.subr.mxu0 %v135_v1  ;;  %3424 = vmatprep.subr.mxu1 %v4006_v3  ;;  %s4099_s10 = sld [smem:[#allocation6 + $0x81]]  ;;  %v4104_v9 = vld [vmem:[#allocation10] sm:$0xff]  ;;  %vm144_vm3 = vcmask 261120   ;;  %vm440_vm4 = vcmask 257026   ;;  %vm664_vm5 = vcmask 261126   ;;  %vm552_vm6 = vcmask 259076  }
  0x2f   :  { %3414 = vmatpush3.msra.mxu0 %v135_v1  ;;  %3425 = vmatpush3.msra.mxu1 %v4080_v4  ;;  %s4102_s0 = sld [smem:[#allocation6 + $0x2]]  ;;  %v3200_v28 = vld [vmem:[%s4743_s5] ss:$0 sm:$0xff]  ;;  %vm2274_vm7 = vcmask 254977   ;;  %vm2383_vm8 = vcmask 256002   ;;  %vm2385_vm9 = vcmask 257027  }
  0x30   :  { %3415 = vmatprep.subr.mxu0 %v134_v5  ;;  %3426 = vmatprep.subr.mxu1 %v4006_v3  ;;  %s4106_s11 = sld [smem:[#allocation6 + $0x82]]  ;;  %vm2611_vm10 = vcmask 260102   ;;  %vm2613_vm11 = vcmask 261127   ;;  %vm2497_vm12 = vcmask 258052   ;;  %vm2499_vm13 = vcmask 259077  }
  0x31   :  { %3416 = vmatpush3.msra.mxu0 %v134_v5  ;;  %3427 = vmatpush3.msra.mxu1 %v4093_v7  ;;  %s75_s15 = scalar_lea.vmem %s4740_s2, %s74_s6  ;;  %s4112_s16 = sld [smem:[#allocation6 + $0x3]]  ;;  %vm3151_vm14 = vcmask 523264  }
  0x32   :  { %3417 = vmatprep.subr.mxu0 %v133_v8  ;;  %3428 = vmatprep.subr.mxu1 %v4006_v3  ;;  %v76_v10 = vld [vmem:[%s75_s15] sm:$0x1]  ;;  %s80_s19 = scalar_lea.vmem %s4740_s2, %s3187_s28  ;;  %s4118_s20 = sld [smem:[#allocation6 + $0x83]] }
  0x33   :  { %3418 = vmatpush3.msra.mxu0 %v133_v8  ;;  %3429 = vmatpush3.msra.mxu1 %v4104_v9  ;;  %78 = vst.msk [vmem:[#allocation2 + $0x2] sm:$0x1] %vm77_vm1, %v76_v10  ;;  %v81_v11 = vld [vmem:[%s80_s19] sm:$0x1]  ;;  %s84_s22 = scalar_lea.vmem %s4740_s2, %s4091_s29  ;;  %s4126_s23 = sld [smem:[#allocation6 + $0x4]] }
  0x34   :  { %3430 = vmatprep.mubr.msk.f32.mxu1 %vm4007_vm2, %v4006_v3  ;;  %3433 = vmatprep.subr.mxu0 %v4006_v3  ;;  %82 = vst.msk [vmem:[#allocation2 + $0x3] sm:$0x1] %vm77_vm1, %v81_v11  ;;  %v85_v12 = vld [vmem:[%s84_s22] sm:$0x1]  ;;  %s88_s25 = scalar_lea.vmem %s4740_s2, %s4099_s10  ;;  %s4136_s26 = sld [smem:[#allocation6 + $0x84]] }
  0x35   :  { %3431 = vmatmul.mubr.f32.vlgmr.msra.gmra.mxu1 %v4006_v3  ;;  %3444 = vmatprep.subr.mxu1 %v4006_v3  ;;  %86 = vst.msk [vmem:[#allocation2 + $0x4] sm:$0x1] %vm77_vm1, %v85_v12  ;;  %v89_v13 = vld [vmem:[%s88_s25] sm:$0x1]  ;;  %s92_s29 = scalar_lea.vmem %s4740_s2, %s4102_s0  ;;  %s4145_s30 = sld [smem:[#allocation6 + $0x5]] }
  0x36   :  { %3445 = vmatpush3.msra.mxu1 %v4077_v2  ;;  %3452 = vmatprep.mubr.msk.f32.mxu1 %vm4007_vm2, %v4006_v3  ;;  %90 = vst.msk [vmem:[#allocation2 + $0x5] sm:$0x1] %vm77_vm1, %v89_v13  ;;  %v93_v14 = vld [vmem:[%s92_s29] sm:$0x1]  ;;  %s96_s12 = scalar_lea.vmem %s4740_s2, %s4106_s11  ;;  %s4155_s14 = sld [smem:[#allocation6 + $0x85]] }
  0x37   :  { %3446 = vmatprep.subr.mxu1 %v4006_v3  ;;  %94 = vst.msk [vmem:[#allocation2 + $0x6] sm:$0x1] %vm77_vm1, %v93_v14  ;;  %v97_v15 = vld [vmem:[%s96_s12] sm:$0x1]  ;;  %s100_s17 = scalar_lea.vmem %s4740_s2, %s4112_s16  ;;  %s3198_s18 = sld [smem:[#allocation6 + $0x6]] }
  0x38   :  { %3447 = vmatpush3.msra.mxu1 %v4080_v4  ;;  %98 = vst.msk [vmem:[#allocation2 + $0x7] sm:$0x1] %vm77_vm1, %v97_v15  ;;  %v101_v16 = vld [vmem:[%s100_s17] sm:$0x1]  ;;  %s104_s4 = scalar_lea.vmem %s4740_s2, %s4118_s20  ;;  %s3199_s21 = sld [smem:[#allocation6 + $0x86]] }
  0x39   :  { %3448 = vmatprep.subr.mxu1 %v4006_v3  ;;  %102 = vst.msk [vmem:[#allocation2 + $0x8] sm:$0x1] %vm77_vm1, %v101_v16  ;;  %v105_v17 = vld [vmem:[%s104_s4] sm:$0x1]  ;;  %s108_s6 = scalar_lea.vmem %s4740_s2, %s4126_s23  ;;  %s4009_s11 = smov 32  }
  0x3a   :  { %3449 = vmatpush3.msra.mxu1 %v4093_v7  ;;  %106 = vst.msk [vmem:[#allocation2 + $0x9] sm:$0x1] %vm77_vm1, %v105_v17  ;;  %v109_v18 = vld [vmem:[%s108_s6] sm:$0x1]  ;;  %s112_s20 = scalar_lea.vmem %s4740_s2, %s4136_s26 }
  0x3b   :  { %3450 = vmatprep.subr.mxu1 %v4006_v3  ;;  %110 = vst.msk [vmem:[#allocation2 + $0xa] sm:$0x1] %vm77_vm1, %v109_v18  ;;  %v113_v19 = vld [vmem:[%s112_s20] sm:$0x1]  ;;  %s116_s29 = scalar_lea.vmem %s4740_s2, %s4145_s30 }
  0x3c   :  { %3451 = vmatpush3.msra.mxu1 %v4104_v9  ;;  %114 = vst.msk [vmem:[#allocation2 + $0xb] sm:$0x1] %vm77_vm1, %v113_v19  ;;  %v117_v20 = vld [vmem:[%s116_s29] sm:$0x1]  ;;  %s120_s10 = scalar_lea.vmem %s4740_s2, %s4155_s14 }
  0x3d   :  { %3466 = vmatprep.subr.mxu1 %v4006_v3  ;;  %118 = vst.msk [vmem:[#allocation2 + $0xc] sm:$0x1] %vm77_vm1, %v117_v20  ;;  %v121_v21 = vld [vmem:[%s120_s10] sm:$0x1]  ;;  %s124_s0 = scalar_lea.vmem %s4740_s2, %s3198_s18  ;;  %s4008_s18 = smov 64  }
  0x3e   :  { %122 = vst.msk [vmem:[#allocation2 + $0xd] sm:$0x1] %vm77_vm1, %v121_v21  ;;  %v125_v22 = vld [vmem:[%s124_s0] sm:$0x1]  ;;  %s128_s17 = scalar_lea.vmem %s4740_s2, %s3199_s21 }
  0x3f   :  { %v131_v23 = vld [vmem:[#allocation2] sm:$0xff]  ;;  %126 = vst.msk [vmem:[#allocation2 + $0xe] sm:$0x1] %vm77_vm1, %v125_v22 }
  0x40   :  { %v129_v24 = vld [vmem:[%s128_s17] sm:$0x1]  ;;  %3419 = vmatprep.mubr.msk.f32.mxu0 %vm144_vm3, %v131_v23  ;;  %s4010_s17 = smov [#allocation13]  }
  0x41   :  { %130 = vst.msk [vmem:[#allocation2 + $0xf] sm:$0x1] %vm77_vm1, %v129_v24  ;;  %s3159_s2 = sshll.u32 %s4010_s17, 4  ;;  %s3160_s2 = int_to_ptr.vmem [resolvable:$true] %s3159_s2 }
  0x42   :  { %s3973_s14 = scalar_lea.vmem %s3160_s2, 256  ;;  %p3978_p2 = scmp.lt.s32.totalorder %s3160_s2, %s3160_s2 }
  0x43   :  { %p3974_p1 = scmp.ne.s32.totalorder %s3160_s2, %s3973_s14  ;;  %p3979_p3 = scmp.lt.s32.totalorder %s3973_s14, %s3973_s14 }
  0x45   :  { %p3980_p4 = por %p3979_p3, %p3978_p2 }
  0x47   :  { %p3981_p5 = pnand %p3980_p4, %p3974_p1 }
  0x48   :  { %v132_v25 = vld [vmem:[#allocation2 + $0x8] sm:$0xff] }
  0x49   :  { %3420 = vmatmul.mubr.msk.f32.vlgmr.msra.gmra.mxu0 %vm144_vm3, %v132_v25 }
  0x4a   :  { %3434 = vmatpush3.msra.mxu0 %v4077_v2  ;;  %3441 = vmatprep.mubr.msk.f32.mxu0 %vm4007_vm2, %v4006_v3 }
  0x4b   :  { %3435 = vmatprep.subr.mxu0 %v4006_v3 }
  0x4c   :  { %3436 = vmatpush3.msra.mxu0 %v4080_v4 }
  0x4d   :  { %3437 = vmatprep.subr.mxu0 %v4006_v3 }
  0x4e   :  { %3438 = vmatpush3.msra.mxu0 %v4093_v7 }
  0x4f   :  { %3439 = vmatprep.subr.mxu0 %v4006_v3 }
  0x50   :  { %3440 = vmatpush3.msra.mxu0 %v4104_v9 }
  0x51   :  { %3455 = vmatprep.subr.mxu0 %v4006_v3 }
  0xf5   :  { %v299_v26 = vpop.f32.mrf.mxu1 }
  0xf7   :  { %v3432_v27 = vpop.f32.mrf.mxu1 }
 0x109   :  { %v3421_v29 = vpop.f32.mrf.mxu0 }
 0x10a   :  { %v4219_v30 = vadd.f32 %v3421_v29, %v3200_v28 }
 0x10b   :  { %v217_v31 = vpop.f32.mrf.mxu0 }
 0x10c   :  { %v4221_v32 = vadd.f32 %v3200_v28, %v217_v31 }
 0x10e   :  { %v303_v33 = vadd.f32 %v299_v26, %v4221_v32 }
 0x110   :  { %3729 = vtanh.f32 %v303_v33  ;;  %v3203_v35 = vmul.f32 -1.442695, %v303_v33 }
 0x112   :  { %3731 = vpow2.f32 %v3203_v35 }
 0x11d   :  { %v3730_v34 = vpop.eup %3729 }
 0x11e   :  { %313 = vrot.lane.b32.xlu0 %v3730_v34, %s4008_s18 }
 0x11f   :  { %v3732_v36 = vpop.eup %3731 }
 0x120   :  { %v307_v37 = vadd.f32 1.0, %v3732_v36 }
 0x122   :  { %3733 = vrcp.f32 %v307_v37 }
 0x12f   :  { %v3734_v38 = vpop.eup %3733 }
 0x130   :  { %v311_v41 = vmul.f32 0.0, %v3734_v38 }
 0x190   :  { %v314_v39 = vpop.permute.xlu0 %313 }
 0x191   :  { %v316_v40 = vmul.f32 %v3734_v38, %v314_v39 }
 0x193   :  { %318 = vrot.lane.b32.xlu0 %v316_v40, %s4009_s11 }
 0x205   :  { %v319_v42 = vpop.permute.xlu0 %318 }
 0x206   :  { %v321_v43 = vadd.f32 %v319_v42, %v311_v41 }
 0x208   :  { %3735 = vtanh.f32 %v321_v43  ;;  %v417_v59 = vrot.slane %v321_v43, 6 }
 0x215   :  { %v3736_v44 = vpop.eup %3735 }
 0x216   :  { %324 = vrot.lane.b32.xlu1 %v3736_v44, %s4008_s18 }
 0x288   :  { %v325_v45 = vpop.permute.xlu1 %324 }
 0x289   :  { %v327_v46 = vmul.f32 %v3734_v38, %v325_v45 }
 0x28b   :  { %329 = vrot.lane.b32.xlu1 %v327_v46, %s4009_s11 }
 0x2fd   :  { %v330_v47 = vpop.permute.xlu1 %329 }
 0x2fe   :  { %332 = vst.msk [vmem:[#allocation3] sm:$0x3] %vm72_vm0, %v330_v47  ;;  %3442 = vmatmul.mubr.msk.f32.vlgmr.msra.gmra.mxu0 %vm144_vm3, %v330_v47 }
 0x2ff   :  { %3456 = vmatpush3.msra.mxu0 %v4077_v2  ;;  %3463 = vmatprep.mubr.msk.f32.mxu0 %vm4007_vm2, %v4006_v3 }
 0x300   :  { %3457 = vmatprep.subr.mxu0 %v4006_v3 }
 0x301   :  { %3458 = vmatpush3.msra.mxu0 %v4080_v4 }
 0x302   :  { %3459 = vmatprep.subr.mxu0 %v4006_v3 }
 0x303   :  { %3460 = vmatpush3.msra.mxu0 %v4093_v7 }
 0x304   :  { %3461 = vmatprep.subr.mxu0 %v4006_v3 }
 0x305   :  { %3462 = vmatpush3.msra.mxu0 %v4104_v9 }
 0x306   :  { %3477 = vmatprep.subr.mxu0 %v4006_v3 }
 0x3be   :  { %v401_v48 = vpop.f32.mrf.mxu0 }
 0x3bf   :  { %v406_v49 = vrot.slane %v401_v48, 6 }
 0x3c0   :  { %v3443_v50 = vpop.f32.mrf.mxu0 }
 0x3c1   :  { %v408_v51 = vadd.f32 %v406_v49, %v4221_v32 }
 0x3c3   :  { %3737 = vtanh.f32 %v408_v51  ;;  %v3205_v53 = vmul.f32 -1.442695, %v408_v51 }
 0x3c5   :  { %3739 = vpow2.f32 %v3205_v53 }
 0x3d0   :  { %v3738_v52 = vpop.eup %3737 }
 0x3d1   :  { %421 = vrot.lane.b32.xlu0 %v3738_v52, %s4008_s18 }
 0x3d2   :  { %v3740_v54 = vpop.eup %3739 }
 0x3d3   :  { %v412_v55 = vadd.f32 1.0, %v3740_v54 }
 0x3d5   :  { %3741 = vrcp.f32 %v412_v55 }
 0x3e2   :  { %v3742_v56 = vpop.eup %3741 }
 0x3e3   :  { %v419_v60 = vmul.f32 %v3742_v56, %v417_v59 }
 0x443   :  { %v422_v57 = vpop.permute.xlu0 %421 }
 0x444   :  { %v424_v58 = vmul.f32 %v3742_v56, %v422_v57 }
 0x446   :  { %426 = vrot.lane.b32.xlu1 %v424_v58, %s4009_s11 }
 0x4b8   :  { %v427_v61 = vpop.permute.xlu1 %426 }
 0x4b9   :  { %v429_v62 = vadd.f32 %v427_v61, %v419_v60 }
 0x4bb   :  { %3743 = vtanh.f32 %v429_v62  ;;  %v529_v20 = vrot.slane %v429_v62, 6 }
 0x4c8   :  { %v3744_v63 = vpop.eup %3743 }
 0x4c9   :  { %432 = vrot.lane.b32.xlu0 %v3744_v63, %s4008_s18 }
 0x53b   :  { %v433_v0 = vpop.permute.xlu0 %432 }
 0x53c   :  { %v4244_v1 = vmul.f32 %v3742_v56, %v433_v0 }
 0x53e   :  { %v442_v5 = vrot.slane %v4244_v1, 2 }
 0x540   :  { %443 = vrot.lane.b32.xlu1 %v442_v5, %s4009_s11 }
 0x5b2   :  { %v444_v6 = vpop.permute.xlu1 %443 }
 0x5b3   :  { %3453 = vmatmul.mubr.msk.f32.vlgmr.msra.gmra.mxu1 %vm144_vm3, %v444_v6 }
 0x5b4   :  { %3467 = vmatpush3.msra.mxu1 %v4077_v2  ;;  %3474 = vmatprep.mubr.msk.f32.mxu1 %vm4007_vm2, %v4006_v3 }
 0x5b5   :  { %3468 = vmatprep.subr.mxu1 %v4006_v3 }
 0x5b6   :  { %3469 = vmatpush3.msra.mxu1 %v4080_v4 }
 0x5b7   :  { %3470 = vmatprep.subr.mxu1 %v4006_v3 }
 0x5b8   :  { %3471 = vmatpush3.msra.mxu1 %v4093_v7 }
 0x5b9   :  { %3472 = vmatprep.subr.mxu1 %v4006_v3 }
 0x5ba   :  { %3473 = vmatpush3.msra.mxu1 %v4104_v9 }
 0x5bb   :  { %3488 = vmatprep.subr.mxu1 %v4006_v3 }
 0x673   :  { %v513_v8 = vpop.f32.mrf.mxu1 }
 0x674   :  { %v518_v10 = vrot.slane %v513_v8, 4 }
 0x675   :  { %v3454_v11 = vpop.f32.mrf.mxu1 }
 0x676   :  { %v520_v12 = vadd.f32 %v518_v10, %v4221_v32 }
 0x678   :  { %3745 = vtanh.f32 %v520_v12  ;;  %v3207_v14 = vmul.f32 -1.442695, %v520_v12 }
 0x67a   :  { %3747 = vpow2.f32 %v3207_v14 }
 0x685   :  { %v3746_v13 = vpop.eup %3745 }
 0x686   :  { %533 = vrot.lane.b32.xlu0 %v3746_v13, %s4008_s18 }
 0x687   :  { %v3748_v15 = vpop.eup %3747 }
 0x688   :  { %v524_v16 = vadd.f32 1.0, %v3748_v15 }
 0x68a   :  { %3749 = vrcp.f32 %v524_v16 }
 0x697   :  { %v3750_v17 = vpop.eup %3749 }
 0x698   :  { %v531_v21 = vmul.f32 %v3750_v17, %v529_v20 }
 0x6f8   :  { %v534_v18 = vpop.permute.xlu0 %533 }
 0x6f9   :  { %v536_v19 = vmul.f32 %v3750_v17, %v534_v18 }
 0x6fb   :  { %538 = vrot.lane.b32.xlu1 %v536_v19, %s4009_s11 }
 0x76d   :  { %v539_v22 = vpop.permute.xlu1 %538 }
 0x76e   :  { %v541_v23 = vadd.f32 %v539_v22, %v531_v21 }
 0x770   :  { %3751 = vtanh.f32 %v541_v23  ;;  %v641_v42 = vrot.slane %v541_v23, 6 }
 0x77d   :  { %v3752_v24 = vpop.eup %3751 }
 0x77e   :  { %544 = vrot.lane.b32.xlu0 %v3752_v24, %s4008_s18 }
 0x7f0   :  { %v545_v25 = vpop.permute.xlu0 %544 }
 0x7f1   :  { %v4263_v26 = vmul.f32 %v3750_v17, %v545_v25 }
 0x7f3   :  { %v554_v27 = vrot.slane %v4263_v26, 4 }
 0x7f5   :  { %555 = vrot.lane.b32.xlu1 %v554_v27, %s4009_s11 }
 0x867   :  { %v556_v28 = vpop.permute.xlu1 %555 }
 0x868   :  { %3464 = vmatmul.mubr.msk.f32.vlgmr.msra.gmra.mxu0 %vm144_vm3, %v556_v28 }
 0x869   :  { %3478 = vmatpush3.msra.mxu0 %v4077_v2  ;;  %3485 = vmatprep.mubr.msk.f32.mxu0 %vm4007_vm2, %v4006_v3 }
 0x86a   :  { %3479 = vmatprep.subr.mxu0 %v4006_v3 }
 0x86b   :  { %3480 = vmatpush3.msra.mxu0 %v4080_v4 }
 0x86c   :  { %3481 = vmatprep.subr.mxu0 %v4006_v3 }
 0x86d   :  { %3482 = vmatpush3.msra.mxu0 %v4093_v7 }
 0x86e   :  { %3483 = vmatprep.subr.mxu0 %v4006_v3 }
 0x86f   :  { %3484 = vmatpush3.msra.mxu0 %v4104_v9 }
 0x870   :  { %3499 = vmatprep.subr.mxu0 %v4006_v3 }
 0x928   :  { %v625_v29 = vpop.f32.mrf.mxu0 }
 0x929   :  { %v630_v31 = vrot.slane %v625_v29, 2 }
 0x92a   :  { %v3465_v33 = vpop.f32.mrf.mxu0 }
 0x92b   :  { %v632_v34 = vadd.f32 %v630_v31, %v4221_v32 }
 0x92d   :  { %3753 = vtanh.f32 %v632_v34  ;;  %v3209_v36 = vmul.f32 -1.442695, %v632_v34 }
 0x92f   :  { %3755 = vpow2.f32 %v3209_v36 }
 0x93a   :  { %v3754_v35 = vpop.eup %3753 }
 0x93b   :  { %645 = vrot.lane.b32.xlu0 %v3754_v35, %s4008_s18 }
 0x93c   :  { %v3756_v37 = vpop.eup %3755 }
 0x93d   :  { %v636_v38 = vadd.f32 1.0, %v3756_v37 }
 0x93f   :  { %3757 = vrcp.f32 %v636_v38 }
 0x94c   :  { %v3758_v39 = vpop.eup %3757 }
 0x94d   :  { %v643_v43 = vmul.f32 %v3758_v39, %v641_v42 }
 0x9ad   :  { %v646_v40 = vpop.permute.xlu0 %645 }
 0x9ae   :  { %v648_v41 = vmul.f32 %v3758_v39, %v646_v40 }
 0x9b0   :  { %650 = vrot.lane.b32.xlu1 %v648_v41, %s4009_s11 }
 0xa22   :  { %v651_v44 = vpop.permute.xlu1 %650 }
 0xa23   :  { %v653_v45 = vadd.f32 %v651_v44, %v643_v43 }
 0xa25   :  { %3759 = vtanh.f32 %v653_v45  ;;  %v750_v60 = vrot.slane %v653_v45, 6 }
 0xa32   :  { %v3760_v32 = vpop.eup %3759 }
 0xa33   :  { %656 = vrot.lane.b32.xlu0 %v3760_v32, %s4008_s18 }
 0xaa5   :  { %v657_v46 = vpop.permute.xlu0 %656 }
 0xaa6   :  { %v4282_v47 = vmul.f32 %v3758_v39, %v657_v46 }
 0xaa8   :  { %v666_v48 = vrot.slane %v4282_v47, 6 }
 0xaaa   :  { %667 = vrot.lane.b32.xlu1 %v666_v48, %s4009_s11 }
 0xb1c   :  { %v668_v49 = vpop.permute.xlu1 %667 }
 0xb1d   :  { %3475 = vmatmul.mubr.msk.f32.vlgmr.msra.gmra.mxu1 %vm144_vm3, %v668_v49 }
 0xb1e   :  { %3489 = vmatpush3.msra.mxu1 %v4077_v2  ;;  %3496 = vmatprep.mubr.msk.f32.mxu1 %vm4007_vm2, %v4006_v3 }
 0xb1f   :  { %3490 = vmatprep.subr.mxu1 %v4006_v3 }
 0xb20   :  { %3491 = vmatpush3.msra.mxu1 %v4080_v4 }
 0xb21   :  { %3492 = vmatprep.subr.mxu1 %v4006_v3 }
 0xb22   :  { %3493 = vmatpush3.msra.mxu1 %v4093_v7 }
 0xb23   :  { %3494 = vmatprep.subr.mxu1 %v4006_v3 }
 0xb24   :  { %3495 = vmatpush3.msra.mxu1 %v4104_v9 }
 0xbdd   :  { %v737_v50 = vpop.f32.mrf.mxu1 }
 0xbde   :  { %v741_v51 = vadd.f32 %v737_v50, %v4219_v30 }
 0xbdf   :  { %v3476_v52 = vpop.f32.mrf.mxu1 }
 0xbe0   :  { %3761 = vtanh.f32 %v741_v51  ;;  %v3211_v54 = vmul.f32 -1.442695, %v741_v51 }
 0xbe2   :  { %3763 = vpow2.f32 %v3211_v54 }
 0xbed   :  { %v3762_v53 = vpop.eup %3761 }
 0xbee   :  { %754 = vrot.lane.b32.xlu0 %v3762_v53, %s4008_s18 }
 0xbef   :  { %v3764_v55 = vpop.eup %3763 }
 0xbf0   :  { %v745_v56 = vadd.f32 1.0, %v3764_v55 }
 0xbf2   :  { %3765 = vrcp.f32 %v745_v56 }
 0xbff   :  { %v3766_v57 = vpop.eup %3765 }
 0xc00   :  { %v752_v61 = vmul.f32 %v3766_v57, %v750_v60 }
 0xc60   :  { %v755_v58 = vpop.permute.xlu0 %754 }
 0xc61   :  { %v757_v59 = vmul.f32 %v3766_v57, %v755_v58 }
 0xc63   :  { %759 = vrot.lane.b32.xlu1 %v757_v59, %s4009_s11 }
 0xcd5   :  { %v760_v62 = vpop.permute.xlu1 %759 }
 0xcd6   :  { %v762_v63 = vadd.f32 %v760_v62, %v752_v61 }
 0xcd8   :  { %3767 = vtanh.f32 %v762_v63 }
 0xce5   :  { %v3768_v0 = vpop.eup %3767 }
 0xce6   :  { %765 = vrot.lane.b32.xlu0 %v3768_v0, %s4008_s18 }
 0xd58   :  { %v766_v5 = vpop.permute.xlu0 %765 }
 0xd59   :  { %v768_v6 = vmul.f32 %v3766_v57, %v766_v5  ;;  %v3221_v5 = vld [vmem:[%s4741_s3 + $0x38] sm:$0xff] }
 0xd5a   :  { %3510 = vmatprep.subr.mxu1 %v3221_v5 }
 0xd5b   :  { %770 = vrot.lane.b32.xlu1 %v768_v6, %s4009_s11  ;;  %v3220_v6 = vld [vmem:[%s4741_s3 + $0x30] sm:$0xff] }
 0xdcd   :  { %v771_v8 = vpop.permute.xlu1 %770 }
 0xdce   :  { %773 = vst.msk [vmem:[#allocation3 + $0x8] sm:$0x3] %vm72_vm0, %v771_v8  ;;  %3486 = vmatmul.mubr.msk.f32.vlgmr.msra.gmra.mxu0 %vm144_vm3, %v771_v8  ;;  %v4352_v8 = vld [vmem:[#allocation10 + $0x38] sm:$0xff] }
 0xdcf   :  { %3500 = vmatpush3.msra.mxu0 %v4077_v2  ;;  %3507 = vmatprep.mubr.msk.f32.mxu0 %vm4007_vm2, %v4006_v3 }
 0xdd0   :  { %3501 = vmatprep.subr.mxu0 %v4006_v3 }
 0xdd1   :  { %3502 = vmatpush3.msra.mxu0 %v4080_v4 }
 0xdd2   :  { %3503 = vmatprep.subr.mxu0 %v4006_v3 }
 0xdd3   :  { %3504 = vmatpush3.msra.mxu0 %v4093_v7 }
 0xdd4   :  { %3505 = vmatprep.subr.mxu0 %v4006_v3 }
 0xdd5   :  { %3506 = vmatpush3.msra.mxu0 %v4104_v9  ;;  %v858_v9 = vrot.slane %v762_v63, 6 }
 0xdd6   :  { %3521 = vmatprep.subr.mxu0 %v4006_v3 }
 0xe8e   :  { %v842_v10 = vpop.f32.mrf.mxu0 }
 0xe8f   :  { %v847_v11 = vrot.slane %v842_v10, 6  ;;  %v4358_v10 = vld [vmem:[#allocation10 + $0x30] sm:$0xff] }
 0xe90   :  { %v3487_v2 = vpop.f32.mrf.mxu0 }
 0xe91   :  { %v849_v12 = vadd.f32 %v847_v11, %v4219_v30  ;;  %v4361_v11 = vld [vmem:[#allocation10 + $0x28] sm:$0xff]  ;;  %v3218_v2 = vld [vmem:[%s4741_s3 + $0x20] sm:$0xff] }
 0xe93   :  { %3769 = vtanh.f32 %v849_v12  ;;  %v3213_v4 = vmul.f32 -1.442695, %v849_v12  ;;  %v4370_v12 = vld [vmem:[#allocation10 + $0x20] sm:$0xff] }
 0xe95   :  { %3771 = vpow2.f32 %v3213_v4 }
 0xea0   :  { %v3770_v13 = vpop.eup %3769 }
 0xea1   :  { %862 = vrot.lane.b32.xlu0 %v3770_v13, %s4008_s18 }
 0xea2   :  { %v3772_v14 = vpop.eup %3771 }
 0xea3   :  { %v853_v15 = vadd.f32 1.0, %v3772_v14 }
 0xea5   :  { %3773 = vrcp.f32 %v853_v15 }
 0xeb2   :  { %v3774_v7 = vpop.eup %3773 }
 0xeb3   :  { %v860_v18 = vmul.f32 %v3774_v7, %v858_v9 }
 0xf13   :  { %v863_v16 = vpop.permute.xlu0 %862 }
 0xf14   :  { %v865_v17 = vmul.f32 %v3774_v7, %v863_v16 }
 0xf16   :  { %867 = vrot.lane.b32.xlu1 %v865_v17, %s4009_s11 }
 0xf88   :  { %v868_v19 = vpop.permute.xlu1 %867 }
 0xf89   :  { %v870_v20 = vadd.f32 %v868_v19, %v860_v18  ;;  %v3223_v19 = vld [vmem:[%s4743_s5 + $0x1] ss:$0 sm:$0xff] }
 0xf8b   :  { %3775 = vtanh.f32 %v870_v20  ;;  %v969_v40 = vrot.slane %v870_v20, 6 }
 0xf98   :  { %v3776_v21 = vpop.eup %3775 }
 0xf99   :  { %873 = vrot.lane.b32.xlu0 %v3776_v21, %s4008_s18 }
0x100b   :  { %v874_v22 = vpop.permute.xlu0 %873 }
0x100c   :  { %v4317_v23 = vmul.f32 %v3774_v7, %v874_v22 }
0x100e   :  { %v882_v24 = vrot.slane %v4317_v23, 2 }
0x1010   :  { %883 = vrot.lane.b32.xlu1 %v882_v24, %s4009_s11 }
0x1082   :  { %v884_v25 = vpop.permute.xlu1 %883 }
0x1083   :  { %3497 = vmatmul.mubr.msk.f32.vlgmr.msra.gmra.mxu1 %vm144_vm3, %v884_v25 }
0x1084   :  { %3511 = vmatpush3.msra.mxu1 %v3221_v5 }
0x1085   :  { %3512 = vmatprep.subr.mxu1 %v3220_v6 }
0x1086   :  { %3513 = vmatpush3.msra.mxu1 %v3220_v6 }
0x1143   :  { %v953_v27 = vpop.f32.mrf.mxu1 }
0x1144   :  { %v958_v28 = vrot.slane %v953_v27, 4 }
0x1145   :  { %v3498_v29 = vpop.f32.mrf.mxu1 }
0x1146   :  { %v960_v31 = vadd.f32 %v958_v28, %v4219_v30 }
0x1148   :  { %3777 = vtanh.f32 %v960_v31  ;;  %v3215_v34 = vmul.f32 -1.442695, %v960_v31 }
0x114a   :  { %3779 = vpow2.f32 %v3215_v34 }
0x1155   :  { %v3778_v33 = vpop.eup %3777 }
0x1156   :  { %973 = vrot.lane.b32.xlu0 %v3778_v33, %s4008_s18 }
0x1157   :  { %v3780_v35 = vpop.eup %3779 }
0x1158   :  { %v964_v36 = vadd.f32 1.0, %v3780_v35 }
0x115a   :  { %3781 = vrcp.f32 %v964_v36 }
0x1167   :  { %v3782_v37 = vpop.eup %3781 }
0x1168   :  { %v971_v41 = vmul.f32 %v3782_v37, %v969_v40 }
0x11c8   :  { %v974_v38 = vpop.permute.xlu0 %973 }
0x11c9   :  { %v976_v39 = vmul.f32 %v3782_v37, %v974_v38 }
0x11cb   :  { %978 = vrot.lane.b32.xlu1 %v976_v39, %s4009_s11 }
0x123d   :  { %v979_v42 = vpop.permute.xlu1 %978 }
0x123e   :  { %v981_v43 = vadd.f32 %v979_v42, %v971_v41 }
0x1240   :  { %3783 = vtanh.f32 %v981_v43 }
0x124d   :  { %v3784_v44 = vpop.eup %3783 }
0x124e   :  { %984 = vrot.lane.b32.xlu0 %v3784_v44, %s4008_s18 }
0x12c0   :  { %v985_v45 = vpop.permute.xlu0 %984 }
0x12c1   :  { %v987_v32 = vmul.f32 %v3782_v37, %v985_v45 }
0x12c3   :  { %v993_v46 = vrot.slane %v987_v32, 4 }
0x12c5   :  { %994 = vrot.lane.b32.xlu1 %v993_v46, %s4009_s11 }
0x1337   :  { %v995_v48 = vpop.permute.xlu1 %994 }
0x1338   :  { %3508 = vmatmul.mubr.msk.f32.vlgmr.msra.gmra.mxu0 %vm144_vm3, %v995_v48 }
0x1339   :  { %3529 = vmatprep.mubr.msk.f32.mxu0 %vm4007_vm2, %v4006_v3  ;;  %3522 = vmatpush3.msra.mxu0 %v4352_v8 }
0x133a   :  { %3523 = vmatprep.subr.mxu0 %v4006_v3 }
0x133b   :  { %3524 = vmatpush3.msra.mxu0 %v4358_v10 }
0x133c   :  { %3525 = vmatprep.subr.mxu0 %v4006_v3 }
0x133d   :  { %3526 = vmatpush3.msra.mxu0 %v4361_v11 }
0x133e   :  { %3527 = vmatprep.subr.mxu0 %v4006_v3 }
0x133f   :  { %3528 = vmatpush3.msra.mxu0 %v4370_v12 }
0x1340   :  { %3530 = vmatmul.mubr.f32.vlgmr.msra.gmra.mxu0 %v4006_v3  ;;  %3543 = vmatprep.subr.mxu0 %v4006_v3 }
0x1341   :  { %3544 = vmatpush3.msra.mxu0 %v4352_v8  ;;  %3551 = vmatprep.mubr.msk.f32.mxu0 %vm4007_vm2, %v4006_v3 }
0x1342   :  { %3545 = vmatprep.subr.mxu0 %v4006_v3 }
0x1343   :  { %3546 = vmatpush3.msra.mxu0 %v4358_v10 }
0x1344   :  { %3547 = vmatprep.subr.mxu0 %v4006_v3 }
0x1345   :  { %3548 = vmatpush3.msra.mxu0 %v4361_v11 }
0x1346   :  { %3549 = vmatprep.subr.mxu0 %v4006_v3 }
0x1347   :  { %3550 = vmatpush3.msra.mxu0 %v4370_v12 }
0x1348   :  { %3565 = vmatprep.subr.mxu0 %v4006_v3 }
0x13f8   :  { %v1064_v49 = vpop.f32.mrf.mxu0 }
0x13f9   :  { %v1069_v50 = vrot.slane %v1064_v49, 2 }
0x13fa   :  { %v3509_v51 = vpop.f32.mrf.mxu0 }
0x13fb   :  { %v1071_v52 = vadd.f32 %v1069_v50, %v4219_v30  ;;  %v1080_v30 = vrot.slane %v981_v43, 6 }
0x13fd   :  { %3785 = vtanh.f32 %v1071_v52  ;;  %v3217_v54 = vmul.f32 -1.442695, %v1071_v52 }
0x13ff   :  { %3787 = vpow2.f32 %v3217_v54 }
0x1400   :  { %v1271_v9 = vpop.f32.mrf.mxu0 }
0x1402   :  { %v3531_v18 = vpop.f32.mrf.mxu0 }
0x140a   :  { %v3786_v53 = vpop.eup %3785 }
0x140b   :  { %1084 = vrot.lane.b32.xlu0 %v3786_v53, %s4008_s18 }
0x140c   :  { %v3788_v55 = vpop.eup %3787 }
0x140d   :  { %v1075_v56 = vadd.f32 1.0, %v3788_v55 }
0x140f   :  { %3789 = vrcp.f32 %v1075_v56 }
0x141c   :  { %v3790_v57 = vpop.eup %3789 }
0x141d   :  { %v1082_v60 = vmul.f32 %v3790_v57, %v1080_v30 }
0x147d   :  { %v1085_v58 = vpop.permute.xlu0 %1084 }
0x147e   :  { %v1087_v59 = vmul.f32 %v3790_v57, %v1085_v58 }
0x1480   :  { %1089 = vrot.lane.b32.xlu1 %v1087_v59, %s4009_s11 }
0x1484   :  { %437 = vrot.lane.b32.xlu1 %v4244_v1, %s4009_s11 }
0x1488   :  { %661 = vrot.lane.b32.xlu1 %v4282_v47, %s4009_s11 }
0x148c   :  { %989 = vrot.lane.b32.xlu1 %v987_v32, %s4009_s11 }
0x14f2   :  { %v1090_v61 = vpop.permute.xlu1 %1089 }
0x14f3   :  { %v1092_v62 = vadd.f32 %v1090_v61, %v1082_v60 }
0x14f5   :  { %3791 = vtanh.f32 %v1092_v62 }
0x14f6   :  { %v438_v63 = vpop.permute.xlu1 %437 }
0x14f7   :  { %441 = vst.msk [vmem:[#allocation3] sm:$0xc] %vm440_vm4, %v438_v63 }
0x14fa   :  { %v662_v0 = vpop.permute.xlu1 %661 }
0x14fb   :  { %665 = vst.msk [vmem:[#allocation3] sm:$0xc0] %vm664_vm5, %v662_v0 }
0x14fe   :  { %v990_v1 = vpop.permute.xlu1 %989 }
0x14ff   :  { %992 = vst.msk [vmem:[#allocation3 + $0x8] sm:$0x30] %vm552_vm6, %v990_v1 }
0x1502   :  { %v3792_v47 = vpop.eup %3791 }
0x1503   :  { %1095 = vrot.lane.b32.xlu0 %v3792_v47, %s4008_s18 }
0x1507   :  { %549 = vrot.lane.b32.xlu0 %v4263_v26, %s4009_s11  ;;  %v3219_v26 = vld [vmem:[%s4741_s3 + $0x28] sm:$0xff] }
0x1508   :  { %3514 = vmatprep.subr.mxu1 %v3219_v26 }
0x1509   :  { %3515 = vmatpush3.msra.mxu1 %v3219_v26 }
0x150a   :  { %3516 = vmatprep.subr.mxu1 %v3218_v2 }
0x150b   :  { %878 = vrot.lane.b32.xlu0 %v4317_v23, %s4009_s11  ;;  %3517 = vmatpush3.msra.mxu1 %v3218_v2 }
0x150c   :  { %3532 = vmatprep.subr.mxu1 %v4006_v3 }
0x1575   :  { %v1096_v13 = vpop.permute.xlu0 %1095 }
0x1576   :  { %v1098_v4 = vmul.f32 %v3790_v57, %v1096_v13 }
0x1578   :  { %1100 = vrot.lane.b32.xlu0 %v1098_v4, %s4009_s11 }
0x1579   :  { %v550_v14 = vpop.permute.xlu0 %549 }
0x157a   :  { %553 = vst.msk [vmem:[#allocation3] sm:$0x30] %vm552_vm6, %v550_v14 }
0x157d   :  { %v879_v15 = vpop.permute.xlu0 %878 }
0x157e   :  { %881 = vst.msk [vmem:[#allocation3 + $0x8] sm:$0xc] %vm440_vm4, %v879_v15 }
0x1581   :  { %v1104_v7 = vld [vmem:[#allocation3] sm:$0xff] }
0x1582   :  { %3518 = vmatprep.mubr.msk.f32.mxu1 %vm144_vm3, %v1104_v7 }
0x15ea   :  { %v1101_v16 = vpop.permute.xlu0 %1100 }
0x15eb   :  { %1103 = vst.msk [vmem:[#allocation3 + $0x8] sm:$0xc0] %vm664_vm5, %v1101_v16 }
0x15f2   :  { %v1105_v17 = vld [vmem:[#allocation3 + $0x8] sm:$0xff] }
0x15f3   :  { %3519 = vmatmul.mubr.msk.f32.vlgmr.msra.gmra.mxu1 %vm144_vm3, %v1105_v17 }
0x15f4   :  { %3533 = vmatpush3.msra.mxu1 %v4352_v8  ;;  %3540 = vmatprep.mubr.msk.f32.mxu1 %vm4007_vm2, %v4006_v3 }
0x15f5   :  { %3534 = vmatprep.subr.mxu1 %v4006_v3 }
0x15f6   :  { %3535 = vmatpush3.msra.mxu1 %v4358_v10 }
0x15f7   :  { %3536 = vmatprep.subr.mxu1 %v4006_v3 }
0x15f8   :  { %3537 = vmatpush3.msra.mxu1 %v4361_v11 }
0x15f9   :  { %3538 = vmatprep.subr.mxu1 %v4006_v3 }
0x15fa   :  { %3539 = vmatpush3.msra.mxu1 %v4370_v12 }
0x15fb   :  { %3554 = vmatprep.subr.mxu1 %v4006_v3 }
0x16b3   :  { %v3520_v20 = vpop.f32.mrf.mxu1 }
0x16b4   :  { %v4405_v21 = vadd.f32 %v3520_v20, %v3223_v19 }
0x16b5   :  { %v1191_v22 = vpop.f32.mrf.mxu1 }
0x16b6   :  { %v4407_v23 = vadd.f32 %v3223_v19, %v1191_v22 }
0x16b8   :  { %v1275_v24 = vadd.f32 %v1271_v9, %v4407_v23 }
0x16ba   :  { %3793 = vtanh.f32 %v1275_v24  ;;  %v3226_v27 = vmul.f32 -1.442695, %v1275_v24 }
0x16bc   :  { %3795 = vpow2.f32 %v3226_v27 }
0x16c7   :  { %v3794_v25 = vpop.eup %3793 }
0x16c8   :  { %1285 = vrot.lane.b32.xlu1 %v3794_v25, %s4008_s18 }
0x16c9   :  { %v3796_v28 = vpop.eup %3795 }
0x16ca   :  { %v1279_v29 = vadd.f32 1.0, %v3796_v28 }
0x16cc   :  { %3797 = vrcp.f32 %v1279_v29 }
0x16d9   :  { %v3798_v31 = vpop.eup %3797 }
0x16da   :  { %v1283_v35 = vmul.f32 0.0, %v3798_v31 }
0x173a   :  { %v1286_v33 = vpop.permute.xlu1 %1285 }
0x173b   :  { %v1288_v34 = vmul.f32 %v3798_v31, %v1286_v33 }
0x173d   :  { %1290 = vrot.lane.b32.xlu0 %v1288_v34, %s4009_s11 }
0x17af   :  { %v1291_v36 = vpop.permute.xlu0 %1290 }
0x17b0   :  { %v1293_v37 = vadd.f32 %v1291_v36, %v1283_v35 }
0x17b2   :  { %3799 = vtanh.f32 %v1293_v37  ;;  %v1389_v53 = vrot.slane %v1293_v37, 6 }
0x17bf   :  { %v3800_v38 = vpop.eup %3799 }
0x17c0   :  { %1296 = vrot.lane.b32.xlu1 %v3800_v38, %s4008_s18 }
0x1832   :  { %v1297_v39 = vpop.permute.xlu1 %1296 }
0x1833   :  { %v1299_v40 = vmul.f32 %v3798_v31, %v1297_v39 }
0x1835   :  { %1301 = vrot.lane.b32.xlu0 %v1299_v40, %s4009_s11 }
0x18a7   :  { %v1302_v41 = vpop.permute.xlu0 %1301 }
0x18a8   :  { %1304 = vst.msk [vmem:[#allocation4] sm:$0x3] %vm72_vm0, %v1302_v41  ;;  %3541 = vmatmul.mubr.msk.f32.vlgmr.msra.gmra.mxu1 %vm144_vm3, %v1302_v41 }
0x18a9   :  { %3555 = vmatpush3.msra.mxu1 %v4352_v8  ;;  %3562 = vmatprep.mubr.msk.f32.mxu1 %vm4007_vm2, %v4006_v3 }
0x18aa   :  { %3556 = vmatprep.subr.mxu1 %v4006_v3 }
0x18ab   :  { %3557 = vmatpush3.msra.mxu1 %v4358_v10 }
0x18ac   :  { %3558 = vmatprep.subr.mxu1 %v4006_v3 }
0x18ad   :  { %3559 = vmatpush3.msra.mxu1 %v4361_v11 }
0x18ae   :  { %3560 = vmatprep.subr.mxu1 %v4006_v3 }
0x18af   :  { %3561 = vmatpush3.msra.mxu1 %v4370_v12 }
0x18b0   :  { %3576 = vmatprep.subr.mxu1 %v4006_v3 }
0x1968   :  { %v1373_v42 = vpop.f32.mrf.mxu1 }
0x1969   :  { %v1378_v43 = vrot.slane %v1373_v42, 6 }
0x196a   :  { %v3542_v44 = vpop.f32.mrf.mxu1 }
0x196b   :  { %v1380_v45 = vadd.f32 %v1378_v43, %v4407_v23 }
0x196d   :  { %3801 = vtanh.f32 %v1380_v45  ;;  %v3228_v46 = vmul.f32 -1.442695, %v1380_v45 }
0x196f   :  { %3803 = vpow2.f32 %v3228_v46 }
0x197a   :  { %v3802_v32 = vpop.eup %3801 }
0x197b   :  { %1393 = vrot.lane.b32.xlu1 %v3802_v32, %s4008_s18 }
0x197c   :  { %v3804_v48 = vpop.eup %3803 }
0x197d   :  { %v1384_v49 = vadd.f32 1.0, %v3804_v48 }
0x197f   :  { %3805 = vrcp.f32 %v1384_v49 }
0x198c   :  { %v3806_v50 = vpop.eup %3805 }
0x198d   :  { %v1391_v54 = vmul.f32 %v3806_v50, %v1389_v53 }
0x19ed   :  { %v1394_v51 = vpop.permute.xlu1 %1393 }
0x19ee   :  { %v1396_v52 = vmul.f32 %v3806_v50, %v1394_v51 }
0x19f0   :  { %1398 = vrot.lane.b32.xlu0 %v1396_v52, %s4009_s11 }
0x1a62   :  { %v1399_v55 = vpop.permute.xlu0 %1398 }
0x1a63   :  { %v1401_v56 = vadd.f32 %v1399_v55, %v1391_v54 }
0x1a65   :  { %3807 = vtanh.f32 %v1401_v56  ;;  %v1500_v4 = vrot.slane %v1401_v56, 6 }
0x1a72   :  { %v3808_v57 = vpop.eup %3807 }
0x1a73   :  { %1404 = vrot.lane.b32.xlu1 %v3808_v57, %s4008_s18 }
0x1ae5   :  { %v1405_v58 = vpop.permute.xlu1 %1404 }
0x1ae6   :  { %v4430_v59 = vmul.f32 %v3806_v50, %v1405_v58 }
0x1ae8   :  { %v1413_v30 = vrot.slane %v4430_v59, 2 }
0x1aea   :  { %1414 = vrot.lane.b32.xlu0 %v1413_v30, %s4009_s11 }
0x1b5c   :  { %v1415_v60 = vpop.permute.xlu0 %1414 }
0x1b5d   :  { %3552 = vmatmul.mubr.msk.f32.vlgmr.msra.gmra.mxu0 %vm144_vm3, %v1415_v60 }
0x1b5e   :  { %3566 = vmatpush3.msra.mxu0 %v4352_v8  ;;  %3573 = vmatprep.mubr.msk.f32.mxu0 %vm4007_vm2, %v4006_v3 }
0x1b5f   :  { %3567 = vmatprep.subr.mxu0 %v4006_v3 }
0x1b60   :  { %3568 = vmatpush3.msra.mxu0 %v4358_v10 }
0x1b61   :  { %3569 = vmatprep.subr.mxu0 %v4006_v3 }
0x1b62   :  { %3570 = vmatpush3.msra.mxu0 %v4361_v11 }
0x1b63   :  { %3571 = vmatprep.subr.mxu0 %v4006_v3 }
0x1b64   :  { %3572 = vmatpush3.msra.mxu0 %v4370_v12 }
0x1b65   :  { %3587 = vmatprep.subr.mxu0 %v4006_v3 }
0x1c1d   :  { %v1484_v61 = vpop.f32.mrf.mxu0 }
0x1c1e   :  { %v1489_v62 = vrot.slane %v1484_v61, 4 }
0x1c1f   :  { %v3553_v63 = vpop.f32.mrf.mxu0 }
0x1c20   :  { %v1491_v0 = vadd.f32 %v1489_v62, %v4407_v23 }
0x1c22   :  { %3809 = vtanh.f32 %v1491_v0  ;;  %v3230_v47 = vmul.f32 -1.442695, %v1491_v0 }
0x1c24   :  { %3811 = vpow2.f32 %v3230_v47 }
0x1c2f   :  { %v3810_v1 = vpop.eup %3809 }
0x1c30   :  { %1504 = vrot.lane.b32.xlu1 %v3810_v1, %s4008_s18 }
0x1c31   :  { %v3812_v5 = vpop.eup %3811 }
0x1c32   :  { %v1495_v6 = vadd.f32 1.0, %v3812_v5 }
0x1c34   :  { %3813 = vrcp.f32 %v1495_v6 }
0x1c41   :  { %v3814_v26 = vpop.eup %3813 }
0x1c42   :  { %v1502_v14 = vmul.f32 %v3814_v26, %v1500_v4 }
0x1ca2   :  { %v1505_v2 = vpop.permute.xlu1 %1504 }
0x1ca3   :  { %v1507_v13 = vmul.f32 %v3814_v26, %v1505_v2 }
0x1ca5   :  { %1509 = vrot.lane.b32.xlu0 %v1507_v13, %s4009_s11 }
0x1d17   :  { %v1510_v15 = vpop.permute.xlu0 %1509 }
0x1d18   :  { %v1512_v7 = vadd.f32 %v1510_v15, %v1502_v14 }
0x1d1a   :  { %3815 = vtanh.f32 %v1512_v7  ;;  %v1611_v36 = vrot.slane %v1512_v7, 6 }
0x1d27   :  { %v3816_v16 = vpop.eup %3815 }
0x1d28   :  { %1515 = vrot.lane.b32.xlu1 %v3816_v16, %s4008_s18 }
0x1d9a   :  { %v1516_v17 = vpop.permute.xlu1 %1515 }
0x1d9b   :  { %v4449_v9 = vmul.f32 %v3814_v26, %v1516_v17 }
0x1d9d   :  { %v1524_v18 = vrot.slane %v4449_v9, 4 }
0x1d9f   :  { %1525 = vrot.lane.b32.xlu0 %v1524_v18, %s4009_s11 }
0x1e11   :  { %v1526_v19 = vpop.permute.xlu0 %1525 }
0x1e12   :  { %3563 = vmatmul.mubr.msk.f32.vlgmr.msra.gmra.mxu1 %vm144_vm3, %v1526_v19 }
0x1e13   :  { %3577 = vmatpush3.msra.mxu1 %v4352_v8  ;;  %3584 = vmatprep.mubr.msk.f32.mxu1 %vm4007_vm2, %v4006_v3 }
0x1e14   :  { %3578 = vmatprep.subr.mxu1 %v4006_v3 }
0x1e15   :  { %3579 = vmatpush3.msra.mxu1 %v4358_v10 }
0x1e16   :  { %3580 = vmatprep.subr.mxu1 %v4006_v3 }
0x1e17   :  { %3581 = vmatpush3.msra.mxu1 %v4361_v11 }
0x1e18   :  { %3582 = vmatprep.subr.mxu1 %v4006_v3 }
0x1e19   :  { %3583 = vmatpush3.msra.mxu1 %v4370_v12 }
0x1e1a   :  { %3598 = vmatprep.subr.mxu1 %v4006_v3 }
0x1ed2   :  { %v1595_v20 = vpop.f32.mrf.mxu1 }
0x1ed3   :  { %v1600_v22 = vrot.slane %v1595_v20, 2 }
0x1ed4   :  { %v3564_v24 = vpop.f32.mrf.mxu1 }
0x1ed5   :  { %v1602_v25 = vadd.f32 %v1600_v22, %v4407_v23 }
0x1ed7   :  { %3817 = vtanh.f32 %v1602_v25  ;;  %v3232_v28 = vmul.f32 -1.442695, %v1602_v25 }
0x1ed9   :  { %3819 = vpow2.f32 %v3232_v28 }
0x1ee4   :  { %v3818_v27 = vpop.eup %3817 }
0x1ee5   :  { %1615 = vrot.lane.b32.xlu1 %v3818_v27, %s4008_s18 }
0x1ee6   :  { %v3820_v29 = vpop.eup %3819 }
0x1ee7   :  { %v1606_v31 = vadd.f32 1.0, %v3820_v29 }
0x1ee9   :  { %3821 = vrcp.f32 %v1606_v31 }
0x1ef6   :  { %v3822_v33 = vpop.eup %3821 }
0x1ef7   :  { %v1613_v37 = vmul.f32 %v3822_v33, %v1611_v36 }
0x1f57   :  { %v1616_v34 = vpop.permute.xlu1 %1615 }
0x1f58   :  { %v1618_v35 = vmul.f32 %v3822_v33, %v1616_v34 }
0x1f5a   :  { %1620 = vrot.lane.b32.xlu0 %v1618_v35, %s4009_s11 }
0x1fcc   :  { %v1621_v38 = vpop.permute.xlu0 %1620 }
0x1fcd   :  { %v1623_v39 = vadd.f32 %v1621_v38, %v1613_v37 }
0x1fcf   :  { %3823 = vtanh.f32 %v1623_v39  ;;  %v1719_v54 = vrot.slane %v1623_v39, 6 }
0x1fdc   :  { %v3824_v23 = vpop.eup %3823 }
0x1fdd   :  { %1626 = vrot.lane.b32.xlu1 %v3824_v23, %s4008_s18 }
0x204f   :  { %v1627_v40 = vpop.permute.xlu1 %1626 }
0x2050   :  { %v4468_v41 = vmul.f32 %v3822_v33, %v1627_v40 }
0x2052   :  { %v1635_v42 = vrot.slane %v4468_v41, 6 }
0x2054   :  { %1636 = vrot.lane.b32.xlu0 %v1635_v42, %s4009_s11 }
0x20c6   :  { %v1637_v43 = vpop.permute.xlu0 %1636 }
0x20c7   :  { %3574 = vmatmul.mubr.msk.f32.vlgmr.msra.gmra.mxu0 %vm144_vm3, %v1637_v43 }
0x20c8   :  { %3588 = vmatpush3.msra.mxu0 %v4352_v8  ;;  %3595 = vmatprep.mubr.msk.f32.mxu0 %vm4007_vm2, %v4006_v3 }
0x20c9   :  { %3589 = vmatprep.subr.mxu0 %v4006_v3 }
0x20ca   :  { %3590 = vmatpush3.msra.mxu0 %v4358_v10 }
0x20cb   :  { %3591 = vmatprep.subr.mxu0 %v4006_v3 }
0x20cc   :  { %3592 = vmatpush3.msra.mxu0 %v4361_v11 }
0x20cd   :  { %3593 = vmatprep.subr.mxu0 %v4006_v3 }
0x20ce   :  { %3594 = vmatpush3.msra.mxu0 %v4370_v12 }
0x2187   :  { %v1706_v44 = vpop.f32.mrf.mxu0 }
0x2188   :  { %v1710_v45 = vadd.f32 %v1706_v44, %v4405_v21 }
0x2189   :  { %v3575_v32 = vpop.f32.mrf.mxu0 }
0x218a   :  { %3825 = vtanh.f32 %v1710_v45  ;;  %v3234_v48 = vmul.f32 -1.442695, %v1710_v45 }
0x218c   :  { %3827 = vpow2.f32 %v3234_v48 }
0x2197   :  { %v3826_v46 = vpop.eup %3825 }
0x2198   :  { %1723 = vrot.lane.b32.xlu1 %v3826_v46, %s4008_s18 }
0x2199   :  { %v3828_v49 = vpop.eup %3827 }
0x219a   :  { %v1714_v50 = vadd.f32 1.0, %v3828_v49 }
0x219c   :  { %3829 = vrcp.f32 %v1714_v50 }
0x21a9   :  { %v3830_v51 = vpop.eup %3829 }
0x21aa   :  { %v1721_v55 = vmul.f32 %v3830_v51, %v1719_v54 }
0x220a   :  { %v1724_v52 = vpop.permute.xlu1 %1723 }
0x220b   :  { %v1726_v53 = vmul.f32 %v3830_v51, %v1724_v52 }
0x220d   :  { %1728 = vrot.lane.b32.xlu0 %v1726_v53, %s4009_s11 }
0x227f   :  { %v1729_v56 = vpop.permute.xlu0 %1728 }
0x2280   :  { %v1731_v57 = vadd.f32 %v1729_v56, %v1721_v55 }
0x2282   :  { %3831 = vtanh.f32 %v1731_v57 }
0x228f   :  { %v3832_v58 = vpop.eup %3831 }
0x2290   :  { %1734 = vrot.lane.b32.xlu1 %v3832_v58, %s4008_s18 }
0x2302   :  { %v1735_v30 = vpop.permute.xlu1 %1734 }
0x2303   :  { %v1737_v60 = vmul.f32 %v3830_v51, %v1735_v30 }
0x2305   :  { %1739 = vrot.lane.b32.xlu0 %v1737_v60, %s4009_s11  ;;  %v3243_v60 = vld [vmem:[%s4741_s3 + $0x50] sm:$0xff] }
0x2377   :  { %v1740_v61 = vpop.permute.xlu0 %1739 }
0x2378   :  { %1742 = vst.msk [vmem:[#allocation4 + $0x8] sm:$0x3] %vm72_vm0, %v1740_v61  ;;  %3585 = vmatmul.mubr.msk.f32.vlgmr.msra.gmra.mxu1 %vm144_vm3, %v1740_v61  ;;  %v4538_v61 = vld [vmem:[#allocation10 + $0x58] sm:$0xff] }
0x2379   :  { %3599 = vmatpush3.msra.mxu1 %v4352_v8  ;;  %3606 = vmatprep.mubr.msk.f32.mxu1 %vm4007_vm2, %v4006_v3 }
0x237a   :  { %3600 = vmatprep.subr.mxu1 %v4006_v3 }
0x237b   :  { %3601 = vmatpush3.msra.mxu1 %v4358_v10 }
0x237c   :  { %3602 = vmatprep.subr.mxu1 %v4006_v3 }
0x237d   :  { %3603 = vmatpush3.msra.mxu1 %v4361_v11 }
0x237e   :  { %3604 = vmatprep.subr.mxu1 %v4006_v3 }
0x237f   :  { %3605 = vmatpush3.msra.mxu1 %v4370_v12  ;;  %v1827_v12 = vrot.slane %v1731_v57, 6 }
0x2380   :  { %3620 = vmatprep.subr.mxu1 %v4006_v3 }
0x2438   :  { %v1811_v62 = vpop.f32.mrf.mxu1 }
0x2439   :  { %v1816_v63 = vrot.slane %v1811_v62, 6  ;;  %v4544_v62 = vld [vmem:[#allocation10 + $0x50] sm:$0xff] }
0x243a   :  { %v3586_v8 = vpop.f32.mrf.mxu1 }
0x243b   :  { %v1818_v0 = vadd.f32 %v1816_v63, %v4405_v21  ;;  %v4547_v63 = vld [vmem:[#allocation10 + $0x48] sm:$0xff]  ;;  %v3241_v8 = vld [vmem:[%s4741_s3 + $0x40] sm:$0xff] }
0x243d   :  { %3833 = vtanh.f32 %v1818_v0  ;;  %v3236_v10 = vmul.f32 -1.442695, %v1818_v0  ;;  %v4556_v0 = vld [vmem:[#allocation10 + $0x40] sm:$0xff] }
0x243f   :  { %3835 = vpow2.f32 %v3236_v10 }
0x244a   :  { %v3834_v1 = vpop.eup %3833 }
0x244b   :  { %1831 = vrot.lane.b32.xlu1 %v3834_v1, %s4008_s18 }
0x244c   :  { %v3836_v47 = vpop.eup %3835 }
0x244d   :  { %v1822_v5 = vadd.f32 1.0, %v3836_v47 }
0x244f   :  { %3837 = vrcp.f32 %v1822_v5 }
0x245c   :  { %v3838_v11 = vpop.eup %3837 }
0x245d   :  { %v1829_v2 = vmul.f32 %v3838_v11, %v1827_v12 }
0x24bd   :  { %v1832_v6 = vpop.permute.xlu1 %1831 }
0x24be   :  { %v1834_v26 = vmul.f32 %v3838_v11, %v1832_v6 }
0x24c0   :  { %1836 = vrot.lane.b32.xlu0 %v1834_v26, %s4009_s11 }
0x2532   :  { %v1837_v13 = vpop.permute.xlu0 %1836 }
0x2533   :  { %v1839_v4 = vadd.f32 %v1837_v13, %v1829_v2  ;;  %v3246_v13 = vld [vmem:[%s4743_s5 + $0x2] ss:$0 sm:$0xff] }
0x2535   :  { %3839 = vtanh.f32 %v1839_v4  ;;  %v1938_v34 = vrot.slane %v1839_v4, 6 }
0x2542   :  { %v3840_v14 = vpop.eup %3839 }
0x2543   :  { %1842 = vrot.lane.b32.xlu1 %v3840_v14, %s4008_s18 }
0x25b5   :  { %v1843_v15 = vpop.permute.xlu1 %1842 }
0x25b6   :  { %v4503_v7 = vmul.f32 %v3838_v11, %v1843_v15 }
0x25b8   :  { %v1851_v16 = vrot.slane %v4503_v7, 2 }
0x25ba   :  { %1852 = vrot.lane.b32.xlu0 %v1851_v16, %s4009_s11 }
0x262c   :  { %v1853_v17 = vpop.permute.xlu0 %1852 }
0x262d   :  { %3596 = vmatmul.mubr.msk.f32.vlgmr.msra.gmra.mxu0 %vm144_vm3, %v1853_v17 }
0x26ed   :  { %v1922_v18 = vpop.f32.mrf.mxu0 }
0x26ee   :  { %v1927_v19 = vrot.slane %v1922_v18, 4 }
0x26ef   :  { %v3597_v20 = vpop.f32.mrf.mxu0 }
0x26f0   :  { %v1929_v22 = vadd.f32 %v1927_v19, %v4405_v21 }
0x26f2   :  { %3841 = vtanh.f32 %v1929_v22  ;;  %v3238_v25 = vmul.f32 -1.442695, %v1929_v22 }
0x26f4   :  { %3843 = vpow2.f32 %v3238_v25 }
0x26ff   :  { %v3842_v24 = vpop.eup %3841 }
0x2700   :  { %1942 = vrot.lane.b32.xlu1 %v3842_v24, %s4008_s18 }
0x2701   :  { %v3844_v27 = vpop.eup %3843 }
0x2702   :  { %v1933_v28 = vadd.f32 1.0, %v3844_v27 }
0x2704   :  { %3845 = vrcp.f32 %v1933_v28 }
0x2711   :  { %v3846_v29 = vpop.eup %3845 }
0x2712   :  { %v1940_v35 = vmul.f32 %v3846_v29, %v1938_v34 }
0x2772   :  { %v1943_v31 = vpop.permute.xlu1 %1942 }
0x2773   :  { %v1945_v33 = vmul.f32 %v3846_v29, %v1943_v31 }
0x2775   :  { %1947 = vrot.lane.b32.xlu0 %v1945_v33, %s4009_s11 }
0x27e7   :  { %v1948_v36 = vpop.permute.xlu0 %1947 }
0x27e8   :  { %v1950_v37 = vadd.f32 %v1948_v36, %v1940_v35 }
0x27ea   :  { %3847 = vtanh.f32 %v1950_v37 }
0x27f7   :  { %v3848_v38 = vpop.eup %3847 }
0x27f8   :  { %1953 = vrot.lane.b32.xlu1 %v3848_v38, %s4008_s18 }
0x286a   :  { %v1954_v39 = vpop.permute.xlu1 %1953 }
0x286b   :  { %v1956_v23 = vmul.f32 %v3846_v29, %v1954_v39 }
0x286d   :  { %v1962_v40 = vrot.slane %v1956_v23, 4 }
0x286f   :  { %1963 = vrot.lane.b32.xlu0 %v1962_v40, %s4009_s11 }
0x28e1   :  { %v1964_v42 = vpop.permute.xlu0 %1963 }
0x28e2   :  { %3607 = vmatmul.mubr.msk.f32.vlgmr.msra.gmra.mxu1 %vm144_vm3, %v1964_v42 }
0x28e3   :  { %3628 = vmatprep.mubr.msk.f32.mxu1 %vm4007_vm2, %v4006_v3  ;;  %3621 = vmatpush3.msra.mxu1 %v4538_v61 }
0x28e4   :  { %3622 = vmatprep.subr.mxu1 %v4006_v3 }
0x28e5   :  { %3623 = vmatpush3.msra.mxu1 %v4544_v62 }
0x28e6   :  { %3624 = vmatprep.subr.mxu1 %v4006_v3 }
0x28e7   :  { %3625 = vmatpush3.msra.mxu1 %v4547_v63 }
0x28e8   :  { %3626 = vmatprep.subr.mxu1 %v4006_v3 }
0x28e9   :  { %3627 = vmatpush3.msra.mxu1 %v4556_v0 }
0x28ea   :  { %3629 = vmatmul.mubr.f32.vlgmr.msra.gmra.mxu1 %v4006_v3  ;;  %3642 = vmatprep.subr.mxu1 %v4006_v3 }
0x28eb   :  { %3643 = vmatpush3.msra.mxu1 %v4538_v61  ;;  %3650 = vmatprep.mubr.msk.f32.mxu1 %vm4007_vm2, %v4006_v3 }
0x28ec   :  { %3644 = vmatprep.subr.mxu1 %v4006_v3 }
0x28ed   :  { %3645 = vmatpush3.msra.mxu1 %v4544_v62 }
0x28ee   :  { %3646 = vmatprep.subr.mxu1 %v4006_v3 }
0x28ef   :  { %3647 = vmatpush3.msra.mxu1 %v4547_v63 }
0x28f0   :  { %3648 = vmatprep.subr.mxu1 %v4006_v3 }
0x28f1   :  { %3649 = vmatpush3.msra.mxu1 %v4556_v0 }
0x28f2   :  { %3664 = vmatprep.subr.mxu1 %v4006_v3 }
0x29a2   :  { %v2033_v43 = vpop.f32.mrf.mxu1 }
0x29a3   :  { %v2038_v44 = vrot.slane %v2033_v43, 2 }
0x29a4   :  { %v3608_v45 = vpop.f32.mrf.mxu1 }
0x29a5   :  { %v2040_v32 = vadd.f32 %v2038_v44, %v4405_v21  ;;  %v2049_v21 = vrot.slane %v1950_v37, 6 }
0x29a7   :  { %3849 = vtanh.f32 %v2040_v32  ;;  %v3240_v48 = vmul.f32 -1.442695, %v2040_v32 }
0x29a9   :  { %3851 = vpow2.f32 %v3240_v48 }
0x29aa   :  { %v2240_v12 = vpop.f32.mrf.mxu1 }
0x29ac   :  { %v3630_v2 = vpop.f32.mrf.mxu1 }
0x29b4   :  { %v3850_v46 = vpop.eup %3849 }
0x29b5   :  { %2053 = vrot.lane.b32.xlu1 %v3850_v46, %s4008_s18 }
0x29b6   :  { %v3852_v49 = vpop.eup %3851 }
0x29b7   :  { %v2044_v50 = vadd.f32 1.0, %v3852_v49 }
0x29b9   :  { %3853 = vrcp.f32 %v2044_v50 }
0x29c6   :  { %v3854_v51 = vpop.eup %3853 }
0x29c7   :  { %v2051_v54 = vmul.f32 %v3854_v51, %v2049_v21 }
0x2a27   :  { %v2054_v52 = vpop.permute.xlu1 %2053 }
0x2a28   :  { %v2056_v53 = vmul.f32 %v3854_v51, %v2054_v52 }
0x2a2a   :  { %2058 = vrot.lane.b32.xlu0 %v2056_v53, %s4009_s11 }
0x2a2e   :  { %1409 = vrot.lane.b32.xlu0 %v4430_v59, %s4009_s11 }
0x2a32   :  { %1631 = vrot.lane.b32.xlu0 %v4468_v41, %s4009_s11  ;;  %v3244_v41 = vld [vmem:[%s4741_s3 + $0x58] sm:$0xff] }
0x2a33   :  { %3609 = vmatprep.subr.mxu0 %v3244_v41 }
0x2a34   :  { %3610 = vmatpush3.msra.mxu0 %v3244_v41 }
0x2a35   :  { %3611 = vmatprep.subr.mxu0 %v3243_v60 }
0x2a36   :  { %1958 = vrot.lane.b32.xlu0 %v1956_v23, %s4009_s11  ;;  %3612 = vmatpush3.msra.mxu0 %v3243_v60 }
0x2a9c   :  { %v2059_v55 = vpop.permute.xlu0 %2058 }
0x2a9d   :  { %v2061_v56 = vadd.f32 %v2059_v55, %v2051_v54 }
0x2a9f   :  { %3855 = vtanh.f32 %v2061_v56 }
0x2aa0   :  { %v1410_v57 = vpop.permute.xlu0 %1409 }
0x2aa1   :  { %1412 = vst.msk [vmem:[#allocation4] sm:$0xc] %vm440_vm4, %v1410_v57 }
0x2aa4   :  { %v1632_v58 = vpop.permute.xlu0 %1631 }
0x2aa5   :  { %1634 = vst.msk [vmem:[#allocation4] sm:$0xc0] %vm664_vm5, %v1632_v58 }
0x2aa8   :  { %v1959_v30 = vpop.permute.xlu0 %1958 }
0x2aa9   :  { %1961 = vst.msk [vmem:[#allocation4 + $0x8] sm:$0x30] %vm552_vm6, %v1959_v30 }
0x2aac   :  { %v3856_v59 = vpop.eup %3855 }
0x2aad   :  { %2064 = vrot.lane.b32.xlu1 %v3856_v59, %s4008_s18 }
0x2ab1   :  { %1520 = vrot.lane.b32.xlu1 %v4449_v9, %s4009_s11  ;;  %v3242_v9 = vld [vmem:[%s4741_s3 + $0x48] sm:$0xff] }
0x2ab2   :  { %3613 = vmatprep.subr.mxu0 %v3242_v9 }
0x2ab3   :  { %3614 = vmatpush3.msra.mxu0 %v3242_v9 }
0x2ab4   :  { %3615 = vmatprep.subr.mxu0 %v3241_v8 }
0x2ab5   :  { %1847 = vrot.lane.b32.xlu1 %v4503_v7, %s4009_s11  ;;  %3616 = vmatpush3.msra.mxu0 %v3241_v8 }
0x2ab6   :  { %3631 = vmatprep.subr.mxu0 %v4006_v3 }
0x2b1f   :  { %v2065_v1 = vpop.permute.xlu1 %2064 }
0x2b20   :  { %v2067_v10 = vmul.f32 %v3854_v51, %v2065_v1 }
0x2b22   :  { %2069 = vrot.lane.b32.xlu1 %v2067_v10, %s4009_s11 }
0x2b23   :  { %v1521_v47 = vpop.permute.xlu1 %1520 }
0x2b24   :  { %1523 = vst.msk [vmem:[#allocation4] sm:$0x30] %vm552_vm6, %v1521_v47 }
0x2b27   :  { %v1848_v5 = vpop.permute.xlu1 %1847 }
0x2b28   :  { %1850 = vst.msk [vmem:[#allocation4 + $0x8] sm:$0xc] %vm440_vm4, %v1848_v5 }
0x2b2b   :  { %v2073_v11 = vld [vmem:[#allocation4] sm:$0xff] }
0x2b2c   :  { %3617 = vmatprep.mubr.msk.f32.mxu0 %vm144_vm3, %v2073_v11 }
0x2b94   :  { %v2070_v6 = vpop.permute.xlu1 %2069 }
0x2b95   :  { %2072 = vst.msk [vmem:[#allocation4 + $0x8] sm:$0xc0] %vm664_vm5, %v2070_v6 }
0x2b9c   :  { %v2074_v26 = vld [vmem:[#allocation4 + $0x8] sm:$0xff] }
0x2b9d   :  { %3618 = vmatmul.mubr.msk.f32.vlgmr.msra.gmra.mxu0 %vm144_vm3, %v2074_v26 }
0x2b9e   :  { %3632 = vmatpush3.msra.mxu0 %v4538_v61  ;;  %3639 = vmatprep.mubr.msk.f32.mxu0 %vm4007_vm2, %v4006_v3 }
0x2b9f   :  { %3633 = vmatprep.subr.mxu0 %v4006_v3 }
0x2ba0   :  { %3634 = vmatpush3.msra.mxu0 %v4544_v62 }
0x2ba1   :  { %3635 = vmatprep.subr.mxu0 %v4006_v3 }
0x2ba2   :  { %3636 = vmatpush3.msra.mxu0 %v4547_v63 }
0x2ba3   :  { %3637 = vmatprep.subr.mxu0 %v4006_v3 }
0x2ba4   :  { %3638 = vmatpush3.msra.mxu0 %v4556_v0 }
0x2ba5   :  { %3653 = vmatprep.subr.mxu0 %v4006_v3 }
0x2c5d   :  { %v3619_v4 = vpop.f32.mrf.mxu0 }
0x2c5e   :  { %v4591_v14 = vadd.f32 %v3619_v4, %v3246_v13 }
0x2c5f   :  { %v2160_v15 = vpop.f32.mrf.mxu0 }
0x2c60   :  { %v4593_v7 = vadd.f32 %v3246_v13, %v2160_v15 }
0x2c62   :  { %v2244_v16 = vadd.f32 %v2240_v12, %v4593_v7 }
0x2c64   :  { %3857 = vtanh.f32 %v2244_v16  ;;  %v3249_v18 = vmul.f32 -1.442695, %v2244_v16 }
0x2c66   :  { %3859 = vpow2.f32 %v3249_v18 }
0x2c71   :  { %v3858_v17 = vpop.eup %3857 }
0x2c72   :  { %2254 = vrot.lane.b32.xlu0 %v3858_v17, %s4008_s18 }
0x2c73   :  { %v3860_v19 = vpop.eup %3859 }
0x2c74   :  { %v2248_v20 = vadd.f32 1.0, %v3860_v19 }
0x2c76   :  { %3861 = vrcp.f32 %v2248_v20 }
0x2c83   :  { %v3862_v22 = vpop.eup %3861 }
0x2c84   :  { %v2252_v27 = vmul.f32 0.0, %v3862_v22 }
0x2ce4   :  { %v2255_v24 = vpop.permute.xlu0 %2254 }
0x2ce5   :  { %v2257_v25 = vmul.f32 %v3862_v22, %v2255_v24 }
0x2ce7   :  { %2259 = vrot.lane.b32.xlu1 %v2257_v25, %s4009_s11 }
0x2d59   :  { %v2260_v28 = vpop.permute.xlu1 %2259 }
0x2d5a   :  { %v2262_v29 = vadd.f32 %v2260_v28, %v2252_v27 }
0x2d5c   :  { %3863 = vtanh.f32 %v2262_v29  ;;  %v2360_v46 = vrot.slane %v2262_v29, 6 }
0x2d69   :  { %v3864_v31 = vpop.eup %3863 }
0x2d6a   :  { %2265 = vrot.lane.b32.xlu0 %v3864_v31, %s4008_s18 }
0x2ddc   :  { %v2266_v33 = vpop.permute.xlu0 %2265 }
0x2ddd   :  { %v2268_v34 = vmul.f32 %v3862_v22, %v2266_v33 }
0x2ddf   :  { %2270 = vrot.lane.b32.xlu1 %v2268_v34, %s4009_s11 }
0x2e51   :  { %v2271_v35 = vpop.permute.xlu1 %2270 }
0x2e52   :  { %2273 = vst.msk [vmem:[#allocation5] sm:$0x1] %vm77_vm1, %v2271_v35  ;;  %3640 = vmatmul.mubr.msk.f32.vlgmr.msra.gmra.mxu0 %vm144_vm3, %v2271_v35 }
0x2e53   :  { %2275 = vst.msk [vmem:[#allocation5 + $0x7] sm:$0x2] %vm2274_vm7, %v2271_v35  ;;  %3654 = vmatpush3.msra.mxu0 %v4538_v61  ;;  %3661 = vmatprep.mubr.msk.f32.mxu0 %vm4007_vm2, %v4006_v3 }
0x2e54   :  { %3655 = vmatprep.subr.mxu0 %v4006_v3 }
0x2e55   :  { %3656 = vmatpush3.msra.mxu0 %v4544_v62 }
0x2e56   :  { %3657 = vmatprep.subr.mxu0 %v4006_v3 }
0x2e57   :  { %3658 = vmatpush3.msra.mxu0 %v4547_v63 }
0x2e58   :  { %3659 = vmatprep.subr.mxu0 %v4006_v3 }
0x2e59   :  { %3660 = vmatpush3.msra.mxu0 %v4556_v0 }
0x2e5a   :  { %3675 = vmatprep.subr.mxu0 %v4006_v3 }
0x2f12   :  { %v2344_v36 = vpop.f32.mrf.mxu0 }
0x2f13   :  { %v2349_v37 = vrot.slane %v2344_v36, 6 }
0x2f14   :  { %v3641_v38 = vpop.f32.mrf.mxu0 }
0x2f15   :  { %v2351_v39 = vadd.f32 %v2349_v37, %v4593_v7 }
0x2f17   :  { %3865 = vtanh.f32 %v2351_v39  ;;  %v3251_v40 = vmul.f32 -1.442695, %v2351_v39 }
0x2f19   :  { %3867 = vpow2.f32 %v3251_v40 }
0x2f24   :  { %v3866_v23 = vpop.eup %3865 }
0x2f25   :  { %2364 = vrot.lane.b32.xlu0 %v3866_v23, %s4008_s18 }
0x2f26   :  { %v3868_v42 = vpop.eup %3867 }
0x2f27   :  { %v2355_v43 = vadd.f32 1.0, %v3868_v42 }
0x2f29   :  { %3869 = vrcp.f32 %v2355_v43 }
0x2f36   :  { %v3870_v44 = vpop.eup %3869 }
0x2f37   :  { %v2362_v48 = vmul.f32 %v3870_v44, %v2360_v46 }
0x2f97   :  { %v2365_v45 = vpop.permute.xlu0 %2364 }
0x2f98   :  { %v2367_v32 = vmul.f32 %v3870_v44, %v2365_v45 }
0x2f9a   :  { %2369 = vrot.lane.b32.xlu1 %v2367_v32, %s4009_s11 }
0x300c   :  { %v2370_v49 = vpop.permute.xlu1 %2369 }
0x300d   :  { %v2372_v50 = vadd.f32 %v2370_v49, %v2362_v48 }
0x300f   :  { %3871 = vtanh.f32 %v2372_v50  ;;  %v2474_v10 = vrot.slane %v2372_v50, 6 }
0x301c   :  { %v3872_v51 = vpop.eup %3871 }
0x301d   :  { %2375 = vrot.lane.b32.xlu0 %v3872_v51, %s4008_s18 }
0x308f   :  { %v2376_v52 = vpop.permute.xlu0 %2375 }
0x3090   :  { %v4617_v53 = vmul.f32 %v3870_v44, %v2376_v52 }
0x3092   :  { %v2387_v21 = vrot.slane %v4617_v53, 2 }
0x3094   :  { %2388 = vrot.lane.b32.xlu1 %v2387_v21, %s4009_s11 }
0x3106   :  { %v2389_v54 = vpop.permute.xlu1 %2388 }
0x3107   :  { %3651 = vmatmul.mubr.msk.f32.vlgmr.msra.gmra.mxu1 %vm144_vm3, %v2389_v54 }
0x3108   :  { %3665 = vmatpush3.msra.mxu1 %v4538_v61  ;;  %3672 = vmatprep.mubr.msk.f32.mxu1 %vm4007_vm2, %v4006_v3 }
0x3109   :  { %3666 = vmatprep.subr.mxu1 %v4006_v3 }
0x310a   :  { %3667 = vmatpush3.msra.mxu1 %v4544_v62 }
0x310b   :  { %3668 = vmatprep.subr.mxu1 %v4006_v3 }
0x310c   :  { %3669 = vmatpush3.msra.mxu1 %v4547_v63 }
0x310d   :  { %3670 = vmatprep.subr.mxu1 %v4006_v3 }
0x310e   :  { %3671 = vmatpush3.msra.mxu1 %v4556_v0 }
0x310f   :  { %3686 = vmatprep.subr.mxu1 %v4006_v3 }
0x31c7   :  { %v2458_v55 = vpop.f32.mrf.mxu1 }
0x31c8   :  { %v2463_v56 = vrot.slane %v2458_v55, 4 }
0x31c9   :  { %v3652_v57 = vpop.f32.mrf.mxu1 }
0x31ca   :  { %v2465_v58 = vadd.f32 %v2463_v56, %v4593_v7 }
0x31cc   :  { %3873 = vtanh.f32 %v2465_v58  ;;  %v3253_v59 = vmul.f32 -1.442695, %v2465_v58 }
0x31ce   :  { %3875 = vpow2.f32 %v3253_v59 }
0x31d9   :  { %v3874_v30 = vpop.eup %3873 }
0x31da   :  { %2478 = vrot.lane.b32.xlu0 %v3874_v30, %s4008_s18 }
0x31db   :  { %v3876_v41 = vpop.eup %3875 }
0x31dc   :  { %v2469_v60 = vadd.f32 1.0, %v3876_v41 }
0x31de   :  { %3877 = vrcp.f32 %v2469_v60 }
0x31eb   :  { %v3878_v9 = vpop.eup %3877 }
0x31ec   :  { %v2476_v47 = vmul.f32 %v3878_v9, %v2474_v10 }
0x324c   :  { %v2479_v8 = vpop.permute.xlu0 %2478 }
0x324d   :  { %v2481_v1 = vmul.f32 %v3878_v9, %v2479_v8 }
0x324f   :  { %2483 = vrot.lane.b32.xlu1 %v2481_v1, %s4009_s11 }
0x32c1   :  { %v2484_v5 = vpop.permute.xlu1 %2483 }
0x32c2   :  { %v2486_v11 = vadd.f32 %v2484_v5, %v2476_v47 }
0x32c4   :  { %3879 = vtanh.f32 %v2486_v11  ;;  %v2588_v28 = vrot.slane %v2486_v11, 6 }
0x32d1   :  { %v3880_v6 = vpop.eup %3879 }
0x32d2   :  { %2489 = vrot.lane.b32.xlu0 %v3880_v6, %s4008_s18 }
0x3344   :  { %v2490_v26 = vpop.permute.xlu0 %2489 }
0x3345   :  { %v4636_v12 = vmul.f32 %v3878_v9, %v2490_v26 }
0x3347   :  { %v2501_v2 = vrot.slane %v4636_v12, 4 }
0x3349   :  { %2502 = vrot.lane.b32.xlu1 %v2501_v2, %s4009_s11 }
0x33bb   :  { %v2503_v13 = vpop.permute.xlu1 %2502 }
0x33bc   :  { %3662 = vmatmul.mubr.msk.f32.vlgmr.msra.gmra.mxu0 %vm144_vm3, %v2503_v13 }
0x33bd   :  { %3676 = vmatpush3.msra.mxu0 %v4538_v61  ;;  %3683 = vmatprep.mubr.msk.f32.mxu0 %vm4007_vm2, %v4006_v3 }
0x33be   :  { %3677 = vmatprep.subr.mxu0 %v4006_v3 }
0x33bf   :  { %3678 = vmatpush3.msra.mxu0 %v4544_v62 }
0x33c0   :  { %3679 = vmatprep.subr.mxu0 %v4006_v3 }
0x33c1   :  { %3680 = vmatpush3.msra.mxu0 %v4547_v63 }
0x33c2   :  { %3681 = vmatprep.subr.mxu0 %v4006_v3 }
0x33c3   :  { %3682 = vmatpush3.msra.mxu0 %v4556_v0 }
0x33c4   :  { %3697 = vmatprep.subr.mxu0 %v4006_v3 }
0x347c   :  { %v2572_v4 = vpop.f32.mrf.mxu0 }
0x347d   :  { %v2577_v15 = vrot.slane %v2572_v4, 2 }
0x347e   :  { %v3663_v16 = vpop.f32.mrf.mxu0 }
0x347f   :  { %v2579_v17 = vadd.f32 %v2577_v15, %v4593_v7 }
0x3481   :  { %3881 = vtanh.f32 %v2579_v17  ;;  %v3255_v19 = vmul.f32 -1.442695, %v2579_v17 }
0x3483   :  { %3883 = vpow2.f32 %v3255_v19 }
0x348e   :  { %v3882_v18 = vpop.eup %3881 }
0x348f   :  { %2592 = vrot.lane.b32.xlu0 %v3882_v18, %s4008_s18 }
0x3490   :  { %v3884_v20 = vpop.eup %3883 }
0x3491   :  { %v2583_v22 = vadd.f32 1.0, %v3884_v20 }
0x3493   :  { %3885 = vrcp.f32 %v2583_v22 }
0x34a0   :  { %v3886_v24 = vpop.eup %3885 }
0x34a1   :  { %v2590_v29 = vmul.f32 %v3886_v24, %v2588_v28 }
0x3501   :  { %v2593_v25 = vpop.permute.xlu0 %2592 }
0x3502   :  { %v2595_v27 = vmul.f32 %v3886_v24, %v2593_v25 }
0x3504   :  { %2597 = vrot.lane.b32.xlu1 %v2595_v27, %s4009_s11 }
0x3576   :  { %v2598_v31 = vpop.permute.xlu1 %2597 }
0x3577   :  { %v2600_v33 = vadd.f32 %v2598_v31, %v2590_v29 }
0x3579   :  { %3887 = vtanh.f32 %v2600_v33  ;;  %v2699_v48 = vrot.slane %v2600_v33, 6 }
0x3586   :  { %v3888_v7 = vpop.eup %3887 }
0x3587   :  { %2603 = vrot.lane.b32.xlu0 %v3888_v7, %s4008_s18 }
0x35f9   :  { %v2604_v34 = vpop.permute.xlu0 %2603 }
0x35fa   :  { %v4655_v35 = vmul.f32 %v3886_v24, %v2604_v34 }
0x35fc   :  { %v2615_v36 = vrot.slane %v4655_v35, 6 }
0x35fe   :  { %2616 = vrot.lane.b32.xlu1 %v2615_v36, %s4009_s11 }
0x3670   :  { %v2617_v37 = vpop.permute.xlu1 %2616 }
0x3671   :  { %3673 = vmatmul.mubr.msk.f32.vlgmr.msra.gmra.mxu1 %vm144_vm3, %v2617_v37 }
0x3672   :  { %3687 = vmatpush3.msra.mxu1 %v4538_v61  ;;  %3694 = vmatprep.mubr.msk.f32.mxu1 %vm4007_vm2, %v4006_v3 }
0x3673   :  { %3688 = vmatprep.subr.mxu1 %v4006_v3 }
0x3674   :  { %3689 = vmatpush3.msra.mxu1 %v4544_v62 }
0x3675   :  { %3690 = vmatprep.subr.mxu1 %v4006_v3 }
0x3676   :  { %3691 = vmatpush3.msra.mxu1 %v4547_v63 }
0x3677   :  { %3692 = vmatprep.subr.mxu1 %v4006_v3 }
0x3678   :  { %3693 = vmatpush3.msra.mxu1 %v4556_v0 }
0x3731   :  { %v2686_v38 = vpop.f32.mrf.mxu1 }
0x3732   :  { %v2690_v39 = vadd.f32 %v2686_v38, %v4591_v14 }
0x3733   :  { %v3674_v23 = vpop.f32.mrf.mxu1 }
0x3734   :  { %3889 = vtanh.f32 %v2690_v39  ;;  %v3257_v42 = vmul.f32 -1.442695, %v2690_v39 }
0x3736   :  { %3891 = vpow2.f32 %v3257_v42 }
0x3741   :  { %v3890_v40 = vpop.eup %3889 }
0x3742   :  { %2703 = vrot.lane.b32.xlu0 %v3890_v40, %s4008_s18 }
0x3743   :  { %v3892_v43 = vpop.eup %3891 }
0x3744   :  { %v2694_v44 = vadd.f32 1.0, %v3892_v43 }
0x3746   :  { %3893 = vrcp.f32 %v2694_v44 }
0x3753   :  { %v3894_v45 = vpop.eup %3893 }
0x3754   :  { %v2701_v49 = vmul.f32 %v3894_v45, %v2699_v48 }
0x37b4   :  { %v2704_v32 = vpop.permute.xlu0 %2703 }
0x37b5   :  { %v2706_v46 = vmul.f32 %v3894_v45, %v2704_v32 }
0x37b7   :  { %2708 = vrot.lane.b32.xlu1 %v2706_v46, %s4009_s11 }
0x3829   :  { %v2709_v50 = vpop.permute.xlu1 %2708 }
0x382a   :  { %v2711_v51 = vadd.f32 %v2709_v50, %v2701_v49 }
0x382c   :  { %3895 = vtanh.f32 %v2711_v51 }
0x3839   :  { %v3896_v52 = vpop.eup %3895 }
0x383a   :  { %2714 = vrot.lane.b32.xlu0 %v3896_v52, %s4008_s18  ;;  %v3062_v52 = vld [vmem:[#allocation11 + $0x18] sm:$0xff] }
0x383b   :  { %3708 = vmatprep.subr.mxu1 %v3062_v52 }
0x38ac   :  { %v2715_v21 = vpop.permute.xlu0 %2714 }
0x38ad   :  { %v2717_v54 = vmul.f32 %v3894_v45, %v2715_v21  ;;  %v3061_v21 = vld [vmem:[#allocation11 + $0x10] sm:$0xff] }
0x38af   :  { %2719 = vrot.lane.b32.xlu1 %v2717_v54, %s4009_s11  ;;  %v3060_v54 = vld [vmem:[#allocation11 + $0x8] sm:$0xff] }
0x3921   :  { %v2720_v55 = vpop.permute.xlu1 %2719 }
0x3922   :  { %2722 = vst.msk [vmem:[#allocation5 + $0x4] sm:$0x1] %vm77_vm1, %v2720_v55  ;;  %3684 = vmatmul.mubr.msk.f32.vlgmr.msra.gmra.mxu0 %vm144_vm3, %v2720_v55 }
0x3923   :  { %2723 = vst.msk [vmem:[#allocation5 + $0xb] sm:$0x2] %vm2274_vm7, %v2720_v55  ;;  %3698 = vmatpush3.msra.mxu0 %v4538_v61  ;;  %3705 = vmatprep.mubr.msk.f32.mxu0 %vm4007_vm2, %v4006_v3  ;;  %v3059_v55 = vld [vmem:[#allocation11] sm:$0xff] }
0x3924   :  { %3699 = vmatprep.subr.mxu0 %v4006_v3 }
0x3925   :  { %3700 = vmatpush3.msra.mxu0 %v4544_v62 }
0x3926   :  { %3701 = vmatprep.subr.mxu0 %v4006_v3 }
0x3927   :  { %3702 = vmatpush3.msra.mxu0 %v4547_v63 }
0x3928   :  { %3703 = vmatprep.subr.mxu0 %v4006_v3  ;;  %v2808_v3 = vrot.slane %v2711_v51, 6 }
0x3929   :  { %3704 = vmatpush3.msra.mxu0 %v4556_v0 }
0x39e2   :  { %v2792_v56 = vpop.f32.mrf.mxu0 }
0x39e3   :  { %v2797_v57 = vrot.slane %v2792_v56, 6 }
0x39e4   :  { %v3685_v58 = vpop.f32.mrf.mxu0 }
0x39e5   :  { %v2799_v61 = vadd.f32 %v2797_v57, %v4591_v14 }
0x39e7   :  { %3897 = vtanh.f32 %v2799_v61  ;;  %v3259_v59 = vmul.f32 -1.442695, %v2799_v61 }
0x39e9   :  { %3899 = vpow2.f32 %v3259_v59 }
0x39f4   :  { %v3898_v30 = vpop.eup %3897 }
0x39f5   :  { %2812 = vrot.lane.b32.xlu0 %v3898_v30, %s4008_s18 }
0x39f6   :  { %v3900_v62 = vpop.eup %3899 }
0x39f7   :  { %v2803_v41 = vadd.f32 1.0, %v3900_v62  ;;  %v3264_v62 = vld [vmem:[%s4745_s7] ss:$0 sm:$0xff] }
0x39f9   :  { %3901 = vrcp.f32 %v2803_v41 }
0x3a06   :  { %v3902_v60 = vpop.eup %3901 }
0x3a07   :  { %v2810_v0 = vmul.f32 %v3902_v60, %v2808_v3 }
0x3a67   :  { %v2813_v63 = vpop.permute.xlu0 %2812 }
0x3a68   :  { %v2815_v9 = vmul.f32 %v3902_v60, %v2813_v63 }
0x3a6a   :  { %2817 = vrot.lane.b32.xlu1 %v2815_v9, %s4009_s11 }
0x3adc   :  { %v2818_v8 = vpop.permute.xlu1 %2817 }
0x3add   :  { %v2820_v1 = vadd.f32 %v2818_v8, %v2810_v0 }
0x3adf   :  { %3903 = vtanh.f32 %v2820_v1  ;;  %v2920_v24 = vrot.slane %v2820_v1, 6 }
0x3aec   :  { %v3904_v10 = vpop.eup %3903 }
0x3aed   :  { %2823 = vrot.lane.b32.xlu0 %v3904_v10, %s4008_s18 }
0x3b5f   :  { %v2824_v47 = vpop.permute.xlu0 %2823 }
0x3b60   :  { %v4690_v5 = vmul.f32 %v3902_v60, %v2824_v47 }
0x3b62   :  { %v2833_v11 = vrot.slane %v4690_v5, 2 }
0x3b64   :  { %2834 = vrot.lane.b32.xlu1 %v2833_v11, %s4009_s11 }
0x3bd6   :  { %v2835_v6 = vpop.permute.xlu1 %2834 }
0x3bd7   :  { %3695 = vmatmul.mubr.msk.f32.vlgmr.msra.gmra.mxu1 %vm144_vm3, %v2835_v6 }
0x3bd8   :  { %3709 = vmatpush3.msra.mxu1 %v3062_v52 }
0x3bd9   :  { %3710 = vmatprep.subr.mxu1 %v3061_v21 }
0x3bda   :  { %3711 = vmatpush3.msra.mxu1 %v3061_v21 }
0x3bdb   :  { %3712 = vmatprep.subr.mxu1 %v3060_v54 }
0x3bdc   :  { %3713 = vmatpush3.msra.mxu1 %v3060_v54 }
0x3bdd   :  { %3714 = vmatprep.subr.mxu1 %v3059_v55 }
0x3bde   :  { %3715 = vmatpush3.msra.mxu1 %v3059_v55 }
0x3c97   :  { %v2904_v26 = vpop.f32.mrf.mxu1 }
0x3c98   :  { %v2909_v2 = vrot.slane %v2904_v26, 4 }
0x3c99   :  { %v3696_v13 = vpop.f32.mrf.mxu1 }
0x3c9a   :  { %v2911_v4 = vadd.f32 %v2909_v2, %v4591_v14 }
0x3c9c   :  { %3905 = vtanh.f32 %v2911_v4  ;;  %v3261_v16 = vmul.f32 -1.442695, %v2911_v4 }
0x3c9e   :  { %3907 = vpow2.f32 %v3261_v16 }
0x3ca9   :  { %v3906_v15 = vpop.eup %3905 }
0x3caa   :  { %2924 = vrot.lane.b32.xlu0 %v3906_v15, %s4008_s18 }
0x3cab   :  { %v3908_v17 = vpop.eup %3907 }
0x3cac   :  { %v2915_v18 = vadd.f32 1.0, %v3908_v17 }
0x3cae   :  { %3909 = vrcp.f32 %v2915_v18 }
0x3cbb   :  { %v3910_v19 = vpop.eup %3909 }
0x3cbc   :  { %v2922_v25 = vmul.f32 %v3910_v19, %v2920_v24 }
0x3d1c   :  { %v2925_v20 = vpop.permute.xlu0 %2924 }
0x3d1d   :  { %v2927_v22 = vmul.f32 %v3910_v19, %v2925_v20 }
0x3d1f   :  { %2929 = vrot.lane.b32.xlu1 %v2927_v22, %s4009_s11 }
0x3d91   :  { %v2930_v27 = vpop.permute.xlu1 %2929 }
0x3d92   :  { %v2932_v28 = vadd.f32 %v2930_v27, %v2922_v25 }
0x3d94   :  { %3911 = vtanh.f32 %v2932_v28 }
0x3da1   :  { %v3912_v29 = vpop.eup %3911 }
0x3da2   :  { %2935 = vrot.lane.b32.xlu0 %v3912_v29, %s4008_s18 }
0x3e14   :  { %v2936_v31 = vpop.permute.xlu0 %2935 }
0x3e15   :  { %v2938_v33 = vmul.f32 %v3910_v19, %v2936_v31 }
0x3e17   :  { %v2945_v7 = vrot.slane %v2938_v33, 4 }
0x3e19   :  { %2946 = vrot.lane.b32.xlu1 %v2945_v7, %s4009_s11 }
0x3e8b   :  { %v2947_v34 = vpop.permute.xlu1 %2946 }
0x3e8c   :  { %3706 = vmatmul.mubr.msk.f32.vlgmr.msra.gmra.mxu0 %vm144_vm3, %v2947_v34 }
0x3f4c   :  { %v3016_v36 = vpop.f32.mrf.mxu0 }
0x3f4d   :  { %v3021_v37 = vrot.slane %v3016_v36, 2 }
0x3f4e   :  { %v3707_v38 = vpop.f32.mrf.mxu0 }
0x3f4f   :  { %v3023_v39 = vadd.f32 %v3021_v37, %v4591_v14  ;;  %v3032_v14 = vrot.slane %v2932_v28, 6 }
0x3f51   :  { %3913 = vtanh.f32 %v3023_v39  ;;  %v3263_v40 = vmul.f32 -1.442695, %v3023_v39 }
0x3f53   :  { %3915 = vpow2.f32 %v3263_v40 }
0x3f5e   :  { %v3914_v23 = vpop.eup %3913 }
0x3f5f   :  { %3036 = vrot.lane.b32.xlu0 %v3914_v23, %s4008_s18 }
0x3f60   :  { %v3916_v42 = vpop.eup %3915 }
0x3f61   :  { %v3027_v43 = vadd.f32 1.0, %v3916_v42 }
0x3f63   :  { %3917 = vrcp.f32 %v3027_v43 }
0x3f70   :  { %v3918_v44 = vpop.eup %3917 }
0x3f71   :  { %v3034_v46 = vmul.f32 %v3918_v44, %v3032_v14 }
0x3fd1   :  { %v3037_v45 = vpop.permute.xlu0 %3036 }
0x3fd2   :  { %v3039_v32 = vmul.f32 %v3918_v44, %v3037_v45 }
0x3fd4   :  { %3041 = vrot.lane.b32.xlu1 %v3039_v32, %s4009_s11 }
0x3fd8   :  { %2380 = vrot.lane.b32.xlu1 %v4617_v53, %s4009_s11 }
0x3fdc   :  { %2608 = vrot.lane.b32.xlu1 %v4655_v35, %s4009_s11 }
0x3fe0   :  { %2940 = vrot.lane.b32.xlu1 %v2938_v33, %s4009_s11 }
0x4046   :  { %v3042_v48 = vpop.permute.xlu1 %3041 }
0x4047   :  { %v3044_v49 = vadd.f32 %v3042_v48, %v3034_v46 }
0x4049   :  { %3919 = vtanh.f32 %v3044_v49 }
0x404a   :  { %v2381_v50 = vpop.permute.xlu1 %2380 }
0x404b   :  { %2384 = vst.msk [vmem:[#allocation5 - $0x1] sm:$0x4] %vm2383_vm8, %v2381_v50 }
0x404c   :  { %2386 = vst.msk [vmem:[#allocation5 + $0x6] sm:$0x8] %vm2385_vm9, %v2381_v50 }
0x404e   :  { %v2609_v53 = vpop.permute.xlu1 %2608 }
0x404f   :  { %2612 = vst.msk [vmem:[#allocation5 - $0x3] sm:$0x40] %vm2611_vm10, %v2609_v53 }
0x4050   :  { %2614 = vst.msk [vmem:[#allocation5 + $0x4] sm:$0x80] %vm2613_vm11, %v2609_v53 }
0x4052   :  { %v2941_v35 = vpop.permute.xlu1 %2940 }
0x4053   :  { %2943 = vst.msk [vmem:[#allocation5 + $0x2] sm:$0x10] %vm2497_vm12, %v2941_v35 }
0x4054   :  { %2944 = vst.msk [vmem:[#allocation5 + $0x9] sm:$0x20] %vm2499_vm13, %v2941_v35 }
0x4056   :  { %v3920_v51 = vpop.eup %3919 }
0x4057   :  { %3047 = vrot.lane.b32.xlu0 %v3920_v51, %s4008_s18 }
0x405b   :  { %2494 = vrot.lane.b32.xlu0 %v4636_v12, %s4009_s11 }
0x405f   :  { %2828 = vrot.lane.b32.xlu0 %v4690_v5, %s4009_s11 }
0x40c9   :  { %v3048_v56 = vpop.permute.xlu0 %3047 }
0x40ca   :  { %v3050_v57 = vmul.f32 %v3918_v44, %v3048_v56 }
0x40cc   :  { %3052 = vrot.lane.b32.xlu0 %v3050_v57, %s4009_s11 }
0x40cd   :  { %v2495_v12 = vpop.permute.xlu0 %2494 }
0x40ce   :  { %2498 = vst.msk [vmem:[#allocation5 - $0x2] sm:$0x10] %vm2497_vm12, %v2495_v12 }
0x40cf   :  { %2500 = vst.msk [vmem:[#allocation5 + $0x5] sm:$0x20] %vm2499_vm13, %v2495_v12 }
0x40d1   :  { %v2829_v58 = vpop.permute.xlu0 %2828 }
0x40d2   :  { %2831 = vst.msk [vmem:[#allocation5 + $0x3] sm:$0x4] %vm2383_vm8, %v2829_v58 }
0x40d3   :  { %2832 = vst.msk [vmem:[#allocation5 + $0xa] sm:$0x8] %vm2385_vm9, %v2829_v58 }
0x413e   :  { %v3053_v61 = vpop.permute.xlu0 %3052 }
0x413f   :  { %3055 = vst.msk [vmem:[#allocation5 + $0x1] sm:$0x40] %vm2611_vm10, %v3053_v61 }
0x4140   :  { %3056 = vst.msk [vmem:[#allocation5 + $0x8] sm:$0x80] %vm2613_vm11, %v3053_v61 }
0x4146   :  { %v3057_v30 = vld [vmem:[#allocation5] sm:$0xff] }
0x4147   :  { %v3058_v59 = vld [vmem:[#allocation5 + $0x8] sm:$0xff]  ;;  %3716 = vmatprep.mubr.msk.f32.mxu1 %vm144_vm3, %v3057_v30 }
0x4148   :  { %3717 = vmatmul.mubr.msk.f32.vlgmr.msra.gmra.mxu1 %vm144_vm3, %v3058_v59 }
0x4208   :  { %v3718_v41 = vpop.f32.mrf.mxu1 }
0x4209   :  { %v3148_v60 = vadd.f32 %v3718_v41, %v3264_v62 }
0x420a   :  { %v3142_v63 = vpop.f32.mrf.mxu1 }
0x420b   :  { %v3143_v9 = vadd.f32 %v3264_v62, %v3142_v63  ;;  %3153 = vst.msk [vmem:[#allocation13 + $0x8] sm:$0xff] %vm3151_vm14, %v3148_v60 }
0x420d   :  { %3152 = vst.msk [vmem:[#allocation13] sm:$0xff] %vm3151_vm14, %v3143_v9 }
0x420e   :  { %3984 = shalt.err (!%p3981_p5)
}
0x420f   :  { %3165 = dma.vmem_to_hbm [thread:$0]  %s3160_s2, 256, %s4746_s8, [#allocation8], %s4003_s1, %s4003_s1, %s4004_s13  }
0x4210   :  { %3999 = dma.done.wait [#allocation8], 256  }
0x4211   :  { %4000 = vsyncadd [#allocation8], 4294967040 }
0x4212   :  { %3169 = vsyncpa [#allocation7], 1 }
0x4213   :  { %3170 = vsyncpa [#allocation12], 1 }
0x4214   :  { %3171 = vsyncpa [#allocation8], 1 }
0x4215   :  { %3172 = vsyncpa [#allocation9], 1 }

</bundles_post_ra>
